<compile_context>
chip_gen: v7x
topology: tpu7x:2x2x1
jax: 0.10.0
libtpu: 0.0.40
codegen_flags: <defaults>
</compile_context>

<pallas_src>
from functools import partial

import jax
import jax.numpy as jnp
from jax.experimental import pallas as pl
from jax.experimental.pallas import tpu as pltpu


# --------------------------------------------------------------------------- #
# Kernel body
# --------------------------------------------------------------------------- #
def _chunk_attn_kernel(q_ref, k_ref, v_ref, o_ref, *, inv_scale):
    """Local (per-column) attention on one tile.

    Ref shapes (lane axis last):
      q_ref, o_ref : (C, HQ, L)   HQ = query-row tile, L = lane tile
      k_ref, v_ref : (C, H,  L)   all H keys/values of the same columns
    Every lane l is an independent attention problem (one image column), so all
    reductions run over the channel axis (leading) or the key axis (sublane).
    """
    # f32 accumulation (exp / softmax need f32 anyway); 1/scale is folded into
    # q: C*HQ*L multiplies instead of HQ*H*L on the score tensor.
    # TODO(synk): for bf16 inputs on v6e/v7x keep q/k/v in bf16 and only
    # accumulate in f32 (halves vreg/VMEM footprint); v5e requires the upcast.
    q = q_ref[...].astype(jnp.float32) * inv_scale       # (C, HQ, L)
    k = k_ref[...].astype(jnp.float32)                    # (C, H,  L)
    v = v_ref[...].astype(jnp.float32)                    # (C, H,  L)
    C = q.shape[0]

    # scores[hq, hk, l] = sum_c q[c, hq, l] * k[c, hk, l]
    # For the tiny channel count this module is used with (C == dim == 4) the
    # contraction stays on the VPU: broadcast-multiply + add, unrolled over the
    # static channel count (a (HQ x C) @ (C x H) MXU matmul would waste >95% of
    # the systolic array and burn an XLU transpose).
    # TODO(synk): for C >= ~32 and H >= ~64 switch both contractions to a
    # batched MXU lax.dot_general (lane axis as the batch dim, token-major
    # blocks, preferred_element_type=f32) and emit the (B, N, C) layout
    # directly when C >= 128; not exercised at this module's channel counts.
    s = q[0][:, None, :] * k[0][None, :, :]               # (HQ, H, L)
    for c in range(1, C):
        s = s + q[c][:, None, :] * k[c][None, :, :]

    # Numerically stable softmax over the key axis (axis=1, the sublane axis):
    # max/sum go to the XLU, exp to the EUP — both off the VALU slots.
    m = jnp.max(s, axis=1, keepdims=True)                  # (HQ, 1, L)
    p = jnp.exp(s - m)                                     # unnormalised probs
    # Normalise AFTER the value contraction: the (HQ, L) reciprocal scales the
    # C*HQ*L outputs instead of the HQ*H*L prob matrix (~H/C fewer VALU muls).
    # approx=False keeps 1e-5 parity with the reference; approx=True is fine at
    # ~1e-3 tolerances.
    inv_denom = pl.reciprocal(jnp.sum(p, axis=1), approx=False)   # (HQ, L)

    # out[c, hq, l] = (sum_hk p[hq, hk, l] * v[c, hk, l]) * inv_denom[hq, l]
    outs = [(p * v[c][None, :, :]).sum(axis=1) * inv_denom for c in range(C)]
    # Single contiguous store (vector-store slot is the narrowest bundle slot);
    # the stack is along the leading, untiled axis, so it is layout-free.
    o_ref[...] = jnp.stack(outs, axis=0).astype(o_ref.dtype)


# --------------------------------------------------------------------------- #
# Tile selection / VMEM budgeting
# --------------------------------------------------------------------------- #
_VMEM_BUDGET = 40 * 1024 * 1024          # headroom inside v7x's 64 MiB VMEM
_VMEM_RAISE_THRESHOLD = 8 * 1024 * 1024  # v5e default scoped VMEM is only 16 MiB


def _divisor_tiles(n, unit):
    """Tile sizes t with t == n, or (t % unit == 0 and n % t == 0); descending.
    Satisfies the BlockSpec (8,128) rule for the corresponding axis."""
    cands = {n}
    for t in range(unit, n, unit):
        if n % t == 0:
            cands.add(t)
    return sorted(cands, reverse=True)


def _estimate_vmem_bytes(C, H, hq, lane, in_itemsize):
    """Per-grid-step working set: double-buffered pipeline blocks plus the
    in-kernel f32 temporaries (upcasts, scores, probs, stacked output)."""
    q_blk = C * hq * lane * in_itemsize
    kv_blk = 2 * C * H * lane * in_itemsize
    o_blk = C * hq * lane * 4                       # output block is f32
    blocks = 2 * (q_blk + kv_blk + o_blk)           # x2 pipeline buffers
    temps = 4 * (C * hq * lane                      # q upcast (scaled)
                 + 2 * C * H * lane                 # k, v upcasts
                 + 3 * hq * H * lane                # scores + probs (+ slack)
                 + 2 * C * hq * lane)               # per-channel outs + stack
    return blocks + temps


def _select_tiles(C, H, L, in_itemsize, budget=_VMEM_BUDGET):
    """Pick (lane_tile, hq_tile): lane tiles are multiples of 128 (or full L),
    query tiles multiples of 8 (or full H); largest combo under `budget`."""
    lane_cands = _divisor_tiles(L, 128)
    hq_cands = _divisor_tiles(H, 8)
    for lane in lane_cands:                 # lane density / size first
        for hq in hq_cands:                 # then the largest query tile
            if _estimate_vmem_bytes(C, H, hq, lane, in_itemsize) <= budget:
                return lane, hq
    # Nothing fits (huge C*H per key/value block): smallest legal tiles; the
    # caller raises vmem_limit from the estimate.
    # TODO(synk): a flash-style key-axis tiling would be needed to bound VMEM
    # for extreme C*H; not required at this module's shapes.
    return lane_cands[-1], hq_cands[-1]


def _tensorcores_per_chip():
    """v7x (and v4/v5p) have two TensorCores per chip; v5e/v6e have one."""
    try:
        kind = jax.devices()[0].device_kind.lower()
    except Exception:
        return 1
    return 2 if any(t in kind for t in ("v7", "7x", "v4", "v5p")) else 1


# --------------------------------------------------------------------------- #
# Wrapper
# --------------------------------------------------------------------------- #
def self_attention_pallas(Q, K, V, dim=None):
    """Pallas implementation of SelfAttention.forward for NCHW inputs."""
    B, C, H, W = Q.shape
    if dim is None:
        dim = C                                  # SelfAttention(dim) uses dim == C
    inv_scale = 1.0 / (float(dim) ** 0.5)
    N = W * H
    in_itemsize = Q.dtype.itemsize
    out_dtype = jnp.float32                      # torch.zeros(B, N, C) buffer is f32

    # Lane-density fold: columns (b, w) are independent attention problems, so
    # when W < 128 pack them as l = b*W + w and put the packed axis on lanes.
    # For W >= 128 read the NCHW inputs directly (no extra HBM layout passes)
    # with a >= 128-wide W tile on lanes.
    fold_b = (W < 128) and (B > 1)
    lane_extent = B * W if fold_b else W

    lane_tile, hq_tile = _select_tiles(C, H, lane_extent, in_itemsize)

    # Keep >= num_TensorCores balanced "parallel" steps (v7x has 2 TCs) by
    # splitting the query axis; on single-core chips the grid is allowed to
    # collapse to one step (saves ~0.35 us/step of pipeline overhead).
    base_steps = (1 if fold_b else B) * (lane_extent // lane_tile) * (H // hq_tile)
    if base_steps < _tensorcores_per_chip():
        for hq in _divisor_tiles(H, 8):
            if hq < H:                           # largest proper query tile
                hq_tile = hq
                break

    est_vmem = _estimate_vmem_bytes(C, H, hq_tile, lane_tile, in_itemsize)
    vmem_limit = None
    if est_vmem > _VMEM_RAISE_THRESHOLD:
        # Tile selection keeps est <= 40 MiB, so <= 48 MiB requests still leave
        # compiler-scratch headroom inside v7x's 64 MiB VMEM.  Never cap below
        # the estimate (only the _select_tiles fallback can exceed 48 MiB).
        vmem_limit = max(min(int(est_vmem * 1.2), 48 * 1024 * 1024), est_vmem)

    kernel = partial(_chunk_attn_kernel, inv_scale=inv_scale)
    params = pltpu.CompilerParams

    if fold_b:
        L = B * W
        # One layout-only pass per input: (B, C, H, W) -> (C, H, B*W).
        pack = lambda t: jnp.transpose(t, (1, 2, 0, 3)).reshape(C, H, L)
        Qp, Kp, Vp = pack(Q), pack(K), pack(V)

        grid = (L // lane_tile, H // hq_tile)    # hq innermost: k/v blocks revisited
        q_spec = pl.BlockSpec((C, hq_tile, lane_tile), lambda li, qi: (0, qi, li))
        kv_spec = pl.BlockSpec((C, H, lane_tile), lambda li, qi: (0, 0, li))
        out_spec = pl.BlockSpec((C, hq_tile, lane_tile), lambda li, qi: (0, qi, li))

        out_packed = pl.pallas_call(
            kernel,
            out_shape=jax.ShapeDtypeStruct((C, H, L), out_dtype),
            grid=grid,
            in_specs=[q_spec, kv_spec, kv_spec],
            out_specs=out_spec,
            compiler_params=params(dimension_semantics=("parallel",) * len(grid),
                                   vmem_limit_bytes=vmem_limit),
        )(Qp, Kp, Vp)

        # out_packed[c, h, b*W + w] == torch_output[b, w*H + h, c]
        buf = jnp.transpose(out_packed.reshape(C, H, B, W), (2, 3, 1, 0)).reshape(B, N, C)
    else:
        grid = (B, W // lane_tile, H // hq_tile)  # hq innermost: k/v revisited
        q_spec = pl.BlockSpec((None, C, hq_tile, lane_tile),
                              lambda b, wi, qi: (b, 0, qi, wi))
        kv_spec = pl.BlockSpec((None, C, H, lane_tile),
                               lambda b, wi, qi: (b, 0, 0, wi))
        out_spec = pl.BlockSpec((None, C, hq_tile, lane_tile),
                                lambda b, wi, qi: (b, 0, qi, wi))

        out_nchw = pl.pallas_call(
            kernel,
            out_shape=jax.ShapeDtypeStruct((B, C, H, W), out_dtype),
            grid=grid,
            in_specs=[q_spec, kv_spec, kv_spec],
            out_specs=out_spec,
            compiler_params=params(dimension_semantics=("parallel",) * len(grid),
                                   vmem_limit_bytes=vmem_limit),
        )(Q, K, V)

        # out_nchw[b, c, h, w] == torch_output[b, w*H + h, c]
        buf = jnp.transpose(out_nchw, (0, 3, 2, 1)).reshape(B, N, C)

    # torch reinterprets the contiguous (B, N, C) buffer with .view(B, C, H, W)
    # WITHOUT permuting back; a row-major reshape reproduces that exactly.
    # TODO(synk): when C >= 128 emit the (B, N, C) layout from the kernel (C on
    # lanes) and skip this wrapper-side transpose pass.
    return buf.reshape(B, C, H, W)


# --------------------------------------------------------------------------- #
# Pure-JAX reference (mirrors the PyTorch loop) + self-test
# --------------------------------------------------------------------------- #
def self_attention_ref(Q, K, V, dim=None):
    B, C, H, W = Q.shape
    if dim is None:
        dim = C
    scale = float(dim) ** 0.5
    N = W * H
    perm = lambda t: jnp.transpose(t, (0, 3, 2, 1)).reshape(B, N, C)
    q, k, v = perm(Q), perm(K), perm(V)
    outs = []
    for i in range(0, N, H):
        qc, kc, vc = q[:, i:i + H], k[:, i:i + H], v[:, i:i + H]
        s = jnp.einsum("bnc,bmc->bnm", qc, kc) / scale
        p = jax.nn.softmax(s, axis=-1)
        outs.append(jnp.einsum("bnm,bmc->bnc", p, vc))
    out = jnp.concatenate(outs, axis=1)
    return out.reshape(B, C, H, W)


if __name__ == "__main__":
    key = jax.random.PRNGKey(0)
    kq, kk, kv = jax.random.split(key, 3)
    B, C, H, W = 2, 4, 16, 16
    Q = jax.random.normal(kq, (B, C, H, W), dtype=jnp.float32)
    K = jax.random.normal(kk, (B, C, H, W), dtype=jnp.float32)
    V = jax.random.normal(kv, (B, C, H, W), dtype=jnp.float32)

    out = self_attention_pallas(Q, K, V)
    jax.block_until_ready(out)

    ref = self_attention_ref(Q, K, V)
    assert out.shape == (B, C, H, W)
    assert out.dtype == jnp.float32
    assert jnp.allclose(out, ref, atol=2e-5, rtol=2e-5), "mismatch vs reference"
    print("KERNEL_OK")
</pallas_src>

<mosaic_0001>
module attributes {stable_mosaic.version = 11 : i64} {
  func.func @_chunk_attn_kernel(%arg0: i32, %arg1: i32, %arg2: memref<4x16x32xf32, #tpu.memory_space<vmem>>, %arg3: memref<4x16x32xf32, #tpu.memory_space<vmem>>, %arg4: memref<4x16x32xf32, #tpu.memory_space<vmem>>, %arg5: memref<4x16x32xf32, #tpu.memory_space<vmem>>) attributes {dimension_semantics = [#tpu.dimension_semantics<parallel>, #tpu.dimension_semantics<parallel>], iteration_bounds = array<i64: 1, 1>, scalar_prefetch = 0 : i64, scratch_operands = 0 : i64, tpu.core_type = #tpu.core_type<tc>, window_params = [{transform_indices = @transform_0, window_bounds = array<i64: 4, 16, 32>}, {transform_indices = @transform_1, window_bounds = array<i64: 4, 16, 32>}, {transform_indices = @transform_2, window_bounds = array<i64: 4, 16, 32>}, {transform_indices = @transform_3, window_bounds = array<i64: 4, 16, 32>}]} {
    %c0 = arith.constant 0 : index
    %c0_0 = arith.constant 0 : index
    %c0_1 = arith.constant 0 : index
    %0 = vector.load %arg2[%c0, %c0_0, %c0_1] : memref<4x16x32xf32, #tpu.memory_space<vmem>>, vector<4x16x32xf32>
    %cst = arith.constant 5.000000e-01 : f32
    %1 = vector.broadcast %cst : f32 to vector<4x16x32xf32>
    %2 = arith.mulf %0, %1 : vector<4x16x32xf32>
    %c0_2 = arith.constant 0 : index
    %c0_3 = arith.constant 0 : index
    %c0_4 = arith.constant 0 : index
    %3 = vector.load %arg3[%c0_2, %c0_3, %c0_4] : memref<4x16x32xf32, #tpu.memory_space<vmem>>, vector<4x16x32xf32>
    %c0_5 = arith.constant 0 : index
    %c0_6 = arith.constant 0 : index
    %c0_7 = arith.constant 0 : index
    %4 = vector.load %arg4[%c0_5, %c0_6, %c0_7] : memref<4x16x32xf32, #tpu.memory_space<vmem>>, vector<4x16x32xf32>
    %5 = vector.extract_strided_slice %2 {offsets = [0, 0, 0], sizes = [1, 16, 32], strides = [1, 1, 1]} : vector<4x16x32xf32> to vector<1x16x32xf32>
    %6 = vector.shape_cast %5 : vector<1x16x32xf32> to vector<16x32xf32>
    %7 = vector.shape_cast %6 : vector<16x32xf32> to vector<16x1x32xf32>
    %8 = vector.extract_strided_slice %3 {offsets = [0, 0, 0], sizes = [1, 16, 32], strides = [1, 1, 1]} : vector<4x16x32xf32> to vector<1x16x32xf32>
    %9 = vector.shape_cast %8 : vector<1x16x32xf32> to vector<16x32xf32>
    %10 = vector.shape_cast %9 : vector<16x32xf32> to vector<1x16x32xf32>
    %11 = vector.broadcast %7 : vector<16x1x32xf32> to vector<16x16x32xf32>
    %12 = vector.broadcast %10 : vector<1x16x32xf32> to vector<16x16x32xf32>
    %13 = arith.mulf %11, %12 : vector<16x16x32xf32>
    %14 = vector.extract_strided_slice %2 {offsets = [1, 0, 0], sizes = [1, 16, 32], strides = [1, 1, 1]} : vector<4x16x32xf32> to vector<1x16x32xf32>
    %15 = vector.shape_cast %14 : vector<1x16x32xf32> to vector<16x32xf32>
    %16 = vector.shape_cast %15 : vector<16x32xf32> to vector<16x1x32xf32>
    %17 = vector.extract_strided_slice %3 {offsets = [1, 0, 0], sizes = [1, 16, 32], strides = [1, 1, 1]} : vector<4x16x32xf32> to vector<1x16x32xf32>
    %18 = vector.shape_cast %17 : vector<1x16x32xf32> to vector<16x32xf32>
    %19 = vector.shape_cast %18 : vector<16x32xf32> to vector<1x16x32xf32>
    %20 = vector.broadcast %16 : vector<16x1x32xf32> to vector<16x16x32xf32>
    %21 = vector.broadcast %19 : vector<1x16x32xf32> to vector<16x16x32xf32>
    %22 = arith.mulf %20, %21 : vector<16x16x32xf32>
    %23 = arith.addf %13, %22 : vector<16x16x32xf32>
    %24 = vector.extract_strided_slice %2 {offsets = [2, 0, 0], sizes = [1, 16, 32], strides = [1, 1, 1]} : vector<4x16x32xf32> to vector<1x16x32xf32>
    %25 = vector.shape_cast %24 : vector<1x16x32xf32> to vector<16x32xf32>
    %26 = vector.shape_cast %25 : vector<16x32xf32> to vector<16x1x32xf32>
    %27 = vector.extract_strided_slice %3 {offsets = [2, 0, 0], sizes = [1, 16, 32], strides = [1, 1, 1]} : vector<4x16x32xf32> to vector<1x16x32xf32>
    %28 = vector.shape_cast %27 : vector<1x16x32xf32> to vector<16x32xf32>
    %29 = vector.shape_cast %28 : vector<16x32xf32> to vector<1x16x32xf32>
    %30 = vector.broadcast %26 : vector<16x1x32xf32> to vector<16x16x32xf32>
    %31 = vector.broadcast %29 : vector<1x16x32xf32> to vector<16x16x32xf32>
    %32 = arith.mulf %30, %31 : vector<16x16x32xf32>
    %33 = arith.addf %23, %32 : vector<16x16x32xf32>
    %34 = vector.extract_strided_slice %2 {offsets = [3, 0, 0], sizes = [1, 16, 32], strides = [1, 1, 1]} : vector<4x16x32xf32> to vector<1x16x32xf32>
    %35 = vector.shape_cast %34 : vector<1x16x32xf32> to vector<16x32xf32>
    %36 = vector.shape_cast %35 : vector<16x32xf32> to vector<16x1x32xf32>
    %37 = vector.extract_strided_slice %3 {offsets = [3, 0, 0], sizes = [1, 16, 32], strides = [1, 1, 1]} : vector<4x16x32xf32> to vector<1x16x32xf32>
    %38 = vector.shape_cast %37 : vector<1x16x32xf32> to vector<16x32xf32>
    %39 = vector.shape_cast %38 : vector<16x32xf32> to vector<1x16x32xf32>
    %40 = vector.broadcast %36 : vector<16x1x32xf32> to vector<16x16x32xf32>
    %41 = vector.broadcast %39 : vector<1x16x32xf32> to vector<16x16x32xf32>
    %42 = arith.mulf %40, %41 : vector<16x16x32xf32>
    %43 = arith.addf %33, %42 : vector<16x16x32xf32>
    %cst_8 = arith.constant dense<0xFF800000> : vector<16x32xf32>
    %44 = vector.multi_reduction <maximumf>, %43, %cst_8 [1] : vector<16x16x32xf32> to vector<16x32xf32>
    %45 = vector.shape_cast %44 : vector<16x32xf32> to vector<16x1x32xf32>
    %46 = vector.broadcast %45 : vector<16x1x32xf32> to vector<16x16x32xf32>
    %47 = arith.subf %43, %46 : vector<16x16x32xf32>
    %48 = math.exp %47 : vector<16x16x32xf32>
    %cst_9 = arith.constant dense<0.000000e+00> : vector<16x32xf32>
    %49 = vector.multi_reduction <add>, %48, %cst_9 [1] : vector<16x16x32xf32> to vector<16x32xf32>
    %50 = tpu.reciprocal %49 : vector<16x32xf32> -> vector<16x32xf32>
    %51 = vector.extract_strided_slice %4 {offsets = [0, 0, 0], sizes = [1, 16, 32], strides = [1, 1, 1]} : vector<4x16x32xf32> to vector<1x16x32xf32>
    %52 = vector.shape_cast %51 : vector<1x16x32xf32> to vector<16x32xf32>
    %53 = vector.shape_cast %52 : vector<16x32xf32> to vector<1x16x32xf32>
    %54 = vector.broadcast %53 : vector<1x16x32xf32> to vector<16x16x32xf32>
    %55 = arith.mulf %48, %54 : vector<16x16x32xf32>
    %cst_10 = arith.constant dense<0.000000e+00> : vector<16x32xf32>
    %56 = vector.multi_reduction <add>, %55, %cst_10 [1] : vector<16x16x32xf32> to vector<16x32xf32>
    %57 = arith.mulf %56, %50 : vector<16x32xf32>
    %58 = vector.extract_strided_slice %4 {offsets = [1, 0, 0], sizes = [1, 16, 32], strides = [1, 1, 1]} : vector<4x16x32xf32> to vector<1x16x32xf32>
    %59 = vector.shape_cast %58 : vector<1x16x32xf32> to vector<16x32xf32>
    %60 = vector.shape_cast %59 : vector<16x32xf32> to vector<1x16x32xf32>
    %61 = vector.broadcast %60 : vector<1x16x32xf32> to vector<16x16x32xf32>
    %62 = arith.mulf %48, %61 : vector<16x16x32xf32>
    %cst_11 = arith.constant dense<0.000000e+00> : vector<16x32xf32>
    %63 = vector.multi_reduction <add>, %62, %cst_11 [1] : vector<16x16x32xf32> to vector<16x32xf32>
    %64 = arith.mulf %63, %50 : vector<16x32xf32>
    %65 = vector.extract_strided_slice %4 {offsets = [2, 0, 0], sizes = [1, 16, 32], strides = [1, 1, 1]} : vector<4x16x32xf32> to vector<1x16x32xf32>
    %66 = vector.shape_cast %65 : vector<1x16x32xf32> to vector<16x32xf32>
    %67 = vector.shape_cast %66 : vector<16x32xf32> to vector<1x16x32xf32>
    %68 = vector.broadcast %67 : vector<1x16x32xf32> to vector<16x16x32xf32>
    %69 = arith.mulf %48, %68 : vector<16x16x32xf32>
    %cst_12 = arith.constant dense<0.000000e+00> : vector<16x32xf32>
    %70 = vector.multi_reduction <add>, %69, %cst_12 [1] : vector<16x16x32xf32> to vector<16x32xf32>
    %71 = arith.mulf %70, %50 : vector<16x32xf32>
    %72 = vector.extract_strided_slice %4 {offsets = [3, 0, 0], sizes = [1, 16, 32], strides = [1, 1, 1]} : vector<4x16x32xf32> to vector<1x16x32xf32>
    %73 = vector.shape_cast %72 : vector<1x16x32xf32> to vector<16x32xf32>
    %74 = vector.shape_cast %73 : vector<16x32xf32> to vector<1x16x32xf32>
    %75 = vector.broadcast %74 : vector<1x16x32xf32> to vector<16x16x32xf32>
    %76 = arith.mulf %48, %75 : vector<16x16x32xf32>
    %cst_13 = arith.constant dense<0.000000e+00> : vector<16x32xf32>
    %77 = vector.multi_reduction <add>, %76, %cst_13 [1] : vector<16x16x32xf32> to vector<16x32xf32>
    %78 = arith.mulf %77, %50 : vector<16x32xf32>
    %79 = vector.shape_cast %57 : vector<16x32xf32> to vector<1x16x32xf32>
    %80 = vector.shape_cast %64 : vector<16x32xf32> to vector<1x16x32xf32>
    %81 = vector.shape_cast %71 : vector<16x32xf32> to vector<1x16x32xf32>
    %82 = vector.shape_cast %78 : vector<16x32xf32> to vector<1x16x32xf32>
    %83 = tpu.concatenate %79, %80, %81, %82 in 0 : vector<1x16x32xf32>, vector<1x16x32xf32>, vector<1x16x32xf32>, vector<1x16x32xf32> -> vector<4x16x32xf32>
    %c0_14 = arith.constant 0 : index
    %c0_15 = arith.constant 0 : index
    %c0_16 = arith.constant 0 : index
    %84 = vector.load %arg5[%c0_14, %c0_15, %c0_16] : memref<4x16x32xf32, #tpu.memory_space<vmem>>, vector<4x16x32xf32>
    tpu.vector_store %arg5[%c0_14, %c0_15, %c0_16], %83 {strides = array<i32>} : memref<4x16x32xf32, #tpu.memory_space<vmem>>, vector<4x16x32xf32>,
    return
  }
  func.func @transform_0(%arg0: i32, %arg1: i32) -> (i32, i32, i32) {
    %c0_i32 = arith.constant 0 : i32
    %c0_i32_0 = arith.constant 0 : i32
    return %c0_i32, %arg1, %arg0 : i32, i32, i32
  }
  func.func @transform_1(%arg0: i32, %arg1: i32) -> (i32, i32, i32) {
    %c0_i32 = arith.constant 0 : i32
    %c0_i32_0 = arith.constant 0 : i32
    %c0_i32_1 = arith.constant 0 : i32
    return %c0_i32, %c0_i32_0, %arg0 : i32, i32, i32
  }
  func.func @transform_2(%arg0: i32, %arg1: i32) -> (i32, i32, i32) {
    %c0_i32 = arith.constant 0 : i32
    %c0_i32_0 = arith.constant 0 : i32
    %c0_i32_1 = arith.constant 0 : i32
    return %c0_i32, %c0_i32_0, %arg0 : i32, i32, i32
  }
  func.func @transform_3(%arg0: i32, %arg1: i32) -> (i32, i32, i32) {
    %c0_i32 = arith.constant 0 : i32
    %c0_i32_0 = arith.constant 0 : i32
    return %c0_i32, %arg1, %arg0 : i32, i32, i32
  }
}

</mosaic_0001>

<bundles_post_ra>
// kernel: tpu_custom_call.1
= control target key start
LH: loop header
LB: loop body
LE: loop exit
PB: predicated region body
PF: predicated region fallthrough
CT: control target
= control target key end

     0   :  { %8 = vsyncpa [#allocation3], 0  ;;  %s4583_s0 = inlined_call_operand.hbm [shape: f32[4,16,32], index: 0, kind: input, shape index: {}]   ;;  %s4584_s1 = inlined_call_operand.hbm [shape: f32[4,16,32], index: 1, kind: input, shape index: {}]   ;;  %s4585_s2 = inlined_call_operand.hbm [shape: f32[4,16,32], index: 2, kind: input, shape index: {}]   ;;  %s4586_s3 = inlined_call_operand.hbm [shape: f32[4,16,32], index: 3, kind: output, shape index: {}]  }
   0x1   :  { %9 = vsyncpa [#allocation6], 0 }
   0x2   :  { %10 = vsyncpa [#allocation4], 0  ;;  %s2615_s12 = smov [#allocation5]   ;;  %s2616_s14 = smov [#allocation2]  }
   0x3   :  { %s28_s13 = sshll.u32 %s2615_s12, 4  ;;  %s16_s15 = sshll.u32 %s2616_s14, 4  ;;  %s29_s13 = int_to_ptr.vmem [resolvable:$true] %s28_s13  ;;  %s2642_s15 = int_to_ptr.vmem [resolvable:$true] %s16_s15 }
   0x4   :  { %s2521_s18 = scalar_lea.hbm %s4584_s1, 1024 }
   0x5   :  { %p2522_p0 = scmp.ne.s32.totalorder %s4584_s1, %s2521_s18  ;;  %p2525_p1 = scmp.lt.u32.totalorder %s2521_s18, %s4584_s1 }
   0x7   :  { %p2527_p2 = pnand %p2525_p1, %p2522_p0 }
   0x9   :  { %2530 = shalt.err (!%p2527_p2)
}
   0xa   :  { %s2531_s23 = scalar_lea.vmem %s29_s13, 1024  ;;  %p2536_p4 = scmp.lt.s32.totalorder %s29_s13, %s29_s13 }
   0xb   :  { %p2532_p3 = scmp.ne.s32.totalorder %s29_s13, %s2531_s23  ;;  %p2537_p5 = scmp.lt.s32.totalorder %s2531_s23, %s2531_s23 }
   0xd   :  { %p2538_p6 = por %p2537_p5, %p2536_p4 }
   0xf   :  { %p2539_p7 = pnand %p2538_p6, %p2532_p3 }
  0x11   :  { %2542 = shalt.err (!%p2539_p7)
}
  0x12   :  { %s2617_s24 = smov 128   ;;  %s2618_s25 = smov 8  }
  0x13   :  { %34 = dma.hbm_to_vmem [thread:$0]  %s4584_s1, 1024, %s29_s13, [#allocation6], %s2617_s24, %s2617_s24, %s2618_s25  }
  0x14   :  { %s2543_s30 = scalar_lea.hbm %s4583_s0, 1024 }
  0x15   :  { %p2544_p8 = scmp.ne.s32.totalorder %s4583_s0, %s2543_s30  ;;  %p2547_p9 = scmp.lt.u32.totalorder %s2543_s30, %s4583_s0 }
  0x17   :  { %p2549_p10 = pnand %p2547_p9, %p2544_p8 }
  0x19   :  { %2552 = shalt.err (!%p2549_p10)
}
  0x1a   :  { %s2553_s8 = scalar_lea.vmem %s2642_s15, 1024  ;;  %p2558_p12 = scmp.lt.s32.totalorder %s2642_s15, %s2642_s15 }
  0x1b   :  { %p2554_p11 = scmp.ne.s32.totalorder %s2642_s15, %s2553_s8  ;;  %p2559_p13 = scmp.lt.s32.totalorder %s2553_s8, %s2553_s8 }
  0x1d   :  { %p2560_p0 = por %p2559_p13, %p2558_p12 }
  0x1f   :  { %p2561_p1 = pnand %p2560_p0, %p2554_p11 }
  0x21   :  { %2564 = shalt.err (!%p2561_p1)
}
  0x22   :  { %22 = dma.hbm_to_vmem [thread:$0]  %s4583_s0, 1024, %s2642_s15, [#allocation3], %s2617_s24, %s2617_s24, %s2618_s25  }
  0x23   :  { %s2619_s10 = smov [#allocation7]   ;;  %s2565_s14 = scalar_lea.hbm %s4585_s2, 1024 }
  0x24   :  { %s40_s11 = sshll.u32 %s2619_s10, 4  ;;  %p2566_p2 = scmp.ne.s32.totalorder %s4585_s2, %s2565_s14  ;;  %s41_s11 = int_to_ptr.vmem [resolvable:$true] %s40_s11 }
  0x25   :  { %p2569_p3 = scmp.lt.u32.totalorder %s2565_s14, %s4585_s2 }
  0x27   :  { %p2571_p4 = pnand %p2569_p3, %p2566_p2 }
  0x29   :  { %2574 = shalt.err (!%p2571_p4)
}
  0x2a   :  { %s2575_s20 = scalar_lea.vmem %s41_s11, 1024  ;;  %p2580_p6 = scmp.lt.s32.totalorder %s41_s11, %s41_s11 }
  0x2b   :  { %p2576_p5 = scmp.ne.s32.totalorder %s41_s11, %s2575_s20  ;;  %p2581_p7 = scmp.lt.s32.totalorder %s2575_s20, %s2575_s20 }
  0x2d   :  { %p2582_p8 = por %p2581_p7, %p2580_p6 }
  0x2f   :  { %p2583_p9 = pnand %p2582_p8, %p2576_p5 }
  0x31   :  { %2586 = shalt.err (!%p2583_p9)
}
  0x32   :  { %46 = dma.hbm_to_vmem [thread:$0]  %s4585_s2, 1024, %s41_s11, [#allocation6], %s2617_s24, %s2617_s24, %s2618_s25  }
  0x33   :  { %2609 = dma.done.wait [#allocation3], 1024  }
  0x34   :  { %2610 = vsyncadd [#allocation3], 4294966272 }
  0x35   :  { %2611 = dma.done.wait [#allocation6], 2048  }
  0x36   :  { %2612 = vsyncadd [#allocation6], 4294965248  ;;  %v94_v0 = vlaneseq  ;;  %v2620_v1 = vmov 1966171168   ;;  %v56_v6 = vld [vmem:[#allocation2] sm:$0xff]  ;;  %v57_v7 = vld [vmem:[#allocation2 + $0x8] sm:$0xff] }
  0x37   :  { %v92_v2 = vunpack.c.l.s4 %v2620_v1  ;;  %v58_v8 = vld [vmem:[#allocation2 + $0x10] sm:$0xff]  ;;  %v64_v9 = vmul.f32 0.5, %v56_v6  ;;  %v65_v10 = vmul.f32 0.5, %v57_v7  ;;  %v59_v11 = vld [vmem:[#allocation2 + $0x18] sm:$0xff]  ;;  %v60_v12 = vld [vmem:[#allocation2 + $0x20] sm:$0xff]  ;;  %vm1032_vm0 = vcmask 261120  }
  0x38   :  { %v95_v3 = vshrl.u32 %v94_v0, 7  ;;  %v61_v13 = vld [vmem:[#allocation2 + $0x28] sm:$0xff]  ;;  %v66_v16 = vmul.f32 0.5, %v58_v8  ;;  %v2700_v20 = vmul.f32 0.5, %v59_v11  ;;  %v62_v24 = vld [vmem:[#allocation2 + $0x30] sm:$0xff]  ;;  %v2704_v25 = vmul.f32 0.5, %v60_v12 }
  0x39   :  { %v93_v4 = vunpack.c.0.s8 %v92_v2  ;;  %v90_v14 = vcombine.high %v64_v9, %v64_v9  ;;  %v139_v17 = vcombine.high %v65_v10, %v65_v10  ;;  %v2706_v26 = vmul.f32 0.5, %v61_v13  ;;  %v63_v29 = vld [vmem:[#allocation2 + $0x38] sm:$0xff]  ;;  %v72_v58 = vld [vmem:[#allocation5] sm:$0xff]  ;;  %v73_v59 = vld [vmem:[#allocation5 + $0x8] sm:$0xff]  ;;  %s2621_s2 = smov [#allocation8]  }
  0x3a   :  { %v2698_v19 = vsub.s32 0, %v95_v3  ;;  %4683 = vst [vmem:[#allocation14_spill] sm:$0xff] %v2704_v25  ;;  %v302_v37 = vcombine.high %v66_v16, %v66_v16  ;;  %v2714_v38 = vmul.f32 0.5, %v62_v24  ;;  %v2717_v42 = vmul.f32 0.5, %v63_v29  ;;  %s2405_s21 = sshll.u32 %s2621_s2, 4  ;;  %s2406_s21 = int_to_ptr.vmem [resolvable:$true] %s2405_s21 }
  0x3b   :  { %v2694_v5 = vsub.s32 %v93_v4, %v95_v3  ;;  %4684 = vst [vmem:[#allocation15_spill] sm:$0xff] %v2706_v26  ;;  %v351_v49 = vcombine.high %v2700_v20, %v2700_v20  ;;  %vm2266_vm1 = vcmask 1041409   ;;  %vm2269_vm2 = vcmask 1042434   ;;  %s2587_s22 = scalar_lea.vmem %s2406_s21, 1024  ;;  %p2592_p11 = scmp.lt.s32.totalorder %s2406_s21, %s2406_s21 }
  0x3c   :  { %4682 = vst [vmem:[#allocation13_spill] sm:$0xff] %v2698_v19  ;;  %4685 = vst [vmem:[#allocation16_spill] sm:$0xff] %v2714_v38  ;;  %vm2272_vm3 = vcmask 1043459   ;;  %vm2275_vm4 = vcmask 1044484   ;;  %vm2278_vm5 = vcmask 1045509   ;;  %vm2281_vm6 = vcmask 1046534   ;;  %p2588_p10 = scmp.ne.s32.totalorder %s2406_s21, %s2587_s22  ;;  %p2593_p12 = scmp.lt.s32.totalorder %s2587_s22, %s2587_s22 }
  0x3d   :  { %4681 = vst [vmem:[#allocation12_spill] sm:$0xff] %v2694_v5  ;;  %v97_v15 = vrot.slane %v64_v9, %v2694_v5  ;;  %v146_v18 = vrot.slane %v65_v10, %v2694_v5  ;;  %v104_v21 = vrot.slane %v90_v14, %v2694_v5  ;;  %v153_v27 = vrot.slane %v139_v17, %v2694_v5 }
  0x3e   :  { %4686 = vst [vmem:[#allocation17_spill] sm:$0xff] %v2717_v42  ;;  %v309_v45 = vrot.slane %v66_v16, %v2694_v5  ;;  %v316_v53 = vrot.slane %v302_v37, %v2694_v5  ;;  %vm2284_vm7 = vcmask 1047559   ;;  %p2594_p13 = por %p2593_p12, %p2592_p11 }
  0x3f   :  { %v105_v22 = vcombine.high %v97_v15, %v97_v15  ;;  %v113_v23 = vrot.slane %v97_v15, %v2694_v5  ;;  %v154_v28 = vcombine.high %v146_v18, %v146_v18  ;;  %v106_v30 = vcombine.high %v104_v21, %v104_v21 }
  0x40   :  { %v120_v31 = vrot.slane %v104_v21, %v2694_v5  ;;  %v162_v33 = vrot.slane %v146_v18, %v2694_v5  ;;  %v155_v34 = vcombine.high %v153_v27, %v153_v27  ;;  %v169_v35 = vrot.slane %v153_v27, %v2694_v5  ;;  %p2595_p0 = pnand %p2594_p13, %p2588_p10 }
  0x41   :  { %v127_v32 = vrot.slane %v105_v22, %v2694_v5  ;;  %v176_v36 = vrot.slane %v154_v28, %v2694_v5  ;;  %v134_v39 = vrot.slane %v106_v30, %v2694_v5  ;;  %v135_v40 = vcombine.high %v113_v23, %v113_v23 }
  0x42   :  { %v136_v43 = vcombine.high %v120_v31, %v120_v31  ;;  %v183_v44 = vrot.slane %v155_v34, %v2694_v5  ;;  %v184_v47 = vcombine.high %v162_v33, %v162_v33  ;;  %v185_v50 = vcombine.high %v169_v35, %v169_v35 }
  0x43   :  { %v137_v41 = vcombine.high %v127_v32, %v127_v32  ;;  %v138_v46 = vcombine.high %v134_v39, %v134_v39  ;;  %v186_v48 = vcombine.high %v176_v36, %v176_v36  ;;  %v191_v52 = vrot.slane %v113_v23, %v2698_v19 }
  0x44   :  { %v187_v51 = vcombine.high %v183_v44, %v183_v44  ;;  %v195_v54 = vrot.slane %v127_v32, %v2698_v19  ;;  %v199_v55 = vrot.slane %v135_v40, %v2698_v19  ;;  %v207_v57 = vrot.slane %v120_v31, %v2698_v19 }
  0x45   :  { %v203_v56 = vrot.slane %v137_v41, %v2698_v19  ;;  %v211_v60 = vrot.slane %v134_v39, %v2698_v19  ;;  %v215_v61 = vrot.slane %v136_v43, %v2698_v19  ;;  %v219_v62 = vrot.slane %v138_v46, %v2698_v19 }
  0x46   :  { %v223_v63 = vrot.slane %v162_v33, %v2698_v19  ;;  %v227_v0 = vrot.slane %v176_v36, %v2698_v19  ;;  %v231_v1 = vrot.slane %v184_v47, %v2698_v19  ;;  %v235_v2 = vrot.slane %v186_v48, %v2698_v19 }
  0x47   :  { %v239_v3 = vrot.slane %v169_v35, %v2698_v19  ;;  %v243_v4 = vrot.slane %v183_v44, %v2698_v19  ;;  %v247_v6 = vrot.slane %v185_v50, %v2698_v19  ;;  %v251_v7 = vrot.slane %v187_v51, %v2698_v19 }
  0x48   :  { %v2740_v8 = vmul.f32 %v191_v52, %v72_v58  ;;  %v2742_v9 = vmul.f32 %v191_v52, %v73_v59  ;;  %v2744_v10 = vmul.f32 %v195_v54, %v72_v58  ;;  %v2746_v11 = vmul.f32 %v195_v54, %v73_v59 }
  0x49   :  { %v2748_v12 = vmul.f32 %v199_v55, %v72_v58  ;;  %v2750_v13 = vmul.f32 %v199_v55, %v73_v59  ;;  %v2752_v14 = vmul.f32 %v203_v56, %v72_v58  ;;  %v2754_v15 = vmul.f32 %v203_v56, %v73_v59 }
  0x4a   :  { %v2756_v16 = vmul.f32 %v207_v57, %v72_v58  ;;  %v2758_v17 = vmul.f32 %v207_v57, %v73_v59  ;;  %v2760_v18 = vmul.f32 %v211_v60, %v72_v58  ;;  %v2762_v21 = vmul.f32 %v211_v60, %v73_v59 }
  0x4b   :  { %v2764_v22 = vmul.f32 %v215_v61, %v72_v58  ;;  %v2766_v23 = vmul.f32 %v215_v61, %v73_v59  ;;  %v2768_v24 = vmul.f32 %v219_v62, %v72_v58  ;;  %v2770_v27 = vmul.f32 %v219_v62, %v73_v59 }
  0x4c   :  { %v2772_v28 = vmul.f32 %v223_v63, %v72_v58  ;;  %v2774_v29 = vmul.f32 %v223_v63, %v73_v59  ;;  %v2776_v30 = vmul.f32 %v227_v0, %v72_v58  ;;  %v2778_v31 = vmul.f32 %v227_v0, %v73_v59 }
  0x4d   :  { %v2780_v32 = vmul.f32 %v231_v1, %v72_v58  ;;  %v2782_v33 = vmul.f32 %v231_v1, %v73_v59  ;;  %v2784_v34 = vmul.f32 %v235_v2, %v72_v58  ;;  %v2786_v35 = vmul.f32 %v235_v2, %v73_v59 }
  0x4e   :  { %v2788_v36 = vmul.f32 %v239_v3, %v72_v58  ;;  %v2790_v37 = vmul.f32 %v239_v3, %v73_v59  ;;  %v317_v39 = vcombine.high %v309_v45, %v309_v45  ;;  %v318_v40 = vcombine.high %v316_v53, %v316_v53 }
  0x4f   :  { %4687 = vst [vmem:[#allocation18_spill] sm:$0xff] %v2780_v32  ;;  %4688 = vst [vmem:[#allocation19_spill] sm:$0xff] %v2782_v33  ;;  %v325_v41 = vrot.slane %v309_v45, %v2694_v5  ;;  %v2793_v43 = vmul.f32 %v243_v4, %v72_v58  ;;  %v332_v44 = vrot.slane %v316_v53, %v2694_v5 }
  0x50   :  { %4689 = vst [vmem:[#allocation20_spill] sm:$0xff] %v2784_v34  ;;  %4690 = vst [vmem:[#allocation21_spill] sm:$0xff] %v2786_v35  ;;  %v358_v46 = vrot.slane %v2700_v20, %v2694_v5  ;;  %v365_v47 = vrot.slane %v351_v49, %v2694_v5  ;;  %v2799_v48 = vmul.f32 %v243_v4, %v73_v59 }
  0x51   :  { %4691 = vst [vmem:[#allocation22_spill] sm:$0xff] %v2788_v36  ;;  %4692 = vst [vmem:[#allocation23_spill] sm:$0xff] %v2790_v37  ;;  %v2801_v50 = vmul.f32 %v247_v6, %v72_v58  ;;  %v339_v51 = vrot.slane %v317_v39, %v2694_v5  ;;  %v346_v52 = vrot.slane %v318_v40, %v2694_v5 }
  0x52   :  { %4693 = vst [vmem:[#allocation24_spill] sm:$0xff] %v2793_v43  ;;  %4694 = vst [vmem:[#allocation25_spill] sm:$0xff] %v2799_v48  ;;  %v366_v54 = vcombine.high %v358_v46, %v358_v46  ;;  %v367_v55 = vcombine.high %v365_v47, %v365_v47  ;;  %v374_v45 = vrot.slane %v358_v46, %v2694_v5 }
  0x53   :  { %4695 = vst [vmem:[#allocation26_spill] sm:$0xff] %v2801_v50  ;;  %v381_v56 = vrot.slane %v365_v47, %v2694_v5  ;;  %v2807_v53 = vmul.f32 %v247_v6, %v73_v59  ;;  %v2809_v57 = vmul.f32 %v251_v7, %v72_v58  ;;  %v347_v20 = vcombine.high %v325_v41, %v325_v41  ;;  %v74_v47 = vld [vmem:[#allocation5 + $0x10] sm:$0xff] }
  0x54   :  { %v349_v49 = vcombine.high %v339_v51, %v339_v51  ;;  %v348_v60 = vcombine.high %v332_v44, %v332_v44  ;;  %v350_v61 = vcombine.high %v346_v52, %v346_v52  ;;  %v388_v62 = vrot.slane %v366_v54, %v2694_v5  ;;  %v75_v54 = vld [vmem:[#allocation5 + $0x18] sm:$0xff] }
  0x55   :  { %4696 = vst [vmem:[#allocation27_spill] sm:$0xff] %v2807_v53  ;;  %4697 = vst [vmem:[#allocation28_spill] sm:$0xff] %v2809_v57  ;;  %v395_v63 = vrot.slane %v367_v55, %v2694_v5  ;;  %v2813_v0 = vmul.f32 %v251_v7, %v73_v59  ;;  %v396_v1 = vcombine.high %v374_v45, %v374_v45 }
  0x56   :  { %v2819_v3 = vrot.slane %v2704_v25, %v2694_v5  ;;  %v397_v58 = vcombine.high %v381_v56, %v381_v56  ;;  %v398_v4 = vcombine.high %v388_v62, %v388_v62  ;;  %v403_v39 = vrot.slane %v325_v41, %v2698_v19 }
  0x57   :  { %4698 = vst [vmem:[#allocation29_spill] sm:$0xff] %v2813_v0  ;;  %v399_v6 = vcombine.high %v395_v63, %v395_v63  ;;  %v407_v40 = vrot.slane %v339_v51, %v2698_v19  ;;  %v411_v46 = vrot.slane %v347_v20, %v2698_v19  ;;  %v415_v59 = vrot.slane %v349_v49, %v2698_v19 }
  0x58   :  { %4699 = vst [vmem:[#allocation30_spill] sm:$0xff] %v2819_v3  ;;  %v419_v7 = vrot.slane %v332_v44, %v2698_v19  ;;  %v423_v55 = vrot.slane %v346_v52, %v2698_v19  ;;  %v427_v2 = vrot.slane %v348_v60, %v2698_v19  ;;  %v431_v42 = vrot.slane %v350_v61, %v2698_v19 }
  0x59   :  { %v435_v38 = vrot.slane %v374_v45, %v2698_v19  ;;  %v439_v41 = vrot.slane %v388_v62, %v2698_v19  ;;  %v443_v51 = vrot.slane %v396_v1, %v2698_v19  ;;  %v447_v20 = vrot.slane %v398_v4, %v2698_v19 }
  0x5a   :  { %v451_v49 = vrot.slane %v381_v56, %v2698_v19  ;;  %v455_v44 = vrot.slane %v395_v63, %v2698_v19  ;;  %v459_v0 = vrot.slane %v397_v58, %v2698_v19  ;;  %v463_v52 = vrot.slane %v399_v6, %v2698_v19 }
  0x5b   :  { %v480_v57 = vmul.f32 %v403_v39, %v74_v47  ;;  %v481_v60 = vmul.f32 %v403_v39, %v75_v54  ;;  %v482_v53 = vmul.f32 %v407_v40, %v74_v47  ;;  %v483_v61 = vmul.f32 %v407_v40, %v75_v54 }
  0x5c   :  { %v484_v50 = vmul.f32 %v411_v46, %v74_v47  ;;  %v485_v45 = vmul.f32 %v411_v46, %v75_v54  ;;  %v486_v48 = vmul.f32 %v415_v59, %v74_v47  ;;  %v487_v62 = vmul.f32 %v415_v59, %v75_v54 }
  0x5d   :  { %v488_v43 = vmul.f32 %v419_v7, %v74_v47  ;;  %v489_v1 = vmul.f32 %v419_v7, %v75_v54  ;;  %v490_v37 = vmul.f32 %v423_v55, %v74_v47  ;;  %v491_v4 = vmul.f32 %v423_v55, %v75_v54 }
  0x5e   :  { %v492_v26 = vmul.f32 %v427_v2, %v74_v47  ;;  %v493_v56 = vmul.f32 %v427_v2, %v75_v54  ;;  %v494_v3 = vmul.f32 %v431_v42, %v74_v47  ;;  %v495_v63 = vmul.f32 %v431_v42, %v75_v54 }
  0x5f   :  { %v496_v25 = vmul.f32 %v435_v38, %v74_v47  ;;  %v497_v58 = vmul.f32 %v435_v38, %v75_v54  ;;  %v498_v5 = vmul.f32 %v439_v41, %v74_v47  ;;  %v499_v6 = vmul.f32 %v439_v41, %v75_v54 }
  0x60   :  { %v500_v19 = vmul.f32 %v443_v51, %v74_v47  ;;  %v501_v39 = vmul.f32 %v443_v51, %v75_v54  ;;  %v502_v36 = vmul.f32 %v447_v20, %v74_v47  ;;  %v503_v40 = vmul.f32 %v447_v20, %v75_v54 }
  0x61   :  { %v504_v35 = vmul.f32 %v451_v49, %v74_v47  ;;  %v505_v46 = vmul.f32 %v451_v49, %v75_v54  ;;  %v506_v34 = vmul.f32 %v455_v44, %v74_v47  ;;  %v507_v59 = vmul.f32 %v455_v44, %v75_v54  ;;  %v4717_v49 = vld [vmem:[#allocation24_spill] sm:$0xff]  ;;  %v4719_v44 = vld [vmem:[#allocation25_spill] sm:$0xff] }
  0x62   :  { %v508_v33 = vmul.f32 %v459_v0, %v74_v47  ;;  %v509_v7 = vmul.f32 %v459_v0, %v75_v54  ;;  %v510_v32 = vmul.f32 %v463_v52, %v74_v47  ;;  %v511_v55 = vmul.f32 %v463_v52, %v75_v54  ;;  %v4715_v47 = vld [vmem:[#allocation23_spill] sm:$0xff] }
  0x63   :  { %v2838_v2 = vadd.f32 %v480_v57, %v2740_v8  ;;  %v2841_v42 = vadd.f32 %v481_v60, %v2742_v9  ;;  %v2844_v38 = vadd.f32 %v482_v53, %v2744_v10  ;;  %v2847_v41 = vadd.f32 %v483_v61, %v2746_v11  ;;  %v4713_v53 = vld [vmem:[#allocation30_spill] sm:$0xff] }
  0x64   :  { %v2850_v51 = vadd.f32 %v484_v50, %v2748_v12  ;;  %v2853_v20 = vadd.f32 %v485_v45, %v2750_v13  ;;  %v2856_v0 = vadd.f32 %v486_v48, %v2752_v14  ;;  %v2859_v8 = vadd.f32 %v487_v62, %v2754_v15  ;;  %v4721_v61 = vld [vmem:[#allocation26_spill] sm:$0xff] }
  0x65   :  { %v2862_v9 = vadd.f32 %v488_v43, %v2756_v16  ;;  %v2865_v10 = vadd.f32 %v489_v1, %v2758_v17  ;;  %v2868_v11 = vadd.f32 %v490_v37, %v2760_v18  ;;  %v2871_v12 = vadd.f32 %v491_v4, %v2762_v21 }
  0x66   :  { %v2874_v13 = vadd.f32 %v492_v26, %v2764_v22  ;;  %v2877_v14 = vadd.f32 %v493_v56, %v2766_v23  ;;  %v2880_v15 = vadd.f32 %v494_v3, %v2768_v24  ;;  %v2883_v16 = vadd.f32 %v495_v63, %v2770_v27  ;;  %v4700_v22 = vld [vmem:[#allocation18_spill] sm:$0xff]  ;;  %v4702_v24 = vld [vmem:[#allocation19_spill] sm:$0xff]  ;;  %v4704_v27 = vld [vmem:[#allocation20_spill] sm:$0xff] }
  0x67   :  { %v2886_v17 = vadd.f32 %v496_v25, %v2772_v28  ;;  %v2889_v18 = vadd.f32 %v497_v58, %v2774_v29  ;;  %v2892_v21 = vadd.f32 %v498_v5, %v2776_v30  ;;  %v2895_v26 = vadd.f32 %v499_v6, %v2778_v31  ;;  %v4706_v25 = vld [vmem:[#allocation21_spill] sm:$0xff]  ;;  %v4708_v29 = vld [vmem:[#allocation22_spill] sm:$0xff]  ;;  %v4710_v5 = vld [vmem:[#allocation12_spill] sm:$0xff] }
  0x68   :  { %v2898_v23 = vadd.f32 %v500_v19, %v4700_v22  ;;  %v2901_v37 = vadd.f32 %v501_v39, %v4702_v24  ;;  %v2904_v43 = vadd.f32 %v502_v36, %v4704_v27  ;;  %v2907_v28 = vadd.f32 %v503_v40, %v4706_v25  ;;  %v4711_v30 = vld [vmem:[#allocation14_spill] sm:$0xff]  ;;  %v4714_v3 = vld [vmem:[#allocation15_spill] sm:$0xff]  ;;  %v4725_v39 = vld [vmem:[#allocation28_spill] sm:$0xff] }
  0x69   :  { %v2910_v48 = vadd.f32 %v504_v35, %v4708_v29  ;;  %v4712_v31 = vcombine.high %v4711_v30, %v4711_v30  ;;  %v561_v19 = vcombine.high %v4713_v53, %v4713_v53  ;;  %v569_v57 = vrot.slane %v4713_v53, %v4710_v5  ;;  %v4723_v56 = vld [vmem:[#allocation27_spill] sm:$0xff] }
  0x6a   :  { %4701 = vst [vmem:[#allocation18_spill] sm:$0xff] %v2898_v23  ;;  %4703 = vst [vmem:[#allocation19_spill] sm:$0xff] %v2901_v37  ;;  %v595_v36 = vcombine.high %v4714_v3, %v4714_v3  ;;  %v2923_v54 = vadd.f32 %v505_v46, %v4715_v47  ;;  %v2926_v35 = vadd.f32 %v506_v34, %v4717_v49  ;;  %v4727_v46 = vld [vmem:[#allocation29_spill] sm:$0xff] }
  0x6b   :  { %4705 = vst [vmem:[#allocation20_spill] sm:$0xff] %v2904_v43  ;;  %4707 = vst [vmem:[#allocation21_spill] sm:$0xff] %v2907_v28  ;;  %v560_v50 = vrot.slane %v4712_v31, %v4710_v5  ;;  %v2929_v52 = vadd.f32 %v507_v59, %v4719_v44  ;;  %v602_v60 = vrot.slane %v4714_v3, %v4710_v5  ;;  %v4729_v31 = vld [vmem:[#allocation16_spill] sm:$0xff]  ;;  %v4732_v49 = vld [vmem:[#allocation13_spill] sm:$0xff] }
  0x6c   :  { %4709 = vst [vmem:[#allocation22_spill] sm:$0xff] %v2910_v48  ;;  %4716 = vst [vmem:[#allocation14_spill] sm:$0xff] %v2923_v54  ;;  %v2934_v45 = vadd.f32 %v508_v33, %v4721_v61  ;;  %v583_v4 = vrot.slane %v561_v19, %v4710_v5  ;;  %v2939_v63 = vadd.f32 %v509_v7, %v4723_v56 }
  0x6d   :  { %4718 = vst [vmem:[#allocation30_spill] sm:$0xff] %v2926_v35  ;;  %4720 = vst [vmem:[#allocation15_spill] sm:$0xff] %v2929_v52  ;;  %v562_v62 = vcombine.high %v560_v50, %v560_v50  ;;  %v576_v1 = vrot.slane %v560_v50, %v4710_v5  ;;  %v609_v34 = vrot.slane %v595_v36, %v4710_v5 }
  0x6e   :  { %4722 = vst [vmem:[#allocation23_spill] sm:$0xff] %v2934_v45  ;;  %4724 = vst [vmem:[#allocation24_spill] sm:$0xff] %v2939_v63  ;;  %v610_v58 = vcombine.high %v602_v60, %v602_v60  ;;  %v618_v6 = vrot.slane %v602_v60, %v4710_v5  ;;  %v2944_v40 = vadd.f32 %v510_v32, %v4725_v39  ;;  %v76_v39 = vld [vmem:[#allocation5 + $0x20] sm:$0xff] }
  0x6f   :  { %v2947_v59 = vadd.f32 %v511_v55, %v4727_v46  ;;  %v590_v33 = vrot.slane %v562_v62, %v4710_v5  ;;  %v591_v22 = vcombine.high %v569_v57, %v569_v57  ;;  %v593_v24 = vcombine.high %v583_v4, %v583_v4  ;;  %v77_v46 = vld [vmem:[#allocation5 + $0x28] sm:$0xff] }
  0x70   :  { %4726 = vst [vmem:[#allocation25_spill] sm:$0xff] %v2944_v40  ;;  %v611_v27 = vcombine.high %v609_v34, %v609_v34  ;;  %v625_v25 = vrot.slane %v609_v34, %v4710_v5  ;;  %v632_v7 = vrot.slane %v610_v58, %v4710_v5  ;;  %v592_v29 = vcombine.high %v576_v1, %v576_v1 }
  0x71   :  { %4728 = vst [vmem:[#allocation26_spill] sm:$0xff] %v2947_v59  ;;  %v594_v30 = vcombine.high %v590_v33, %v590_v33  ;;  %v2956_v32 = vrot.slane %v4729_v31, %v4710_v5  ;;  %v640_v53 = vcombine.high %v618_v6, %v618_v6  ;;  %v647_v44 = vrot.slane %v569_v57, %v4732_v49 }
  0x72   :  { %v639_v55 = vrot.slane %v611_v27, %v4710_v5  ;;  %v642_v19 = vcombine.high %v632_v7, %v632_v7  ;;  %v641_v47 = vcombine.high %v625_v25, %v625_v25  ;;  %v651_v60 = vrot.slane %v583_v4, %v4732_v49 }
  0x73   :  { %4730 = vst [vmem:[#allocation27_spill] sm:$0xff] %v2956_v32  ;;  %v655_v61 = vrot.slane %v591_v22, %v4732_v49  ;;  %v659_v56 = vrot.slane %v593_v24, %v4732_v49  ;;  %v663_v34 = vrot.slane %v576_v1, %v4732_v49  ;;  %v667_v58 = vrot.slane %v590_v33, %v4732_v49 }
  0x74   :  { %v643_v62 = vcombine.high %v639_v55, %v639_v55  ;;  %v671_v27 = vrot.slane %v592_v29, %v4732_v49  ;;  %v675_v36 = vrot.slane %v594_v30, %v4732_v49  ;;  %v679_v50 = vrot.slane %v618_v6, %v4732_v49 }
  0x75   :  { %v683_v57 = vrot.slane %v632_v7, %v4732_v49  ;;  %v687_v4 = vrot.slane %v640_v53, %v4732_v49  ;;  %v691_v22 = vrot.slane %v642_v19, %v4732_v49  ;;  %v695_v24 = vrot.slane %v625_v25, %v4732_v49 }
  0x76   :  { %v699_v1 = vrot.slane %v639_v55, %v4732_v49  ;;  %v703_v33 = vrot.slane %v641_v47, %v4732_v49  ;;  %v707_v59 = vrot.slane %v643_v62, %v4732_v49  ;;  %v724_v40 = vmul.f32 %v647_v44, %v76_v39 }
  0x77   :  { %v725_v29 = vmul.f32 %v647_v44, %v77_v46  ;;  %v726_v63 = vmul.f32 %v651_v60, %v76_v39  ;;  %v727_v30 = vmul.f32 %v651_v60, %v77_v46  ;;  %v728_v45 = vmul.f32 %v655_v61, %v76_v39 }
  0x78   :  { %v729_v6 = vmul.f32 %v655_v61, %v77_v46  ;;  %v730_v52 = vmul.f32 %v659_v56, %v76_v39  ;;  %v731_v7 = vmul.f32 %v659_v56, %v77_v46  ;;  %v732_v35 = vmul.f32 %v663_v34, %v76_v39 }
  0x79   :  { %v733_v53 = vmul.f32 %v663_v34, %v77_v46  ;;  %v734_v54 = vmul.f32 %v667_v58, %v76_v39  ;;  %v735_v19 = vmul.f32 %v667_v58, %v77_v46  ;;  %v736_v3 = vmul.f32 %v671_v27, %v76_v39 }
  0x7a   :  { %v737_v25 = vmul.f32 %v671_v27, %v77_v46  ;;  %v738_v32 = vmul.f32 %v675_v36, %v76_v39  ;;  %v739_v55 = vmul.f32 %v675_v36, %v77_v46  ;;  %v740_v31 = vmul.f32 %v679_v50, %v76_v39 }
  0x7b   :  { %v741_v47 = vmul.f32 %v679_v50, %v77_v46  ;;  %v742_v5 = vmul.f32 %v683_v57, %v76_v39  ;;  %v743_v62 = vmul.f32 %v683_v57, %v77_v46  ;;  %v744_v49 = vmul.f32 %v687_v4, %v76_v39 }
  0x7c   :  { %v745_v44 = vmul.f32 %v687_v4, %v77_v46  ;;  %v746_v48 = vmul.f32 %v691_v22, %v76_v39  ;;  %v747_v60 = vmul.f32 %v691_v22, %v77_v46  ;;  %v748_v28 = vmul.f32 %v695_v24, %v76_v39 }
  0x7d   :  { %v749_v61 = vmul.f32 %v695_v24, %v77_v46  ;;  %v750_v43 = vmul.f32 %v699_v1, %v76_v39  ;;  %v751_v56 = vmul.f32 %v699_v1, %v77_v46  ;;  %v752_v37 = vmul.f32 %v703_v33, %v76_v39  ;;  %v4749_v1 = vld [vmem:[#allocation30_spill] sm:$0xff] }
  0x7e   :  { %v753_v34 = vmul.f32 %v703_v33, %v77_v46  ;;  %v754_v23 = vmul.f32 %v707_v59, %v76_v39  ;;  %v755_v58 = vmul.f32 %v707_v59, %v77_v46  ;;  %v2978_v27 = vadd.f32 %v724_v40, %v2838_v2  ;;  %v4747_v46 = vld [vmem:[#allocation14_spill] sm:$0xff] }
  0x7f   :  { %v2981_v36 = vadd.f32 %v725_v29, %v2841_v42  ;;  %v2984_v50 = vadd.f32 %v726_v63, %v2844_v38  ;;  %v2987_v57 = vadd.f32 %v727_v30, %v2847_v41  ;;  %v2990_v4 = vadd.f32 %v728_v45, %v2850_v51 }
  0x80   :  { %v2993_v22 = vadd.f32 %v729_v6, %v2853_v20  ;;  %v2996_v59 = vadd.f32 %v730_v52, %v2856_v0  ;;  %v2999_v2 = vadd.f32 %v731_v7, %v2859_v8  ;;  %v3002_v42 = vadd.f32 %v732_v35, %v2862_v9  ;;  %v4751_v6 = vld [vmem:[#allocation15_spill] sm:$0xff] }
  0x81   :  { %v3005_v38 = vadd.f32 %v733_v53, %v2865_v10  ;;  %v3008_v41 = vadd.f32 %v734_v54, %v2868_v11  ;;  %v3011_v51 = vadd.f32 %v735_v19, %v2871_v12  ;;  %v3014_v20 = vadd.f32 %v736_v3, %v2874_v13 }
  0x82   :  { %v3017_v0 = vadd.f32 %v737_v25, %v2877_v14  ;;  %v3020_v8 = vadd.f32 %v738_v32, %v2880_v15  ;;  %v3023_v9 = vadd.f32 %v739_v55, %v2883_v16  ;;  %v3026_v10 = vadd.f32 %v740_v31, %v2886_v17  ;;  %v4733_v14 = vld [vmem:[#allocation18_spill] sm:$0xff]  ;;  %v4734_v15 = vld [vmem:[#allocation19_spill] sm:$0xff]  ;;  %v4735_v16 = vld [vmem:[#allocation20_spill] sm:$0xff] }
  0x83   :  { %v3029_v11 = vadd.f32 %v741_v47, %v2889_v18  ;;  %v3032_v12 = vadd.f32 %v742_v5, %v2892_v21  ;;  %v3035_v13 = vadd.f32 %v743_v62, %v2895_v26  ;;  %v3038_v54 = vadd.f32 %v744_v49, %v4733_v14  ;;  %v4737_v17 = vld [vmem:[#allocation21_spill] sm:$0xff]  ;;  %v4739_v18 = vld [vmem:[#allocation22_spill] sm:$0xff]  ;;  %v4741_v21 = vld [vmem:[#allocation12_spill] sm:$0xff] }
  0x84   :  { %v3041_v35 = vadd.f32 %v745_v44, %v4734_v15  ;;  %v3044_v52 = vadd.f32 %v746_v48, %v4735_v16  ;;  %v3047_v45 = vadd.f32 %v747_v60, %v4737_v17  ;;  %v3050_v63 = vadd.f32 %v748_v28, %v4739_v18  ;;  %v4742_v5 = vld [vmem:[#allocation16_spill] sm:$0xff]  ;;  %v4744_v31 = vld [vmem:[#allocation27_spill] sm:$0xff]  ;;  %v4745_v48 = vld [vmem:[#allocation17_spill] sm:$0xff] }
  0x85   :  { %v4743_v26 = vcombine.high %v4742_v5, %v4742_v5  ;;  %v805_v32 = vcombine.high %v4744_v31, %v4744_v31  ;;  %v813_v3 = vrot.slane %v4744_v31, %v4741_v21  ;;  %v846_v49 = vrot.slane %v4745_v48, %v4741_v21  ;;  %v4753_v15 = vld [vmem:[#allocation23_spill] sm:$0xff]  ;;  %v4755_v16 = vld [vmem:[#allocation24_spill] sm:$0xff]  ;;  %v4759_v31 = vld [vmem:[#allocation26_spill] sm:$0xff] }
  0x86   :  { %4736 = vst [vmem:[#allocation28_spill] sm:$0xff] %v3044_v52  ;;  %4738 = vst [vmem:[#allocation29_spill] sm:$0xff] %v3047_v45  ;;  %v4746_v39 = vcombine.high %v4745_v48, %v4745_v48  ;;  %v3067_v24 = vadd.f32 %v749_v61, %v4747_v46  ;;  %v3070_v33 = vadd.f32 %v750_v43, %v4749_v1  ;;  %v78_v1 = vld [vmem:[#allocation5 + $0x30] sm:$0xff] }
  0x87   :  { %4740 = vst [vmem:[#allocation18_spill] sm:$0xff] %v3050_v63  ;;  %v804_v40 = vrot.slane %v4743_v26, %v4741_v21  ;;  %v3074_v7 = vadd.f32 %v751_v56, %v4751_v6  ;;  %v827_v53 = vrot.slane %v805_v32, %v4741_v21  ;;  %v854_v19 = vcombine.high %v846_v49, %v846_v49  ;;  %v4757_v26 = vld [vmem:[#allocation25_spill] sm:$0xff] }
  0x88   :  { %v853_v28 = vrot.slane %v4746_v39, %v4741_v21  ;;  %4748 = vst [vmem:[#allocation19_spill] sm:$0xff] %v3067_v24  ;;  %4750 = vst [vmem:[#allocation20_spill] sm:$0xff] %v3070_v33  ;;  %v835_v47 = vcombine.high %v813_v3, %v813_v3  ;;  %v862_v62 = vrot.slane %v846_v49, %v4741_v21 }
  0x89   :  { %v806_v29 = vcombine.high %v804_v40, %v804_v40  ;;  %v820_v30 = vrot.slane %v804_v40, %v4741_v21  ;;  %4752 = vst [vmem:[#allocation21_spill] sm:$0xff] %v3074_v7  ;;  %v837_v43 = vcombine.high %v827_v53, %v827_v53  ;;  %v876_v61 = vrot.slane %v854_v19, %v4741_v21 }
  0x8a   :  { %v855_v25 = vcombine.high %v853_v28, %v853_v28  ;;  %v869_v44 = vrot.slane %v853_v28, %v4741_v21  ;;  %v3083_v56 = vadd.f32 %v752_v37, %v4753_v15  ;;  %v3086_v17 = vadd.f32 %v753_v34, %v4755_v16  ;;  %v4761_v28 = vld [vmem:[#allocation13_spill] sm:$0xff] }
  0x8b   :  { %v834_v55 = vrot.slane %v806_v29, %v4741_v21  ;;  %v836_v60 = vcombine.high %v820_v30, %v820_v30  ;;  %v884_v5 = vcombine.high %v862_v62, %v862_v62  ;;  %v3089_v40 = vadd.f32 %v754_v23, %v4757_v26 }
  0x8c   :  { %v883_v14 = vrot.slane %v855_v25, %v4741_v21  ;;  %4754 = vst [vmem:[#allocation22_spill] sm:$0xff] %v3083_v56  ;;  %4756 = vst [vmem:[#allocation12_spill] sm:$0xff] %v3086_v17  ;;  %v3092_v32 = vadd.f32 %v755_v58, %v4759_v31  ;;  %v885_v48 = vcombine.high %v869_v44, %v869_v44  ;;  %v79_v58 = vld [vmem:[#allocation5 + $0x38] sm:$0xff] }
  0x8d   :  { %v838_v18 = vcombine.high %v834_v55, %v834_v55  ;;  %4758 = vst [vmem:[#allocation16_spill] sm:$0xff] %v3089_v40  ;;  %v886_v49 = vcombine.high %v876_v61, %v876_v61  ;;  %v891_v46 = vrot.slane %v813_v3, %v4761_v28  ;;  %v895_v21 = vrot.slane %v827_v53, %v4761_v28 }
  0x8e   :  { %4760 = vst [vmem:[#allocation27_spill] sm:$0xff] %v3092_v32  ;;  %v887_v39 = vcombine.high %v883_v14, %v883_v14  ;;  %v899_v37 = vrot.slane %v835_v47, %v4761_v28  ;;  %v903_v34 = vrot.slane %v837_v43, %v4761_v28  ;;  %v907_v29 = vrot.slane %v820_v30, %v4761_v28 }
  0x8f   :  { %v911_v23 = vrot.slane %v834_v55, %v4761_v28  ;;  %v915_v6 = vrot.slane %v836_v60, %v4761_v28  ;;  %v919_v19 = vrot.slane %v838_v18, %v4761_v28  ;;  %v923_v25 = vrot.slane %v862_v62, %v4761_v28 }
  0x90   :  { %v927_v3 = vrot.slane %v876_v61, %v4761_v28  ;;  %v931_v53 = vrot.slane %v884_v5, %v4761_v28  ;;  %v935_v47 = vrot.slane %v886_v49, %v4761_v28  ;;  %v939_v15 = vrot.slane %v869_v44, %v4761_v28 }
  0x91   :  { %v943_v43 = vrot.slane %v883_v14, %v4761_v28  ;;  %v947_v30 = vrot.slane %v885_v48, %v4761_v28  ;;  %v951_v55 = vrot.slane %v887_v39, %v4761_v28  ;;  %v968_v60 = vmul.f32 %v891_v46, %v78_v1 }
  0x92   :  { %v969_v16 = vmul.f32 %v891_v46, %v79_v58  ;;  %v970_v26 = vmul.f32 %v895_v21, %v78_v1  ;;  %v971_v18 = vmul.f32 %v895_v21, %v79_v58  ;;  %v972_v31 = vmul.f32 %v899_v37, %v78_v1 }
  0x93   :  { %v973_v62 = vmul.f32 %v899_v37, %v79_v58  ;;  %v974_v32 = vmul.f32 %v903_v34, %v78_v1  ;;  %v975_v61 = vmul.f32 %v903_v34, %v79_v58  ;;  %v976_v40 = vmul.f32 %v907_v29, %v78_v1 }
  0x94   :  { %v977_v5 = vmul.f32 %v907_v29, %v79_v58  ;;  %v978_v17 = vmul.f32 %v911_v23, %v78_v1  ;;  %v979_v49 = vmul.f32 %v911_v23, %v79_v58  ;;  %v980_v56 = vmul.f32 %v915_v6, %v78_v1 }
  0x95   :  { %v981_v44 = vmul.f32 %v915_v6, %v79_v58  ;;  %v982_v7 = vmul.f32 %v919_v19, %v78_v1  ;;  %v983_v14 = vmul.f32 %v919_v19, %v79_v58  ;;  %v984_v33 = vmul.f32 %v923_v25, %v78_v1 }
  0x96   :  { %v985_v48 = vmul.f32 %v923_v25, %v79_v58  ;;  %v986_v24 = vmul.f32 %v927_v3, %v78_v1  ;;  %v987_v39 = vmul.f32 %v927_v3, %v79_v58  ;;  %v988_v28 = vmul.f32 %v931_v53, %v78_v1 }
  0x97   :  { %v989_v46 = vmul.f32 %v931_v53, %v79_v58  ;;  %v990_v21 = vmul.f32 %v935_v47, %v78_v1  ;;  %v991_v63 = vmul.f32 %v935_v47, %v79_v58  ;;  %v992_v37 = vmul.f32 %v939_v15, %v78_v1 }
  0x98   :  { %v993_v45 = vmul.f32 %v939_v15, %v79_v58  ;;  %v994_v34 = vmul.f32 %v943_v43, %v78_v1  ;;  %v3110_v52 = vmul.f32 %v943_v43, %v79_v58  ;;  %v3112_v29 = vmul.f32 %v947_v30, %v78_v1 }
  0x99   :  { %v3114_v23 = vmul.f32 %v947_v30, %v79_v58  ;;  %v3116_v6 = vmul.f32 %v951_v55, %v78_v1  ;;  %v3118_v19 = vmul.f32 %v951_v55, %v79_v58  ;;  %v3121_v25 = vadd.f32 %v968_v60, %v2978_v27 }
  0x9a   :  { %v3124_v3 = vadd.f32 %v969_v16, %v2981_v36  ;;  %v3127_v53 = vadd.f32 %v970_v26, %v2984_v50  ;;  %v3130_v47 = vadd.f32 %v971_v18, %v2987_v57  ;;  %v3133_v15 = vadd.f32 %v972_v31, %v2990_v4 }
  0x9b   :  { %v3136_v1 = vadd.f32 %v973_v62, %v2993_v22  ;;  %v3139_v58 = vadd.f32 %v974_v32, %v2996_v59  ;;  %v3142_v27 = vadd.f32 %v975_v61, %v2999_v2  ;;  %v3145_v36 = vadd.f32 %v976_v40, %v3002_v42 }
  0x9c   :  { %v3148_v50 = vadd.f32 %v977_v5, %v3005_v38  ;;  %v3151_v57 = vadd.f32 %v978_v17, %v3008_v41  ;;  %v3154_v4 = vadd.f32 %v979_v49, %v3011_v51  ;;  %v3157_v22 = vadd.f32 %v980_v56, %v3014_v20 }
  0x9d   :  { %v3160_v59 = vadd.f32 %v981_v44, %v3017_v0  ;;  %v3163_v2 = vadd.f32 %v982_v7, %v3020_v8  ;;  %v3166_v42 = vadd.f32 %v983_v14, %v3023_v9  ;;  %v3169_v38 = vadd.f32 %v984_v33, %v3026_v10  ;;  %v4762_v9 = vld [vmem:[#allocation28_spill] sm:$0xff]  ;;  %v4764_v10 = vld [vmem:[#allocation29_spill] sm:$0xff] }
  0x9e   :  { %v3172_v41 = vadd.f32 %v985_v48, %v3029_v11  ;;  %v3175_v51 = vadd.f32 %v986_v24, %v3032_v12  ;;  %v3178_v20 = vadd.f32 %v987_v39, %v3035_v13  ;;  %v3181_v0 = vadd.f32 %v988_v28, %v3038_v54  ;;  %v4766_v11 = vld [vmem:[#allocation18_spill] sm:$0xff]  ;;  %v4768_v12 = vld [vmem:[#allocation19_spill] sm:$0xff]  ;;  %v4770_v13 = vld [vmem:[#allocation20_spill] sm:$0xff] }
  0x9f   :  { %v3184_v8 = vadd.f32 %v989_v46, %v3041_v35  ;;  %v3187_v7 = vadd.f32 %v990_v21, %v4762_v9  ;;  %v3190_v33 = vadd.f32 %v991_v63, %v4764_v10  ;;  %v3193_v56 = vadd.f32 %v992_v37, %v4766_v11 }
  0xa0   :  { %v3196_v24 = vadd.f32 %v993_v45, %v4768_v12  ;;  %v3199_v17 = vadd.f32 %v994_v34, %v4770_v13  ;;  %v1033_v54 = vsel %vm1032_vm0, %v3121_v25, -inf  ;;  %v1034_v35 = vsel %vm1032_vm0, %v3124_v3, -inf }
  0xa1   :  { %4763 = vst [vmem:[#allocation17_spill] sm:$0xff] %v3187_v7  ;;  %4765 = vst [vmem:[#allocation14_spill] sm:$0xff] %v3190_v33  ;;  %v1042_v40 = vsel %vm1032_vm0, %v3127_v53, -inf  ;;  %v1043_v63 = vsel %vm1032_vm0, %v3130_v47, -inf  ;;  %v1035_v32 = vmax.f32 %v1033_v54, %v1034_v35  ;;  %v1051_v45 = vsel %vm1032_vm0, %v3133_v15, -inf }
  0xa2   :  { %4767 = vst [vmem:[#allocation30_spill] sm:$0xff] %v3193_v56  ;;  %4769 = vst [vmem:[#allocation15_spill] sm:$0xff] %v3196_v24  ;;  %v1044_v43 = vmax.f32 %v1042_v40, %v1043_v63  ;;  %v1052_v30 = vsel %vm1032_vm0, %v3136_v1, -inf  ;;  %v1060_v60 = vsel %vm1032_vm0, %v3139_v58, -inf  ;;  %v1061_v16 = vsel %vm1032_vm0, %v3142_v27, -inf }
  0xa3   :  { %4771 = vst [vmem:[#allocation23_spill] sm:$0xff] %v3199_v17  ;;  %v1053_v55 = vmax.f32 %v1051_v45, %v1052_v30  ;;  %v1069_v26 = vsel %vm1032_vm0, %v3145_v36, -inf  ;;  %v1036_v18 = vrot.slane %v1035_v32, 4  ;;  %v1062_v62 = vmax.f32 %v1060_v60, %v1061_v16 }
  0xa4   :  { %v1045_v31 = vrot.slane %v1044_v43, 4  ;;  %v1070_v61 = vsel %vm1032_vm0, %v3148_v50, -inf  ;;  %v1078_v44 = vsel %vm1032_vm0, %v3151_v57, -inf  ;;  %v1079_v14 = vsel %vm1032_vm0, %v3154_v4, -inf }
  0xa5   :  { %v1054_v5 = vrot.slane %v1053_v55, 4  ;;  %v1071_v49 = vmax.f32 %v1069_v26, %v1070_v61  ;;  %v1037_v48 = vmax.f32 %v1035_v32, %v1036_v18  ;;  %v1063_v28 = vrot.slane %v1062_v62, 4 }
  0xa6   :  { %v1046_v39 = vmax.f32 %v1044_v43, %v1045_v31  ;;  %v1080_v46 = vmax.f32 %v1078_v44, %v1079_v14  ;;  %v1087_v34 = vsel %vm1032_vm0, %v3157_v22, -inf  ;;  %v1088_v9 = vsel %vm1032_vm0, %v3160_v59, -inf }
  0xa7   :  { %v1055_v21 = vmax.f32 %v1053_v55, %v1054_v5  ;;  %v1072_v37 = vrot.slane %v1071_v49, 4  ;;  %v1038_v10 = vrot.slane %v1037_v48, 2  ;;  %v1064_v12 = vmax.f32 %v1062_v62, %v1063_v28  ;;  %v4772_v5 = vld [vmem:[#allocation21_spill] sm:$0xff] }
  0xa8   :  { %v1047_v11 = vrot.slane %v1046_v39, 2  ;;  %v1081_v13 = vrot.slane %v1080_v46, 4  ;;  %v1089_v40 = vmax.f32 %v1087_v34, %v1088_v9  ;;  %v1096_v63 = vsel %vm1032_vm0, %v3163_v2, -inf  ;;  %v4777_v9 = vld [vmem:[#allocation16_spill] sm:$0xff] }
  0xa9   :  { %v1056_v54 = vrot.slane %v1055_v21, 2  ;;  %v1073_v35 = vmax.f32 %v1071_v49, %v1072_v37  ;;  %v1039_v32 = vmax.f32 %v1037_v48, %v1038_v10  ;;  %v1065_v45 = vrot.slane %v1064_v12, 2 }
  0xaa   :  { %v1048_v43 = vmax.f32 %v1046_v39, %v1047_v11  ;;  %v1082_v30 = vmax.f32 %v1080_v46, %v1081_v13  ;;  %v1090_v16 = vrot.slane %v1089_v40, 4  ;;  %v1097_v26 = vsel %vm1032_vm0, %v3166_v42, -inf  ;;  %v4774_v39 = vld [vmem:[#allocation22_spill] sm:$0xff]  ;;  %v4776_v46 = vld [vmem:[#allocation12_spill] sm:$0xff] }
  0xab   :  { %v1057_v55 = vmax.f32 %v1055_v21, %v1056_v54  ;;  %v1074_v60 = vrot.slane %v1073_v35, 2  ;;  %v1040_v18 = vrot.slane %v1039_v32, 1  ;;  %v1066_v62 = vmax.f32 %v1064_v12, %v1065_v45 }
  0xac   :  { %v1049_v31 = vrot.slane %v1048_v43, 1  ;;  %v1083_v61 = vrot.slane %v1082_v30, 2  ;;  %v3235_v49 = vadd.f32 %v3110_v52, %v4772_v5  ;;  %v1091_v14 = vmax.f32 %v1089_v40, %v1090_v16  ;;  %v4779_v52 = vld [vmem:[#allocation27_spill] sm:$0xff] }
  0xad   :  { %v1058_v44 = vrot.slane %v1057_v55, 1  ;;  %v1098_v48 = vmax.f32 %v1096_v63, %v1097_v26  ;;  %v3239_v28 = vadd.f32 %v3112_v29, %v4774_v39  ;;  %v3243_v21 = vadd.f32 %v3114_v23, %v4776_v46 }
  0xae   :  { %4773 = vst [vmem:[#allocation24_spill] sm:$0xff] %v3235_v49  ;;  %v1067_v37 = vrot.slane %v1066_v62, 1  ;;  %v3245_v34 = vmax.f32 %v1073_v35, %v1074_v60  ;;  %v3249_v10 = vadd.f32 %v3116_v6, %v4777_v9  ;;  %v3253_v11 = vadd.f32 %v3118_v19, %v4779_v52 }
  0xaf   :  { %4775 = vst [vmem:[#allocation25_spill] sm:$0xff] %v3239_v28  ;;  %v3255_v12 = vmax.f32 %v1039_v32, %v1040_v18  ;;  %v1099_v13 = vrot.slane %v1098_v48, 4  ;;  %v3257_v29 = vmax.f32 %v1048_v43, %v1049_v31  ;;  %v3259_v54 = vmax.f32 %v1082_v30, %v1083_v61 }
  0xb0   :  { %4778 = vst [vmem:[#allocation26_spill] sm:$0xff] %v3249_v10  ;;  %v1105_v23 = vsel %vm1032_vm0, %v3169_v38, -inf  ;;  %v1106_v35 = vsel %vm1032_vm0, %v3172_v41, -inf  ;;  %v3265_v40 = vmax.f32 %v1057_v55, %v1058_v44  ;;  %v1092_v6 = vrot.slane %v1091_v14, 2 }
  0xb1   :  { %v1100_v63 = vmax.f32 %v1098_v48, %v1099_v13  ;;  %v1107_v45 = vmax.f32 %v1105_v23, %v1106_v35  ;;  %v3267_v19 = vmax.f32 %v1066_v62, %v1067_v37  ;;  %v1076_v32 = vrot.slane %v3245_v34, 1 }
  0xb2   :  { %v1114_v43 = vsel %vm1032_vm0, %v3175_v51, -inf  ;;  %v1115_v30 = vsel %vm1032_vm0, %v3178_v20, -inf  ;;  %v1123_v55 = vsel %vm1032_vm0, %v3181_v0, -inf  ;;  %v1124_v18 = vsel %vm1032_vm0, %v3184_v8, -inf }
  0xb3   :  { %v1101_v60 = vrot.slane %v1100_v63, 2  ;;  %v1108_v16 = vrot.slane %v1107_v45, 4  ;;  %v1116_v26 = vmax.f32 %v1114_v43, %v1115_v30  ;;  %v1132_v31 = vsel %vm1032_vm0, %v3187_v7, -inf }
  0xb4   :  { %v1133_v62 = vsel %vm1032_vm0, %v3190_v33, -inf  ;;  %v1141_v61 = vsel %vm1032_vm0, %v3193_v56, -inf  ;;  %v1085_v5 = vrot.slane %v3259_v54, 1  ;;  %v1093_v44 = vmax.f32 %v1091_v14, %v1092_v6 }
  0xb5   :  { %v1109_v48 = vmax.f32 %v1107_v45, %v1108_v16  ;;  %v1117_v39 = vrot.slane %v1116_v26, 4  ;;  %v1102_v46 = vmax.f32 %v1100_v63, %v1101_v60  ;;  %v1125_v37 = vmax.f32 %v1123_v55, %v1124_v18 }
  0xb6   :  { %v1134_v9 = vmax.f32 %v1132_v31, %v1133_v62  ;;  %v1142_v52 = vsel %vm1032_vm0, %v3196_v24, -inf  ;;  %v1150_v43 = vsel %vm1032_vm0, %v3199_v17, -inf  ;;  %v1151_v56 = vsel %vm1032_vm0, %v3235_v49, -inf }
  0xb7   :  { %v1110_v13 = vrot.slane %v1109_v48, 2  ;;  %v1118_v23 = vmax.f32 %v1116_v26, %v1117_v39  ;;  %v1143_v35 = vmax.f32 %v1141_v61, %v1142_v52  ;;  %v1126_v30 = vrot.slane %v1125_v37, 4 }
  0xb8   :  { %v1135_v33 = vrot.slane %v1134_v9, 4  ;;  %v1159_v14 = vsel %vm1032_vm0, %v3239_v28, -inf  ;;  %v1094_v6 = vrot.slane %v1093_v44, 1  ;;  %v1152_v18 = vmax.f32 %v1150_v43, %v1151_v56 }
  0xb9   :  { %v1111_v63 = vmax.f32 %v1109_v48, %v1110_v13  ;;  %v1119_v45 = vrot.slane %v1118_v23, 2  ;;  %v1144_v60 = vrot.slane %v1143_v35, 4  ;;  %v1127_v16 = vmax.f32 %v1125_v37, %v1126_v30 }
  0xba   :  { %v1136_v55 = vmax.f32 %v1134_v9, %v1135_v33  ;;  %v1160_v26 = vsel %vm1032_vm0, %v3243_v21, -inf  ;;  %v1103_v31 = vrot.slane %v1102_v46, 1  ;;  %v1153_v49 = vrot.slane %v1152_v18, 4 }
  0xbb   :  { %v1120_v62 = vmax.f32 %v1118_v23, %v1119_v45  ;;  %v1145_v61 = vmax.f32 %v1143_v35, %v1144_v60  ;;  %v1161_v39 = vmax.f32 %v1159_v14, %v1160_v26  ;;  %v1128_v52 = vrot.slane %v1127_v16, 2 }
  0xbc   :  { %v1137_v17 = vrot.slane %v1136_v55, 2  ;;  %v1168_v28 = vsel %vm1032_vm0, %v3249_v10, -inf  ;;  %v1112_v24 = vrot.slane %v1111_v63, 1  ;;  %v1154_v56 = vmax.f32 %v1152_v18, %v1153_v49 }
  0xbd   :  { %v1121_v48 = vrot.slane %v1120_v62, 1  ;;  %v1146_v13 = vrot.slane %v1145_v61, 2  ;;  %v1162_v7 = vrot.slane %v1161_v39, 4  ;;  %v1129_v37 = vmax.f32 %v1127_v16, %v1128_v52 }
  0xbe   :  { %v1138_v33 = vmax.f32 %v1136_v55, %v1137_v17  ;;  %v1169_v9 = vsel %vm1032_vm0, %v3253_v11, -inf  ;;  %v3300_v23 = vmax.f32 %v3245_v34, %v1076_v32  ;;  %v3303_v14 = vmax.f32 %v3259_v54, %v1085_v5 }
  0xbf   :  { %v1147_v35 = vmax.f32 %v1145_v61, %v1146_v13  ;;  %v1163_v43 = vmax.f32 %v1161_v39, %v1162_v7  ;;  %v1170_v30 = vmax.f32 %v1168_v28, %v1169_v9  ;;  %v1130_v45 = vrot.slane %v1129_v37, 1 }
  0xc0   :  { %v1139_v60 = vrot.slane %v1138_v33, 1  ;;  %v1155_v26 = vrot.slane %v1154_v56, 2  ;;  %v3305_v10 = vmax.f32 %v1093_v44, %v1094_v6  ;;  %v3307_v55 = vmax.f32 %v1102_v46, %v1103_v31 }
  0xc1   :  { %v1148_v16 = vrot.slane %v1147_v35, 1  ;;  %v1164_v17 = vrot.slane %v1163_v43, 2  ;;  %v1171_v49 = vrot.slane %v1170_v30, 4  ;;  %v3309_v18 = vmax.f32 %v1111_v63, %v1112_v24 }
  0xc2   :  { %v3311_v34 = vmax.f32 %v1120_v62, %v1121_v48  ;;  %v1156_v32 = vmax.f32 %v1154_v56, %v1155_v26  ;;  %v1177_v54 = vsub.f32 %v3121_v25, %v3255_v12  ;;  %v1178_v5 = vsub.f32 %v3124_v3, %v3255_v12 }
  0xc3   :  { %v1165_v7 = vmax.f32 %v1163_v43, %v1164_v17  ;;  %v1172_v28 = vmax.f32 %v1170_v30, %v1171_v49  ;;  %v3317_v44 = vmax.f32 %v1129_v37, %v1130_v45  ;;  %v3319_v6 = vmax.f32 %v1138_v33, %v1139_v60 }
  0xc4   :  { %v1157_v61 = vrot.slane %v1156_v32, 1  ;;  %v1179_v24 = vsub.f32 %v3127_v53, %v3257_v29  ;;  %v3323_v46 = vmax.f32 %v1147_v35, %v1148_v16  ;;  %v1180_v62 = vsub.f32 %v3130_v47, %v3257_v29  ;;  %v4787_v16 = vld [vmem:[#allocation26_spill] sm:$0xff] }
  0xc5   :  { %v1166_v63 = vrot.slane %v1165_v7, 1  ;;  %v1173_v31 = vrot.slane %v1172_v28, 2  ;;  %v1181_v25 = vsub.f32 %v3133_v15, %v3265_v40  ;;  %v1182_v3 = vsub.f32 %v3136_v1, %v3265_v40 }
  0xc6   :  { %v1183_v12 = vsub.f32 %v3139_v58, %v3267_v19  ;;  %v1184_v39 = vsub.f32 %v3142_v27, %v3267_v19  ;;  %v3335_v53 = vmax.f32 %v1156_v32, %v1157_v61  ;;  %v1185_v48 = vsub.f32 %v3145_v36, %v3300_v23 }
  0xc7   :  { %v1174_v52 = vmax.f32 %v1172_v28, %v1173_v31  ;;  %v1186_v47 = vsub.f32 %v3148_v50, %v3300_v23  ;;  %v3341_v29 = vmax.f32 %v1165_v7, %v1166_v63  ;;  %v1187_v15 = vsub.f32 %v3151_v57, %v3303_v14  ;;  %v4784_v23 = vld [vmem:[#allocation23_spill] sm:$0xff] }
  0xc8   :  { %v1188_v1 = vsub.f32 %v3154_v4, %v3303_v14  ;;  %v1189_v58 = vsub.f32 %v3157_v22, %v3305_v10  ;;  %v1190_v40 = vsub.f32 %v3160_v59, %v3305_v10  ;;  %v1191_v36 = vsub.f32 %v3163_v2, %v3307_v55  ;;  %v4786_v14 = vld [vmem:[#allocation25_spill] sm:$0xff] }
  0xc9   :  { %v1175_v27 = vrot.slane %v1174_v52, 1  ;;  %v1192_v50 = vsub.f32 %v3166_v42, %v3307_v55  ;;  %v1193_v19 = vsub.f32 %v3169_v38, %v3309_v18  ;;  %v1194_v57 = vsub.f32 %v3172_v41, %v3309_v18  ;;  %v4780_v42 = vld [vmem:[#allocation17_spill] sm:$0xff]  ;;  %v4781_v38 = vld [vmem:[#allocation14_spill] sm:$0xff] }
  0xca   :  { %v1195_v4 = vsub.f32 %v3175_v51, %v3311_v34  ;;  %v1196_v22 = vsub.f32 %v3178_v20, %v3311_v34  ;;  %v1197_v59 = vsub.f32 %v3181_v0, %v3317_v44  ;;  %v1198_v2 = vsub.f32 %v3184_v8, %v3317_v44  ;;  %v4782_v41 = vld [vmem:[#allocation30_spill] sm:$0xff]  ;;  %v4783_v20 = vld [vmem:[#allocation15_spill] sm:$0xff]  ;;  %v4785_v8 = vld [vmem:[#allocation24_spill] sm:$0xff] }
  0xcb   :  { %v1176_v13 = vmax.f32 %v1174_v52, %v1175_v27  ;;  %v1199_v10 = vsub.f32 %v4780_v42, %v3319_v6  ;;  %v1200_v37 = vsub.f32 %v4781_v38, %v3319_v6  ;;  %v1201_v33 = vsub.f32 %v4782_v41, %v3323_v46 }
  0xcc   :  { %v1209_v51 = vmul.f32 1.442695, %v1177_v54  ;;  %v1211_v56 = vmul.f32 1.442695, %v1178_v5  ;;  %v1202_v9 = vsub.f32 %v4783_v20, %v3323_v46  ;;  %v1203_v0 = vsub.f32 %v4784_v23, %v3335_v53 }
  0xcd   :  { %v1213_v35 = vmul.f32 1.442695, %v1179_v24  ;;  %v1215_v43 = vmul.f32 1.442695, %v1180_v62  ;;  %v1204_v30 = vsub.f32 %v4785_v8, %v3335_v53  ;;  %v1205_v45 = vsub.f32 %v4786_v14, %v3341_v29 }
  0xce   :  { %2425 = vpow2.f32 %v1209_v51  ;;  %v1217_v60 = vmul.f32 1.442695, %v1181_v25  ;;  %v1206_v26 = vsub.f32 %v3243_v21, %v3341_v29  ;;  %v1207_v17 = vsub.f32 %v4787_v16, %v1176_v13  ;;  %v3391_v25 = vld [vmem:[#allocation7] sm:$0xff] }
  0xcf   :  { %2427 = vpow2.f32 %v1211_v56  ;;  %v1219_v49 = vmul.f32 1.442695, %v1182_v3  ;;  %v1208_v55 = vsub.f32 %v3253_v11, %v1176_v13  ;;  %v1221_v18 = vmul.f32 1.442695, %v1183_v12  ;;  %v3393_v3 = vld [vmem:[#allocation7 + $0x10] sm:$0xff] }
  0xd0   :  { %2429 = vpow2.f32 %v1213_v35  ;;  %v1223_v34 = vmul.f32 1.442695, %v1184_v39  ;;  %v1225_v32 = vmul.f32 1.442695, %v1185_v48  ;;  %v1227_v7 = vmul.f32 1.442695, %v1186_v47 }
  0xd1   :  { %2431 = vpow2.f32 %v1215_v43  ;;  %v1229_v28 = vmul.f32 1.442695, %v1187_v15  ;;  %v1231_v54 = vmul.f32 1.442695, %v1188_v1  ;;  %v1233_v5 = vmul.f32 1.442695, %v1189_v58 }
  0xd2   :  { %2433 = vpow2.f32 %v1217_v60  ;;  %v1235_v44 = vmul.f32 1.442695, %v1190_v40  ;;  %v1237_v6 = vmul.f32 1.442695, %v1191_v36  ;;  %v1239_v21 = vmul.f32 1.442695, %v1192_v50 }
  0xd3   :  { %2435 = vpow2.f32 %v1219_v49  ;;  %v1241_v61 = vmul.f32 1.442695, %v1193_v19  ;;  %v1243_v24 = vmul.f32 1.442695, %v1194_v57  ;;  %v1245_v46 = vmul.f32 1.442695, %v1195_v4 }
  0xd4   :  { %2437 = vpow2.f32 %v1221_v18  ;;  %v1247_v63 = vmul.f32 1.442695, %v1196_v22  ;;  %v3385_v11 = vmul.f32 1.442695, %v1197_v59  ;;  %v3387_v31 = vmul.f32 1.442695, %v1198_v2 }
  0xd5   :  { %2439 = vpow2.f32 %v1223_v34  ;;  %v3389_v62 = vmul.f32 1.442695, %v1199_v10  ;;  %4788 = vst [vmem:[#allocation13_spill] sm:$0xff] %v3393_v3  ;;  %v3395_v12 = vmul.f32 1.442695, %v1200_v37  ;;  %v3417_v40 = vld [vmem:[#allocation7 + $0x8] sm:$0xff] }
  0xd6   :  { %2441 = vpow2.f32 %v1225_v32  ;;  %v3397_v39 = vmul.f32 1.442695, %v1201_v33  ;;  %v3399_v53 = vmul.f32 1.442695, %v1202_v9  ;;  %v3401_v52 = vmul.f32 1.442695, %v1203_v0 }
  0xd7   :  { %2443 = vpow2.f32 %v1227_v7  ;;  %v3403_v48 = vmul.f32 1.442695, %v1204_v30  ;;  %v3405_v47 = vmul.f32 1.442695, %v1205_v45  ;;  %v3409_v15 = vmul.f32 1.442695, %v1206_v26 }
  0xd8   :  { %v3407_v29 = vpop.eup %2425  ;;  %2445 = vpow2.f32 %v1229_v28  ;;  %v3411_v1 = vmul.f32 1.442695, %v1207_v17  ;;  %v3413_v58 = vmul.f32 1.442695, %v1208_v55  ;;  %v3419_v36 = vld [vmem:[#allocation7 + $0x18] sm:$0xff] }
  0xd9   :  { %4789 = vst [vmem:[#allocation28_spill] sm:$0xff] %v3407_v29  ;;  %v3415_v27 = vpop.eup %2427  ;;  %4791 = vst [vmem:[#allocation18_spill] sm:$0xff] %v3419_v36  ;;  %2447 = vpow2.f32 %v1231_v54  ;;  %v1273_v50 = vsel %vm1032_vm0, %v3407_v29, 0.0  ;;  %v1433_v19 = vmul.f32 %v3407_v29, %v3391_v25  ;;  %v3427_v57 = vmul.f32 %v3407_v29, %v3393_v3 }
  0xda   :  { %4790 = vst [vmem:[#allocation29_spill] sm:$0xff] %v3415_v27  ;;  %v3429_v4 = vpop.eup %2429  ;;  %2449 = vpow2.f32 %v1233_v5  ;;  %v1274_v22 = vsel %vm1032_vm0, %v3415_v27, 0.0  ;;  %v3435_v13 = vmul.f32 %v3415_v27, %v3417_v40  ;;  %v3439_v59 = vmul.f32 %v3415_v27, %v3419_v36 }
  0xdb   :  { %4792 = vst [vmem:[#allocation19_spill] sm:$0xff] %v3427_v57  ;;  %4793 = vst [vmem:[#allocation20_spill] sm:$0xff] %v3429_v4  ;;  %v3441_v2 = vpop.eup %2431  ;;  %2451 = vpow2.f32 %v1235_v44  ;;  %v1275_v42 = vadd.f32 %v1274_v22, %v1273_v50  ;;  %v1282_v10 = vsel %vm1032_vm0, %v3429_v4, 0.0  ;;  %v3447_v38 = vmul.f32 %v3429_v4, %v3391_v25 }
  0xdc   :  { %4794 = vst [vmem:[#allocation21_spill] sm:$0xff] %v3439_v59  ;;  %4795 = vst [vmem:[#allocation22_spill] sm:$0xff] %v3441_v2  ;;  %v3449_v37 = vpop.eup %2433  ;;  %2453 = vpow2.f32 %v1237_v6  ;;  %v1283_v41 = vsel %vm1032_vm0, %v3441_v2, 0.0  ;;  %v3455_v33 = vmul.f32 %v3441_v2, %v3417_v40  ;;  %v3458_v51 = vsel %vm1032_vm0, %v1433_v19, 0.0 }
  0xdd   :  { %4796 = vst [vmem:[#allocation12_spill] sm:$0xff] %v3449_v37  ;;  %v3460_v56 = vpop.eup %2435  ;;  %2455 = vpow2.f32 %v1239_v21  ;;  %v1276_v20 = vrot.slane %v1275_v42, 4  ;;  %v1284_v9 = vadd.f32 %v1283_v41, %v1282_v10  ;;  %v1291_v23 = vsel %vm1032_vm0, %v3449_v37, 0.0 }
  0xde   :  { %4797 = vst [vmem:[#allocation16_spill] sm:$0xff] %v3455_v33  ;;  %4798 = vst [vmem:[#allocation27_spill] sm:$0xff] %v3460_v56  ;;  %v3464_v0 = vpop.eup %2437  ;;  %2457 = vpow2.f32 %v1241_v61  ;;  %v1292_v35 = vsel %vm1032_vm0, %v3460_v56, 0.0  ;;  %v3470_v43 = vmul.f32 %v3449_v37, %v3391_v25  ;;  %v3474_v8 = vmul.f32 %v3460_v56, %v3417_v40 }
  0xdf   :  { %4799 = vst [vmem:[#allocation17_spill] sm:$0xff] %v3464_v0  ;;  %v3476_v30 = vpop.eup %2439  ;;  %2459 = vpow2.f32 %v1243_v24  ;;  %v1277_v14 = vadd.f32 %v1276_v20, %v1275_v42  ;;  %v1285_v45 = vrot.slane %v1284_v9, 4  ;;  %v1293_v60 = vadd.f32 %v1292_v35, %v1291_v23 }
  0xe0   :  { %4800 = vst [vmem:[#allocation14_spill] sm:$0xff] %v3470_v43  ;;  %4801 = vst [vmem:[#allocation30_spill] sm:$0xff] %v3474_v8  ;;  %v3478_v26 = vpop.eup %2441  ;;  %2461 = vpow2.f32 %v1245_v46  ;;  %v1300_v16 = vsel %vm1032_vm0, %v3464_v0, 0.0  ;;  %v1301_v17 = vsel %vm1032_vm0, %v3476_v30, 0.0  ;;  %v3486_v49 = vmul.f32 %v3464_v0, %v3391_v25 }
  0xe1   :  { %4802 = vst [vmem:[#allocation15_spill] sm:$0xff] %v3476_v30  ;;  %4803 = vst [vmem:[#allocation23_spill] sm:$0xff] %v3478_v26  ;;  %v3488_v55 = vpop.eup %2443  ;;  %2463 = vpow2.f32 %v1247_v63  ;;  %v1278_v18 = vrot.slane %v1277_v14, 2  ;;  %v1286_v34 = vadd.f32 %v1285_v45, %v1284_v9  ;;  %v1294_v32 = vrot.slane %v1293_v60, 4 }
  0xe2   :  { %4804 = vst [vmem:[#allocation24_spill] sm:$0xff] %v3486_v49  ;;  %4805 = vst [vmem:[#allocation25_spill] sm:$0xff] %v3488_v55  ;;  %v3490_v7 = vpop.eup %2445  ;;  %2465 = vpow2.f32 %v3385_v11  ;;  %v1302_v28 = vadd.f32 %v1301_v17, %v1300_v16  ;;  %v1309_v54 = vsel %vm1032_vm0, %v3478_v26, 0.0  ;;  %v1310_v5 = vsel %vm1032_vm0, %v3488_v55, 0.0 }
  0xe3   :  { %4806 = vst [vmem:[#allocation26_spill] sm:$0xff] %v3490_v7  ;;  %v3497_v44 = vpop.eup %2447  ;;  %2467 = vpow2.f32 %v3387_v31  ;;  %v1279_v6 = vadd.f32 %v1278_v18, %v1277_v14  ;;  %v1287_v21 = vrot.slane %v1286_v34, 2  ;;  %v1295_v61 = vadd.f32 %v1294_v32, %v1293_v60 }
  0xe4   :  { %4807 = vst [vmem:[#allocation31_spill] sm:$0xff] %v3497_v44  ;;  %v3500_v24 = vpop.eup %2449  ;;  %2469 = vpow2.f32 %v3389_v62  ;;  %v1303_v46 = vrot.slane %v1302_v28, 4  ;;  %v1311_v63 = vadd.f32 %v1310_v5, %v1309_v54  ;;  %v1318_v11 = vsel %vm1032_vm0, %v3490_v7, 0.0 }
  0xe5   :  { %4808 = vst [vmem:[#allocation32_spill] sm:$0xff] %v3500_v24  ;;  %v3505_v50 = vpop.eup %2451  ;;  %2471 = vpow2.f32 %v3395_v12  ;;  %v1280_v19 = vrot.slane %v1279_v6, 1  ;;  %v1288_v22 = vadd.f32 %v1287_v21, %v1286_v34  ;;  %v1296_v42 = vrot.slane %v1295_v61, 2 }
  0xe6   :  { %4809 = vst [vmem:[#allocation33_spill] sm:$0xff] %v3505_v50  ;;  %v3508_v31 = vpop.eup %2453  ;;  %2473 = vpow2.f32 %v3397_v39  ;;  %v1304_v10 = vadd.f32 %v1303_v46, %v1302_v28  ;;  %v1312_v41 = vrot.slane %v1311_v63, 4  ;;  %v1319_v62 = vsel %vm1032_vm0, %v3497_v44, 0.0 }
  0xe7   :  { %4810 = vst [vmem:[#allocation34_spill] sm:$0xff] %v3508_v31  ;;  %v3513_v20 = vpop.eup %2455  ;;  %2475 = vpow2.f32 %v3399_v53  ;;  %v3516_v9 = vadd.f32 %v1280_v19, %v1279_v6  ;;  %v1289_v23 = vrot.slane %v1288_v22, 1  ;;  %v1297_v12 = vadd.f32 %v1296_v42, %v1295_v61 }
  0xe8   :  { %4811 = vst [vmem:[#allocation35_spill] sm:$0xff] %v3513_v20  ;;  %v3518_v35 = vpop.eup %2457  ;;  %2477 = vpow2.f32 %v3401_v52  ;;  %v1305_v14 = vrot.slane %v1304_v10, 2  ;;  %v1313_v45 = vadd.f32 %v1312_v41, %v1311_v63  ;;  %v1320_v39 = vadd.f32 %v1319_v62, %v1318_v11 }
  0xe9   :  { %4812 = vst [vmem:[#allocation36_spill] sm:$0xff] %v3518_v35  ;;  %v3521_v60 = vpop.eup %2459  ;;  %2479 = vpow2.f32 %v3403_v48  ;;  %v3524_v16 = vadd.f32 %v1289_v23, %v1288_v22  ;;  %v1298_v17 = vrot.slane %v1297_v12, 1  ;;  %v1327_v53 = vsel %vm1032_vm0, %v3500_v24, 0.0 }
  0xea   :  { %4813 = vst [vmem:[#allocation37_spill] sm:$0xff] %v3521_v60  ;;  %v3528_v18 = vpop.eup %2461  ;;  %2481 = vpow2.f32 %v3405_v47  ;;  %v1306_v34 = vadd.f32 %v1305_v14, %v1304_v10  ;;  %v1314_v32 = vrot.slane %v1313_v45, 2  ;;  %v1321_v52 = vrot.slane %v1320_v39, 4 }
  0xeb   :  { %4814 = vst [vmem:[#allocation38_spill] sm:$0xff] %v3528_v18  ;;  %v3531_v28 = vpop.eup %2463  ;;  %2483 = vpow2.f32 %v3409_v15  ;;  %v3534_v54 = vadd.f32 %v1298_v17, %v1297_v12  ;;  %v1328_v48 = vsel %vm1032_vm0, %v3505_v50, 0.0  ;;  %v1336_v5 = vsel %vm1032_vm0, %v3508_v31, 0.0 }
  0xec   :  { %4815 = vst [vmem:[#allocation39_spill] sm:$0xff] %v3531_v28  ;;  %v3540_v6 = vpop.eup %2465  ;;  %2485 = vpow2.f32 %v3411_v1  ;;  %v1307_v47 = vrot.slane %v1306_v34, 1  ;;  %v1315_v21 = vadd.f32 %v1314_v32, %v1313_v45  ;;  %v1322_v61 = vadd.f32 %v1321_v52, %v1320_v39 }
  0xed   :  { %4816 = vst [vmem:[#allocation40_spill] sm:$0xff] %v3540_v6  ;;  %v3543_v46 = vpop.eup %2467  ;;  %2487 = vpow2.f32 %v3413_v58  ;;  %v1329_v15 = vadd.f32 %v1328_v48, %v1327_v53  ;;  %v1337_v63 = vsel %vm1032_vm0, %v3513_v20, 0.0  ;;  %v1345_v11 = vsel %vm1032_vm0, %v3518_v35, 0.0 }
  0xee   :  { %4817 = vst [vmem:[#allocation41_spill] sm:$0xff] %v3543_v46  ;;  %v3550_v19 = vpop.eup %2469  ;;  %v3552_v22 = vadd.f32 %v1307_v47, %v1306_v34  ;;  %v1316_v42 = vrot.slane %v1315_v21, 1  ;;  %v1323_v1 = vrot.slane %v1322_v61, 2  ;;  %v1338_v10 = vadd.f32 %v1337_v63, %v1336_v5 }
  0xef   :  { %4818 = vst [vmem:[#allocation42_spill] sm:$0xff] %v3550_v19  ;;  %v3554_v41 = vpop.eup %2471  ;;  %v1330_v62 = vrot.slane %v1329_v15, 4  ;;  %v1346_v58 = vsel %vm1032_vm0, %v3521_v60, 0.0  ;;  %v1354_v23 = vsel %vm1032_vm0, %v3528_v18, 0.0  ;;  %v1355_v12 = vsel %vm1032_vm0, %v3531_v28, 0.0 }
  0xf0   :  { %4819 = vst [vmem:[#allocation43_spill] sm:$0xff] %v3554_v41  ;;  %v3562_v14 = vpop.eup %2473  ;;  %v3564_v45 = vadd.f32 %v1316_v42, %v1315_v21  ;;  %v1324_v39 = vadd.f32 %v1323_v1, %v1322_v61  ;;  %v1339_v17 = vrot.slane %v1338_v10, 4  ;;  %v1347_v53 = vadd.f32 %v1346_v58, %v1345_v11 }
  0xf1   :  { %4820 = vst [vmem:[#allocation44_spill] sm:$0xff] %v3562_v14  ;;  %v3566_v34 = vpop.eup %2475  ;;  %v1331_v32 = vadd.f32 %v1330_v62, %v1329_v15  ;;  %v1356_v52 = vadd.f32 %v1355_v12, %v1354_v23  ;;  %v1363_v48 = vsel %vm1032_vm0, %v3540_v6, 0.0  ;;  %v1364_v5 = vsel %vm1032_vm0, %v3543_v46, 0.0 }
  0xf2   :  { %4821 = vst [vmem:[#allocation45_spill] sm:$0xff] %v3566_v34  ;;  %v3572_v47 = vpop.eup %2477  ;;  %v1325_v63 = vrot.slane %v1324_v39, 1  ;;  %v1340_v27 = vadd.f32 %v1339_v17, %v1338_v10  ;;  %v1348_v29 = vrot.slane %v1347_v53, 4  ;;  %v1365_v21 = vadd.f32 %v1364_v5, %v1363_v48 }
  0xf3   :  { %4822 = vst [vmem:[#allocation46_spill] sm:$0xff] %v3572_v47  ;;  %v3574_v42 = vpop.eup %2479  ;;  %v1332_v61 = vrot.slane %v1331_v32, 2  ;;  %v1357_v11 = vrot.slane %v1356_v52, 4  ;;  %v1372_v15 = vsel %vm1032_vm0, %v3550_v19, 0.0  ;;  %v1373_v1 = vsel %vm1032_vm0, %v3554_v41, 0.0 }
  0xf4   :  { %4823 = vst [vmem:[#allocation47_spill] sm:$0xff] %v3574_v42  ;;  %v3580_v62 = vpop.eup %2481  ;;  %v3582_v58 = vadd.f32 %v1325_v63, %v1324_v39  ;;  %v1341_v23 = vrot.slane %v1340_v27, 2  ;;  %v1349_v12 = vadd.f32 %v1348_v29, %v1347_v53  ;;  %v1366_v59 = vrot.slane %v1365_v21, 4 }
  0xf5   :  { %4824 = vst [vmem:[#allocation48_spill] sm:$0xff] %v3580_v62  ;;  %v3584_v10 = vpop.eup %2483  ;;  %v1333_v17 = vadd.f32 %v1332_v61, %v1331_v32  ;;  %v1358_v48 = vadd.f32 %v1357_v11, %v1356_v52  ;;  %v1374_v5 = vadd.f32 %v1373_v1, %v1372_v15  ;;  %v1381_v57 = vsel %vm1032_vm0, %v3562_v14, 0.0 }
  0xf6   :  { %4825 = vst [vmem:[#allocation49_spill] sm:$0xff] %v3584_v10  ;;  %v3588_v0 = vpop.eup %2485  ;;  %v1342_v56 = vadd.f32 %v1341_v23, %v1340_v27  ;;  %v1350_v37 = vrot.slane %v1349_v12, 2  ;;  %v1367_v2 = vadd.f32 %v1366_v59, %v1365_v21  ;;  %v1382_v39 = vsel %vm1032_vm0, %v3566_v34, 0.0 }
  0xf7   :  { %4826 = vst [vmem:[#allocation50_spill] sm:$0xff] %v3588_v0  ;;  %v3592_v63 = vpop.eup %2487  ;;  %v1334_v29 = vrot.slane %v1333_v17, 1  ;;  %v1359_v53 = vrot.slane %v1358_v48, 2  ;;  %v1375_v36 = vrot.slane %v1374_v5, 4  ;;  %v1383_v4 = vadd.f32 %v1382_v39, %v1381_v57 }
  0xf8   :  { %4827 = vst [vmem:[#allocation51_spill] sm:$0xff] %v3592_v63  ;;  %v1343_v32 = vrot.slane %v1342_v56, 1  ;;  %v1351_v52 = vadd.f32 %v1350_v37, %v1349_v12  ;;  %v1368_v61 = vrot.slane %v1367_v2, 2  ;;  %v1390_v11 = vsel %vm1032_vm0, %v3572_v47, 0.0 }
  0xf9   :  { %v1335_v15 = vadd.f32 %v1334_v29, %v1333_v17  ;;  %v1360_v1 = vadd.f32 %v1359_v53, %v1358_v48  ;;  %v1376_v27 = vadd.f32 %v1375_v36, %v1374_v5  ;;  %v1384_v23 = vrot.slane %v1383_v4, 4 }
  0xfa   :  { %v1344_v59 = vadd.f32 %v1343_v32, %v1342_v56  ;;  %v1352_v21 = vrot.slane %v1351_v52, 1  ;;  %v1369_v3 = vadd.f32 %v1368_v61, %v1367_v2  ;;  %v1391_v49 = vsel %vm1032_vm0, %v3574_v42, 0.0 }
  0xfb   :  { %v1361_v8 = vrot.slane %v1360_v1, 1  ;;  %v1377_v43 = vrot.slane %v1376_v27, 2  ;;  %v1385_v33 = vadd.f32 %v1384_v23, %v1383_v4  ;;  %v1392_v57 = vadd.f32 %v1391_v49, %v1390_v11 }
  0xfc   :  { %v1353_v39 = vadd.f32 %v1352_v21, %v1351_v52  ;;  %v1370_v37 = vrot.slane %v1369_v3, 1  ;;  %v1399_v12 = vsel %vm1032_vm0, %v3580_v62, 0.0  ;;  %v1400_v17 = vsel %vm1032_vm0, %v3584_v10, 0.0 }
  0xfd   :  { %v1362_v36 = vadd.f32 %v1361_v8, %v1360_v1  ;;  %v1378_v48 = vadd.f32 %v1377_v43, %v1376_v27  ;;  %v1386_v56 = vrot.slane %v1385_v33, 2  ;;  %v1393_v5 = vrot.slane %v1392_v57, 4 }
  0xfe   :  { %v1371_v2 = vadd.f32 %v1370_v37, %v1369_v3  ;;  %v1401_v29 = vadd.f32 %v1400_v17, %v1399_v12  ;;  %v1408_v53 = vsel %vm1032_vm0, %v3588_v0, 0.0  ;;  %v1409_v4 = vsel %vm1032_vm0, %v3592_v63, 0.0 }
  0xff   :  { %v1379_v49 = vrot.slane %v1378_v48, 1  ;;  %v1387_v32 = vadd.f32 %v1386_v56, %v1385_v33  ;;  %v1394_v52 = vadd.f32 %v1393_v5, %v1392_v57  ;;  %v1410_v61 = vadd.f32 %v1409_v4, %v1408_v53 }
 0x100   :  { %v1402_v11 = vrot.slane %v1401_v29, 4  ;;  %2489 = vrcp.f32 %v3516_v9  ;;  %v3609_v43 = vmul.f32 %v3476_v30, %v3417_v40  ;;  %v3613_v3 = vmul.f32 %v3478_v26, %v3391_v25 }
 0x101   :  { %v1380_v8 = vadd.f32 %v1379_v49, %v1378_v48  ;;  %v1388_v1 = vrot.slane %v1387_v32, 1  ;;  %v1395_v27 = vrot.slane %v1394_v52, 2  ;;  %v1411_v23 = vrot.slane %v1410_v61, 4 }
 0x102   :  { %v1403_v21 = vadd.f32 %v1402_v11, %v1401_v29  ;;  %2491 = vrcp.f32 %v3524_v16  ;;  %v3618_v33 = vmul.f32 %v3488_v55, %v3417_v40  ;;  %v3622_v9 = vmul.f32 %v3490_v7, %v3391_v25 }
 0x103   :  { %v1389_v57 = vadd.f32 %v1388_v1, %v1387_v32  ;;  %v1396_v37 = vadd.f32 %v1395_v27, %v1394_v52  ;;  %v1412_v12 = vadd.f32 %v1411_v23, %v1410_v61  ;;  %2493 = vrcp.f32 %v3534_v54 }
 0x104   :  { %v1404_v17 = vrot.slane %v1403_v21, 2  ;;  %2495 = vrcp.f32 %v3552_v22  ;;  %v3628_v48 = vmul.f32 %v3497_v44, %v3417_v40  ;;  %v3632_v16 = vmul.f32 %v3500_v24, %v3391_v25 }
 0x105   :  { %v1397_v56 = vrot.slane %v1396_v37, 1  ;;  %v1413_v5 = vrot.slane %v1412_v12, 2  ;;  %2497 = vrcp.f32 %v3564_v45  ;;  %v3637_v29 = vmul.f32 %v3505_v50, %v3417_v40 }
 0x106   :  { %v1405_v54 = vadd.f32 %v1404_v17, %v1403_v21  ;;  %2499 = vrcp.f32 %v3582_v58  ;;  %v3642_v22 = vmul.f32 %v3508_v31, %v3391_v25  ;;  %v3646_v53 = vmul.f32 %v3513_v20, %v3417_v40 }
 0x107   :  { %v1398_v4 = vadd.f32 %v1397_v56, %v1396_v37  ;;  %v1414_v49 = vadd.f32 %v1413_v5, %v1412_v12  ;;  %2501 = vrcp.f32 %v1335_v15  ;;  %v3650_v45 = vmul.f32 %v3518_v35, %v3391_v25 }
 0x108   :  { %v1406_v32 = vrot.slane %v1405_v54, 1  ;;  %2503 = vrcp.f32 %v1344_v59  ;;  %v3654_v58 = vmul.f32 %v3521_v60, %v3417_v40  ;;  %v3658_v52 = vmul.f32 %v3528_v18, %v3391_v25 }
 0x109   :  { %v1415_v61 = vrot.slane %v1414_v49, 1  ;;  %2505 = vrcp.f32 %v1353_v39  ;;  %v3662_v11 = vmul.f32 %v3531_v28, %v3417_v40  ;;  %v3666_v15 = vmul.f32 %v3540_v6, %v3391_v25 }
 0x10a   :  { %v3668_v1 = vpop.eup %2489  ;;  %v1407_v59 = vadd.f32 %v1406_v32, %v1405_v54  ;;  %2507 = vrcp.f32 %v1362_v36  ;;  %v3672_v27 = vmul.f32 %v3543_v46, %v3417_v40  ;;  %v3676_v23 = vmul.f32 %v3550_v19, %v3391_v25 }
 0x10b   :  { %v1416_v39 = vadd.f32 %v1415_v61, %v1414_v49  ;;  %2509 = vrcp.f32 %v1371_v2  ;;  %v3680_v21 = vmul.f32 %v3554_v41, %v3417_v40  ;;  %v3684_v37 = vmul.f32 %v3562_v14, %v3391_v25 }
 0x10c   :  { %v3686_v12 = vpop.eup %2491  ;;  %2511 = vrcp.f32 %v1380_v8  ;;  %v3690_v36 = vmul.f32 %v3566_v34, %v3417_v40  ;;  %v3694_v17 = vmul.f32 %v3572_v47, %v3391_v25  ;;  %v3698_v2 = vmul.f32 %v3574_v42, %v3417_v40  ;;  %v4829_v42 = vld [vmem:[#allocation14_spill] sm:$0xff]  ;;  %v4831_v34 = vld [vmem:[#allocation24_spill] sm:$0xff] }
 0x10d   :  { %v3700_v56 = vpop.eup %2493  ;;  %2513 = vrcp.f32 %v1389_v57  ;;  %v3704_v5 = vmul.f32 %v3580_v62, %v3391_v25  ;;  %v3708_v8 = vmul.f32 %v3584_v10, %v3417_v40  ;;  %v3712_v54 = vmul.f32 %v3588_v0, %v3391_v25  ;;  %v4828_v25 = vld [vmem:[#allocation16_spill] sm:$0xff] }
 0x10e   :  { %v3714_v49 = vpop.eup %2495  ;;  %2515 = vrcp.f32 %v1398_v4  ;;  %v3718_v32 = vmul.f32 %v3592_v63, %v3417_v40  ;;  %v1466_v57 = vsel %vm1032_vm0, %v3435_v13, 0.0  ;;  %v1474_v61 = vsel %vm1032_vm0, %v3447_v38, 0.0  ;;  %v4830_v63 = vld [vmem:[#allocation30_spill] sm:$0xff] }
 0x10f   :  { %v3724_v62 = vpop.eup %2497  ;;  %2517 = vrcp.f32 %v1407_v59  ;;  %v1467_v10 = vadd.f32 %v1466_v57, %v3458_v51  ;;  %v1475_v0 = vsel %vm1032_vm0, %v4828_v25, 0.0  ;;  %v1483_v4 = vsel %vm1032_vm0, %v4829_v42, 0.0 }
 0x110   :  { %v3731_v47 = vpop.eup %2499  ;;  %2519 = vrcp.f32 %v1416_v39  ;;  %v1476_v40 = vadd.f32 %v1475_v0, %v1474_v61  ;;  %v1484_v13 = vsel %vm1032_vm0, %v4830_v63, 0.0  ;;  %v1492_v38 = vsel %vm1032_vm0, %v4831_v34, 0.0 }
 0x111   :  { %v3737_v14 = vpop.eup %2501  ;;  %v1468_v59 = vrot.slane %v1467_v10, 4  ;;  %v1485_v51 = vadd.f32 %v1484_v13, %v1483_v4  ;;  %v1493_v57 = vsel %vm1032_vm0, %v3609_v43, 0.0  ;;  %v1501_v42 = vsel %vm1032_vm0, %v3613_v3, 0.0 }
 0x112   :  { %v3743_v25 = vpop.eup %2503  ;;  %v1477_v39 = vrot.slane %v1476_v40, 4  ;;  %v1494_v0 = vadd.f32 %v1493_v57, %v1492_v38  ;;  %v1502_v63 = vsel %vm1032_vm0, %v3618_v33, 0.0  ;;  %v1510_v34 = vsel %vm1032_vm0, %v3622_v9, 0.0 }
 0x113   :  { %v3749_v61 = vpop.eup %2505  ;;  %v1469_v41 = vadd.f32 %v1468_v59, %v1467_v10  ;;  %v1486_v4 = vrot.slane %v1485_v51, 4  ;;  %v1503_v13 = vadd.f32 %v1502_v63, %v1501_v42  ;;  %v1511_v43 = vsel %vm1032_vm0, %v3628_v48, 0.0 }
 0x114   :  { %v3753_v19 = vpop.eup %2507  ;;  %v1478_v3 = vadd.f32 %v1477_v39, %v1476_v40  ;;  %v1495_v46 = vrot.slane %v1494_v0, 4  ;;  %v1512_v6 = vadd.f32 %v1511_v43, %v1510_v34  ;;  %v1519_v38 = vsel %vm1032_vm0, %v3632_v16, 0.0 }
 0x115   :  { %v3757_v33 = vpop.eup %2509  ;;  %v1470_v57 = vrot.slane %v1469_v41, 2  ;;  %v1487_v9 = vadd.f32 %v1486_v4, %v1485_v51  ;;  %v1504_v28 = vrot.slane %v1503_v13, 4  ;;  %v1520_v10 = vsel %vm1032_vm0, %v3637_v29, 0.0 }
 0x116   :  { %v3761_v59 = vpop.eup %2511  ;;  %v1479_v42 = vrot.slane %v1478_v3, 2  ;;  %v1496_v48 = vadd.f32 %v1495_v46, %v1494_v0  ;;  %v1513_v63 = vrot.slane %v1512_v6, 4  ;;  %v1521_v18 = vadd.f32 %v1520_v10, %v1519_v38 }
 0x117   :  { %v3763_v40 = vpop.eup %2513  ;;  %v1471_v39 = vadd.f32 %v1470_v57, %v1469_v41  ;;  %v1488_v34 = vrot.slane %v1487_v9, 2  ;;  %v1505_v43 = vadd.f32 %v1504_v28, %v1503_v13  ;;  %v1528_v16 = vsel %vm1032_vm0, %v3642_v22, 0.0 }
 0x118   :  { %v3767_v60 = vpop.eup %2515  ;;  %v1480_v51 = vadd.f32 %v1479_v42, %v1478_v3  ;;  %v1497_v4 = vrot.slane %v1496_v48, 2  ;;  %v1514_v35 = vadd.f32 %v1513_v63, %v1512_v6  ;;  %v1522_v29 = vrot.slane %v1521_v18, 4 }
 0x119   :  { %v3769_v20 = vpop.eup %2517  ;;  %v1472_v31 = vrot.slane %v1471_v39, 1  ;;  %v1489_v46 = vadd.f32 %v1488_v34, %v1487_v9  ;;  %v1506_v0 = vrot.slane %v1505_v43, 2  ;;  %v1529_v38 = vsel %vm1032_vm0, %v3646_v53, 0.0 }
 0x11a   :  { %4832 = vst [vmem:[#allocation16_spill] sm:$0xff] %v3769_v20  ;;  %v3773_v41 = vpop.eup %2519  ;;  %v1481_v28 = vrot.slane %v1480_v51, 1  ;;  %v1498_v13 = vadd.f32 %v1497_v4, %v1496_v48  ;;  %v1515_v57 = vrot.slane %v1514_v35, 2  ;;  %v1523_v22 = vadd.f32 %v1522_v29, %v1521_v18 }
 0x11b   :  { %4833 = vst [vmem:[#allocation14_spill] sm:$0xff] %v3773_v41  ;;  %v3775_v10 = vadd.f32 %v1472_v31, %v1471_v39  ;;  %v1490_v3 = vrot.slane %v1489_v46, 1  ;;  %v1507_v42 = vadd.f32 %v1506_v0, %v1505_v43  ;;  %v1530_v6 = vadd.f32 %v1529_v38, %v1528_v16 }
 0x11c   :  { %v3777_v63 = vadd.f32 %v1481_v28, %v1480_v51  ;;  %v1499_v50 = vrot.slane %v1498_v13, 1  ;;  %v1516_v24 = vadd.f32 %v1515_v57, %v1514_v35  ;;  %v1524_v9 = vrot.slane %v1523_v22, 2 }
 0x11d   :  { %v3779_v34 = vadd.f32 %v1490_v3, %v1489_v46  ;;  %v1508_v44 = vrot.slane %v1507_v42, 1  ;;  %v1531_v53 = vrot.slane %v1530_v6, 4  ;;  %v1537_v41 = vsel %vm1032_vm0, %v3650_v45, 0.0 }
 0x11e   :  { %v3783_v48 = vadd.f32 %v1499_v50, %v1498_v13  ;;  %v1517_v18 = vrot.slane %v1516_v24, 1  ;;  %v1525_v31 = vadd.f32 %v1524_v9, %v1523_v22  ;;  %v1538_v39 = vsel %vm1032_vm0, %v3654_v58, 0.0 }
 0x11f   :  { %v3787_v43 = vadd.f32 %v1508_v44, %v1507_v42  ;;  %v1532_v16 = vadd.f32 %v1531_v53, %v1530_v6  ;;  %v1539_v51 = vadd.f32 %v1538_v39, %v1537_v41  ;;  %v1546_v35 = vsel %vm1032_vm0, %v3658_v52, 0.0 }
 0x120   :  { %v3791_v4 = vadd.f32 %v1517_v18, %v1516_v24  ;;  %v1526_v29 = vrot.slane %v1525_v31, 1  ;;  %v1547_v45 = vsel %vm1032_vm0, %v3662_v11, 0.0  ;;  %v1555_v50 = vsel %vm1032_vm0, %v3666_v15, 0.0 }
 0x121   :  { %v1533_v46 = vrot.slane %v1532_v16, 2  ;;  %v1540_v0 = vrot.slane %v1539_v51, 4  ;;  %v1548_v38 = vadd.f32 %v1547_v45, %v1546_v35  ;;  %v1556_v44 = vsel %vm1032_vm0, %v3672_v27, 0.0 }
 0x122   :  { %v3799_v58 = vadd.f32 %v1526_v29, %v1525_v31  ;;  %v1557_v41 = vadd.f32 %v1556_v44, %v1555_v50  ;;  %v1564_v24 = vsel %vm1032_vm0, %v3676_v23, 0.0  ;;  %v1565_v52 = vsel %vm1032_vm0, %v3680_v21, 0.0 }
 0x123   :  { %v1534_v28 = vadd.f32 %v1533_v46, %v1532_v16  ;;  %v1541_v11 = vadd.f32 %v1540_v0, %v1539_v51  ;;  %v1549_v13 = vrot.slane %v1548_v38, 4  ;;  %v1566_v57 = vadd.f32 %v1565_v52, %v1564_v24 }
 0x124   :  { %v1558_v15 = vrot.slane %v1557_v41, 4  ;;  %v1573_v22 = vsel %vm1032_vm0, %v3684_v37, 0.0  ;;  %v1574_v27 = vsel %vm1032_vm0, %v3690_v36, 0.0  ;;  %v1582_v3 = vsel %vm1032_vm0, %v3694_v17, 0.0 }
 0x125   :  { %v1535_v42 = vrot.slane %v1534_v28, 1  ;;  %v1542_v6 = vrot.slane %v1541_v11, 2  ;;  %v1550_v23 = vadd.f32 %v1549_v13, %v1548_v38  ;;  %v1567_v9 = vrot.slane %v1566_v57, 4 }
 0x126   :  { %v1559_v53 = vadd.f32 %v1558_v15, %v1557_v41  ;;  %v1575_v21 = vadd.f32 %v1574_v27, %v1573_v22  ;;  %v1583_v18 = vsel %vm1032_vm0, %v3698_v2, 0.0  ;;  %v1591_v31 = vsel %vm1032_vm0, %v3704_v5, 0.0 }
 0x127   :  { %v1536_v39 = vadd.f32 %v1535_v42, %v1534_v28  ;;  %v1543_v37 = vadd.f32 %v1542_v6, %v1541_v11  ;;  %v1551_v16 = vrot.slane %v1550_v23, 2  ;;  %v1568_v51 = vadd.f32 %v1567_v9, %v1566_v57 }
 0x128   :  { %v1560_v36 = vrot.slane %v1559_v53, 2  ;;  %v1576_v35 = vrot.slane %v1575_v21, 4  ;;  %v1584_v29 = vadd.f32 %v1583_v18, %v1582_v3  ;;  %v1592_v17 = vsel %vm1032_vm0, %v3708_v8, 0.0 }
 0x129   :  { %v1544_v45 = vrot.slane %v1543_v37, 1  ;;  %v1552_v50 = vadd.f32 %v1551_v16, %v1550_v23  ;;  %v1569_v46 = vrot.slane %v1568_v51, 2  ;;  %v1593_v0 = vadd.f32 %v1592_v17, %v1591_v31 }
 0x12a   :  { %v1561_v38 = vadd.f32 %v1560_v36, %v1559_v53  ;;  %v1577_v44 = vadd.f32 %v1576_v35, %v1575_v21  ;;  %v1585_v2 = vrot.slane %v1584_v29, 4  ;;  %v1600_v5 = vsel %vm1032_vm0, %v3712_v54, 0.0 }
 0x12b   :  { %v1545_v41 = vadd.f32 %v1544_v45, %v1543_v37  ;;  %v1553_v24 = vrot.slane %v1552_v50, 1  ;;  %v1570_v52 = vadd.f32 %v1569_v46, %v1568_v51  ;;  %v1594_v28 = vrot.slane %v1593_v0, 4 }
 0x12c   :  { %v1562_v11 = vrot.slane %v1561_v38, 1  ;;  %v1578_v13 = vrot.slane %v1577_v44, 2  ;;  %v1586_v57 = vadd.f32 %v1585_v2, %v1584_v29  ;;  %v1601_v8 = vsel %vm1032_vm0, %v3718_v32, 0.0  ;;  %v4848_v2 = vld [vmem:[#allocation20_spill] sm:$0xff] }
 0x12d   :  { %v1554_v15 = vadd.f32 %v1553_v24, %v1552_v50  ;;  %v1571_v22 = vrot.slane %v1570_v52, 1  ;;  %v1595_v27 = vadd.f32 %v1594_v28, %v1593_v0  ;;  %v1602_v3 = vadd.f32 %v1601_v8, %v1600_v5  ;;  %v4850_v24 = vld [vmem:[#allocation22_spill] sm:$0xff] }
 0x12e   :  { %v1563_v42 = vadd.f32 %v1562_v11, %v1561_v38  ;;  %v1579_v6 = vadd.f32 %v1578_v13, %v1577_v44  ;;  %v1587_v23 = vrot.slane %v1586_v57, 2  ;;  %v3823_v54 = vmul.f32 %v3668_v1, %v3775_v10  ;;  %v4847_v44 = vld [vmem:[#allocation13_spill] sm:$0xff]  ;;  %v4852_v11 = vld [vmem:[#allocation12_spill] sm:$0xff] }
 0x12f   :  { %v1572_v9 = vadd.f32 %v1571_v22, %v1570_v52  ;;  %v1596_v53 = vrot.slane %v1595_v27, 2  ;;  %v1603_v21 = vrot.slane %v1602_v3, 4  ;;  %v3827_v18 = vmul.f32 %v3686_v12, %v3777_v63 }
 0x130   :  { %4834 = vst [vmem:[#allocation30_spill] sm:$0xff] %v3823_v54  ;;  %v1580_v31 = vrot.slane %v1579_v6, 1  ;;  %v1588_v32 = vadd.f32 %v1587_v23, %v1586_v57  ;;  %v3831_v37 = vmul.f32 %v3700_v56, %v3779_v34  ;;  %v3835_v16 = vmul.f32 %v3714_v49, %v3783_v48  ;;  %v4853_v57 = vld [vmem:[#allocation27_spill] sm:$0xff] }
 0x131   :  { %4835 = vst [vmem:[#allocation24_spill] sm:$0xff] %v3827_v18  ;;  %v1597_v51 = vadd.f32 %v1596_v53, %v1595_v27  ;;  %v1604_v10 = vadd.f32 %v1603_v21, %v1602_v3  ;;  %v3839_v36 = vmul.f32 %v3724_v62, %v3787_v43  ;;  %v3843_v63 = vmul.f32 %v3731_v47, %v3791_v4  ;;  %v4856_v53 = vld [vmem:[#allocation31_spill] sm:$0xff] }
 0x132   :  { %4836 = vst [vmem:[#allocation52_spill] sm:$0xff] %v3831_v37  ;;  %4837 = vst [vmem:[#allocation53_spill] sm:$0xff] %v3835_v16  ;;  %v1581_v35 = vadd.f32 %v1580_v31, %v1579_v6  ;;  %v1589_v29 = vrot.slane %v1588_v32, 1  ;;  %v3847_v34 = vmul.f32 %v3737_v14, %v3799_v58  ;;  %v3850_v17 = vmul.f32 %v3743_v25, %v1536_v39  ;;  %v4857_v31 = vld [vmem:[#allocation32_spill] sm:$0xff]  ;;  %v4869_v16 = vld [vmem:[#allocation42_spill] sm:$0xff] }
 0x133   :  { %4838 = vst [vmem:[#allocation54_spill] sm:$0xff] %v3839_v36  ;;  %4839 = vst [vmem:[#allocation55_spill] sm:$0xff] %v3843_v63  ;;  %v1598_v48 = vrot.slane %v1597_v51, 1  ;;  %v1605_v45 = vrot.slane %v1604_v10, 2  ;;  %v3853_v50 = vmul.f32 %v3749_v61, %v1545_v41  ;;  %v3856_v43 = vmul.f32 %v3753_v19, %v1554_v15  ;;  %v4849_v41 = vld [vmem:[#allocation18_spill] sm:$0xff]  ;;  %v4854_v15 = vld [vmem:[#allocation17_spill] sm:$0xff] }
 0x134   :  { %4840 = vst [vmem:[#allocation56_spill] sm:$0xff] %v3847_v34  ;;  %4841 = vst [vmem:[#allocation57_spill] sm:$0xff] %v3850_v17  ;;  %v1590_v46 = vadd.f32 %v1589_v29, %v1588_v32  ;;  %v3859_v4 = vmul.f32 %v3757_v33, %v1563_v42  ;;  %v3862_v0 = vmul.f32 %v3761_v59, %v1572_v9  ;;  %v4859_v29 = vld [vmem:[#allocation34_spill] sm:$0xff]  ;;  %v4867_v17 = vld [vmem:[#allocation40_spill] sm:$0xff] }
 0x135   :  { %4842 = vst [vmem:[#allocation58_spill] sm:$0xff] %v3853_v50  ;;  %4843 = vst [vmem:[#allocation59_spill] sm:$0xff] %v3856_v43  ;;  %v3865_v58 = vmul.f32 %v3763_v40, %v1581_v35  ;;  %v1599_v39 = vadd.f32 %v1598_v48, %v1597_v51  ;;  %v1606_v38 = vadd.f32 %v1605_v45, %v1604_v10  ;;  %v4858_v10 = vld [vmem:[#allocation33_spill] sm:$0xff]  ;;  %v4860_v45 = vld [vmem:[#allocation35_spill] sm:$0xff] }
 0x136   :  { %4844 = vst [vmem:[#allocation60_spill] sm:$0xff] %v3859_v4  ;;  %4845 = vst [vmem:[#allocation61_spill] sm:$0xff] %v3862_v0  ;;  %v1627_v5 = vmul.f32 %v4848_v2, %v4847_v44  ;;  %v1628_v52 = vmul.f32 %v4850_v24, %v4849_v41  ;;  %v3872_v28 = vmul.f32 %v3767_v60, %v1590_v46  ;;  %v4865_v4 = vld [vmem:[#allocation14_spill] sm:$0xff]  ;;  %v4868_v63 = vld [vmem:[#allocation41_spill] sm:$0xff] }
 0x137   :  { %4846 = vst [vmem:[#allocation62_spill] sm:$0xff] %v3865_v58  ;;  %v1629_v13 = vmul.f32 %v4852_v11, %v4847_v44  ;;  %v1630_v8 = vmul.f32 %v4853_v57, %v4849_v41  ;;  %v1631_v22 = vmul.f32 %v4854_v15, %v4847_v44  ;;  %v1607_v27 = vrot.slane %v1606_v38, 1  ;;  %v4863_v58 = vld [vmem:[#allocation38_spill] sm:$0xff]  ;;  %v4870_v37 = vld [vmem:[#allocation43_spill] sm:$0xff] }
 0x138   :  { %4851 = vst [vmem:[#allocation13_spill] sm:$0xff] %v3872_v28  ;;  %v3881_v3 = vmul.f32 %v3769_v20, %v1599_v39  ;;  %v1632_v42 = vmul.f32 %v3476_v30, %v4849_v41  ;;  %v1633_v6 = vmul.f32 %v3478_v26, %v4847_v44  ;;  %v1634_v23 = vmul.f32 %v3488_v55, %v4849_v41  ;;  %v4861_v39 = vld [vmem:[#allocation36_spill] sm:$0xff] }
 0x139   :  { %v1635_v9 = vmul.f32 %v3490_v7, %v4847_v44  ;;  %v1636_v21 = vmul.f32 %v4856_v53, %v4849_v41  ;;  %v1637_v32 = vmul.f32 %v4857_v31, %v4847_v44  ;;  %v1608_v51 = vadd.f32 %v1607_v27, %v1606_v38  ;;  %v4864_v27 = vld [vmem:[#allocation39_spill] sm:$0xff]  ;;  %v4880_v31 = vld [vmem:[#allocation21_spill] sm:$0xff] }
 0x13a   :  { %4855 = vst [vmem:[#allocation18_spill] sm:$0xff] %v3881_v3  ;;  %v1638_v35 = vmul.f32 %v4858_v10, %v4849_v41  ;;  %v1639_v48 = vmul.f32 %v4859_v29, %v4847_v44  ;;  %v1640_v46 = vmul.f32 %v4860_v45, %v4849_v41  ;;  %v3903_v50 = vmul.f32 %v4861_v39, %v4847_v44  ;;  %v4862_v3 = vld [vmem:[#allocation37_spill] sm:$0xff]  ;;  %v4875_v39 = vld [vmem:[#allocation48_spill] sm:$0xff]  ;;  %v4877_v45 = vld [vmem:[#allocation50_spill] sm:$0xff] }
 0x13b   :  { %v3907_v28 = vmul.f32 %v4862_v3, %v4849_v41  ;;  %v3911_v38 = vmul.f32 %v4863_v58, %v4847_v44  ;;  %v3915_v0 = vmul.f32 %v4864_v27, %v4849_v41  ;;  %v3918_v43 = vmul.f32 %v4865_v4, %v1608_v51  ;;  %v4871_v27 = vld [vmem:[#allocation44_spill] sm:$0xff]  ;;  %v4873_v58 = vld [vmem:[#allocation46_spill] sm:$0xff]  ;;  %v4874_v3 = vld [vmem:[#allocation47_spill] sm:$0xff] }
 0x13c   :  { %v3922_v34 = vmul.f32 %v4867_v17, %v4847_v44  ;;  %v3926_v36 = vmul.f32 %v4868_v63, %v4849_v41  ;;  %v3930_v54 = vmul.f32 %v4869_v16, %v4847_v44  ;;  %v3934_v18 = vmul.f32 %v4870_v37, %v4849_v41  ;;  %v4876_v4 = vld [vmem:[#allocation49_spill] sm:$0xff]  ;;  %v4878_v29 = vld [vmem:[#allocation51_spill] sm:$0xff] }
 0x13d   :  { %4866 = vst [vmem:[#allocation63_spill] sm:$0xff] %v3918_v43  ;;  %v3938_v51 = vmul.f32 %v4871_v27, %v4847_v44  ;;  %v4872_v43 = vld [vmem:[#allocation45_spill] sm:$0xff]  ;;  %v3946_v63 = vmul.f32 %v4873_v58, %v4847_v44  ;;  %v3950_v16 = vmul.f32 %v4874_v3, %v4849_v41  ;;  %v3954_v37 = vmul.f32 %v4875_v39, %v4847_v44  ;;  %v4879_v10 = vld [vmem:[#allocation19_spill] sm:$0xff] }
 0x13e   :  { %v3942_v17 = vmul.f32 %v4872_v43, %v4849_v41  ;;  %v3958_v27 = vmul.f32 %v4876_v4, %v4849_v41  ;;  %v3962_v43 = vmul.f32 %v4877_v45, %v4847_v44  ;;  %v3966_v58 = vmul.f32 %v4878_v29, %v4849_v41 }
 0x13f   :  { %v1657_v3 = vsel %vm1032_vm0, %v4879_v10, 0.0  ;;  %v1658_v53 = vsel %vm1032_vm0, %v4880_v31, 0.0  ;;  %v1666_v39 = vsel %vm1032_vm0, %v1627_v5, 0.0  ;;  %v1667_v4 = vsel %vm1032_vm0, %v1628_v52, 0.0 }
 0x140   :  { %v1659_v7 = vadd.f32 %v1658_v53, %v1657_v3  ;;  %v1675_v20 = vsel %vm1032_vm0, %v1629_v13, 0.0  ;;  %v1676_v44 = vsel %vm1032_vm0, %v1630_v8, 0.0  ;;  %v1668_v45 = vadd.f32 %v1667_v4, %v1666_v39 }
 0x141   :  { %v1677_v55 = vadd.f32 %v1676_v44, %v1675_v20  ;;  %v1684_v41 = vsel %vm1032_vm0, %v1631_v22, 0.0  ;;  %v1685_v29 = vsel %vm1032_vm0, %v1632_v42, 0.0  ;;  %v1693_v30 = vsel %vm1032_vm0, %v1633_v6, 0.0 }
 0x142   :  { %v1660_v26 = vrot.slane %v1659_v7, 4  ;;  %v1686_v10 = vadd.f32 %v1685_v29, %v1684_v41  ;;  %v1694_v31 = vsel %vm1032_vm0, %v1634_v23, 0.0  ;;  %v1669_v5 = vrot.slane %v1668_v45, 4 }
 0x143   :  { %v1678_v3 = vrot.slane %v1677_v55, 4  ;;  %v1695_v53 = vadd.f32 %v1694_v31, %v1693_v30  ;;  %v1702_v52 = vsel %vm1032_vm0, %v1635_v9, 0.0  ;;  %v1703_v4 = vsel %vm1032_vm0, %v1636_v21, 0.0 }
 0x144   :  { %v1661_v13 = vadd.f32 %v1660_v26, %v1659_v7  ;;  %v1687_v15 = vrot.slane %v1686_v10, 4  ;;  %v1711_v20 = vsel %vm1032_vm0, %v1637_v32, 0.0  ;;  %v1670_v8 = vadd.f32 %v1669_v5, %v1668_v45 }
 0x145   :  { %v1679_v22 = vadd.f32 %v1678_v3, %v1677_v55  ;;  %v1696_v42 = vrot.slane %v1695_v53, 4  ;;  %v1704_v39 = vadd.f32 %v1703_v4, %v1702_v52  ;;  %v1712_v6 = vsel %vm1032_vm0, %v1638_v35, 0.0 }
 0x146   :  { %v1662_v29 = vrot.slane %v1661_v13, 2  ;;  %v1688_v44 = vadd.f32 %v1687_v15, %v1686_v10  ;;  %v1720_v23 = vsel %vm1032_vm0, %v1639_v48, 0.0  ;;  %v1671_v41 = vrot.slane %v1670_v8, 2 }
 0x147   :  { %v1680_v30 = vrot.slane %v1679_v22, 2  ;;  %v1697_v31 = vadd.f32 %v1696_v42, %v1695_v53  ;;  %v1705_v9 = vrot.slane %v1704_v39, 4  ;;  %v1713_v57 = vadd.f32 %v1712_v6, %v1711_v20 }
 0x148   :  { %v1663_v26 = vadd.f32 %v1662_v29, %v1661_v13  ;;  %v1689_v7 = vrot.slane %v1688_v44, 2  ;;  %v1721_v21 = vsel %vm1032_vm0, %v1640_v46, 0.0  ;;  %v1672_v32 = vadd.f32 %v1671_v41, %v1670_v8 }
 0x149   :  { %v1681_v45 = vadd.f32 %v1680_v30, %v1679_v22  ;;  %v1698_v55 = vrot.slane %v1697_v31, 2  ;;  %v1706_v5 = vadd.f32 %v1705_v9, %v1704_v39  ;;  %v1714_v15 = vrot.slane %v1713_v57, 4 }
 0x14a   :  { %v1664_v3 = vrot.slane %v1663_v26, 1  ;;  %v1690_v52 = vadd.f32 %v1689_v7, %v1688_v44  ;;  %v1722_v10 = vadd.f32 %v1721_v21, %v1720_v23  ;;  %v1673_v35 = vrot.slane %v1672_v32, 1 }
 0x14b   :  { %v1682_v4 = vrot.slane %v1681_v45, 1  ;;  %v1699_v48 = vadd.f32 %v1698_v55, %v1697_v31  ;;  %v1707_v11 = vrot.slane %v1706_v5, 2  ;;  %v1715_v13 = vadd.f32 %v1714_v15, %v1713_v57 }
 0x14c   :  { %v3986_v24 = vadd.f32 %v1664_v3, %v1663_v26  ;;  %v1691_v53 = vrot.slane %v1690_v52, 1  ;;  %v1723_v42 = vrot.slane %v1722_v10, 4  ;;  %v3988_v20 = vadd.f32 %v1673_v35, %v1672_v32 }
 0x14d   :  { %v3990_v46 = vadd.f32 %v1682_v4, %v1681_v45  ;;  %v1700_v8 = vrot.slane %v1699_v48, 1  ;;  %v1708_v22 = vadd.f32 %v1707_v11, %v1706_v5  ;;  %v1716_v29 = vrot.slane %v1715_v13, 2 }
 0x14e   :  { %v3992_v39 = vadd.f32 %v1691_v53, %v1690_v52  ;;  %v1724_v44 = vadd.f32 %v1723_v42, %v1722_v10  ;;  %v1729_v6 = vsel %vm1032_vm0, %v3903_v50, 0.0  ;;  %v1730_v57 = vsel %vm1032_vm0, %v3907_v28, 0.0 }
 0x14f   :  { %v3996_v23 = vadd.f32 %v1700_v8, %v1699_v48  ;;  %v1709_v41 = vrot.slane %v1708_v22, 1  ;;  %v1738_v30 = vsel %vm1032_vm0, %v3911_v38, 0.0  ;;  %v1717_v31 = vadd.f32 %v1716_v29, %v1715_v13 }
 0x150   :  { %v1725_v9 = vrot.slane %v1724_v44, 2  ;;  %v1731_v26 = vadd.f32 %v1730_v57, %v1729_v6  ;;  %v1739_v11 = vsel %vm1032_vm0, %v3915_v0, 0.0  ;;  %v1747_v50 = vsel %vm1032_vm0, %v3922_v34, 0.0 }
 0x151   :  { %v4004_v7 = vadd.f32 %v1709_v41, %v1708_v22  ;;  %v1740_v21 = vadd.f32 %v1739_v11, %v1738_v30  ;;  %v1748_v32 = vsel %vm1032_vm0, %v3926_v36, 0.0  ;;  %v1718_v45 = vrot.slane %v1717_v31, 1 }
 0x152   :  { %v1726_v28 = vadd.f32 %v1725_v9, %v1724_v44  ;;  %v1732_v55 = vrot.slane %v1731_v26, 4  ;;  %v1749_v5 = vadd.f32 %v1748_v32, %v1747_v50  ;;  %v1756_v3 = vsel %vm1032_vm0, %v3930_v54, 0.0 }
 0x153   :  { %v1741_v38 = vrot.slane %v1740_v21, 4  ;;  %v1757_v0 = vsel %vm1032_vm0, %v3934_v18, 0.0  ;;  %v1765_v52 = vsel %vm1032_vm0, %v3938_v51, 0.0  ;;  %v1719_v15 = vadd.f32 %v1718_v45, %v1717_v31 }
 0x154   :  { %v1727_v10 = vrot.slane %v1726_v28, 1  ;;  %v1733_v34 = vadd.f32 %v1732_v55, %v1731_v26  ;;  %v1750_v35 = vrot.slane %v1749_v5, 4  ;;  %v1758_v36 = vadd.f32 %v1757_v0, %v1756_v3 }
 0x155   :  { %v1742_v4 = vadd.f32 %v1741_v38, %v1740_v21  ;;  %v1766_v48 = vsel %vm1032_vm0, %v3942_v17, 0.0  ;;  %v1774_v53 = vsel %vm1032_vm0, %v3946_v63, 0.0  ;;  %v1775_v51 = vsel %vm1032_vm0, %v3950_v16, 0.0 }
 0x156   :  { %v1728_v13 = vadd.f32 %v1727_v10, %v1726_v28  ;;  %v1734_v54 = vrot.slane %v1733_v34, 2  ;;  %v1751_v42 = vadd.f32 %v1750_v35, %v1749_v5  ;;  %v1767_v8 = vadd.f32 %v1766_v48, %v1765_v52 }
 0x157   :  { %v1743_v18 = vrot.slane %v1742_v4, 2  ;;  %v1759_v22 = vrot.slane %v1758_v36, 4  ;;  %v1783_v29 = vsel %vm1032_vm0, %v3954_v37, 0.0  ;;  %v1776_v57 = vadd.f32 %v1775_v51, %v1774_v53 }
 0x158   :  { %v1735_v44 = vadd.f32 %v1734_v54, %v1733_v34  ;;  %v1752_v6 = vrot.slane %v1751_v42, 2  ;;  %v1768_v41 = vrot.slane %v1767_v8, 4  ;;  %v1784_v63 = vsel %vm1032_vm0, %v3958_v27, 0.0 }
 0x159   :  { %v1744_v17 = vadd.f32 %v1743_v18, %v1742_v4  ;;  %v1760_v30 = vadd.f32 %v1759_v22, %v1758_v36  ;;  %v1792_v31 = vsel %vm1032_vm0, %v3962_v43, 0.0  ;;  %v1777_v21 = vrot.slane %v1776_v57, 4 }
 0x15a   :  { %v1736_v9 = vrot.slane %v1735_v44, 1  ;;  %v1753_v26 = vadd.f32 %v1752_v6, %v1751_v42  ;;  %v1769_v11 = vadd.f32 %v1768_v41, %v1767_v8  ;;  %v1785_v32 = vadd.f32 %v1784_v63, %v1783_v29  ;;  %v85_v6 = vld [vmem:[#allocation7 + $0x28] sm:$0xff] }
 0x15b   :  { %v1745_v16 = vrot.slane %v1744_v17, 1  ;;  %v1761_v50 = vrot.slane %v1760_v30, 2  ;;  %v1793_v37 = vsel %vm1032_vm0, %v3966_v58, 0.0  ;;  %v1778_v5 = vadd.f32 %v1777_v21, %v1776_v57  ;;  %v4896_v21 = vld [vmem:[#allocation29_spill] sm:$0xff] }
 0x15c   :  { %v1737_v45 = vadd.f32 %v1736_v9, %v1735_v44  ;;  %v1754_v28 = vrot.slane %v1753_v26, 1  ;;  %v1770_v55 = vrot.slane %v1769_v11, 2  ;;  %v1786_v27 = vrot.slane %v1785_v32, 4  ;;  %v84_v44 = vld [vmem:[#allocation7 + $0x20] sm:$0xff] }
 0x15d   :  { %v1746_v38 = vadd.f32 %v1745_v16, %v1744_v17  ;;  %v1762_v3 = vadd.f32 %v1761_v50, %v1760_v30  ;;  %v1794_v0 = vadd.f32 %v1793_v37, %v1792_v31  ;;  %v1779_v10 = vrot.slane %v1778_v5, 2 }
 0x15e   :  { %v1755_v52 = vadd.f32 %v1754_v28, %v1753_v26  ;;  %v1771_v43 = vadd.f32 %v1770_v55, %v1769_v11  ;;  %v4032_v34 = vmul.f32 %v3668_v1, %v3986_v24  ;;  %v1787_v4 = vadd.f32 %v1786_v27, %v1785_v32  ;;  %v4897_v32 = vld [vmem:[#allocation22_spill] sm:$0xff]  ;;  %v4898_v55 = vld [vmem:[#allocation12_spill] sm:$0xff]  ;;  %v4900_v27 = vld [vmem:[#allocation17_spill] sm:$0xff] }
 0x15f   :  { %v1763_v35 = vrot.slane %v1762_v3, 1  ;;  %v1795_v36 = vrot.slane %v1794_v0, 4  ;;  %v4036_v58 = vmul.f32 %v3686_v12, %v3988_v20  ;;  %v1780_v53 = vadd.f32 %v1779_v10, %v1778_v5  ;;  %v4902_v10 = vld [vmem:[#allocation23_spill] sm:$0xff] }
 0x160   :  { %4881 = vst [vmem:[#allocation19_spill] sm:$0xff] %v4032_v34  ;;  %v1772_v48 = vrot.slane %v1771_v43, 1  ;;  %v4040_v54 = vmul.f32 %v3700_v56, %v3990_v46  ;;  %v4044_v42 = vmul.f32 %v3714_v49, %v3992_v39  ;;  %v1788_v24 = vrot.slane %v1787_v4, 2  ;;  %v4917_v34 = vld [vmem:[#allocation39_spill] sm:$0xff] }
 0x161   :  { %4882 = vst [vmem:[#allocation21_spill] sm:$0xff] %v4036_v58  ;;  %v1764_v8 = vadd.f32 %v1763_v35, %v1762_v3  ;;  %v1796_v18 = vadd.f32 %v1795_v36, %v1794_v0  ;;  %v4048_v22 = vmul.f32 %v3724_v62, %v3996_v23  ;;  %v1781_v20 = vrot.slane %v1780_v53, 1 }
 0x162   :  { %4883 = vst [vmem:[#allocation64_spill] sm:$0xff] %v4040_v54  ;;  %4884 = vst [vmem:[#allocation65_spill] sm:$0xff] %v4044_v42  ;;  %v1773_v51 = vadd.f32 %v1772_v48, %v1771_v43  ;;  %v4052_v29 = vmul.f32 %v3731_v47, %v4004_v7  ;;  %v4055_v46 = vmul.f32 %v3737_v14, %v1719_v15  ;;  %v4919_v54 = vld [vmem:[#allocation41_spill] sm:$0xff] }
 0x163   :  { %4885 = vst [vmem:[#allocation66_spill] sm:$0xff] %v4048_v22  ;;  %v1789_v39 = vadd.f32 %v1788_v24, %v1787_v4  ;;  %v1797_v41 = vrot.slane %v1796_v18, 2  ;;  %v4058_v57 = vmul.f32 %v3743_v25, %v1728_v13  ;;  %v4061_v17 = vmul.f32 %v3749_v61, %v1737_v45  ;;  %v4894_v13 = vld [vmem:[#allocation28_spill] sm:$0xff]  ;;  %v4903_v4 = vld [vmem:[#allocation25_spill] sm:$0xff]  ;;  %v4906_v24 = vld [vmem:[#allocation26_spill] sm:$0xff] }
 0x164   :  { %4886 = vst [vmem:[#allocation67_spill] sm:$0xff] %v4052_v29  ;;  %4887 = vst [vmem:[#allocation68_spill] sm:$0xff] %v4055_v46  ;;  %v1782_v23 = vadd.f32 %v1781_v20, %v1780_v53  ;;  %v4064_v30 = vmul.f32 %v3753_v19, %v1746_v38  ;;  %v4067_v7 = vmul.f32 %v3757_v33, %v1755_v52  ;;  %v4899_v38 = vld [vmem:[#allocation27_spill] sm:$0xff]  ;;  %v4904_v53 = vld [vmem:[#allocation16_spill] sm:$0xff] }
 0x165   :  { %4888 = vst [vmem:[#allocation69_spill] sm:$0xff] %v4058_v57  ;;  %4889 = vst [vmem:[#allocation70_spill] sm:$0xff] %v4061_v17  ;;  %v4070_v15 = vmul.f32 %v3761_v59, %v1764_v8  ;;  %v1790_v63 = vrot.slane %v1789_v39, 1  ;;  %v1798_v31 = vadd.f32 %v1797_v41, %v1796_v18  ;;  %v4073_v9 = vmul.f32 %v3763_v40, %v1773_v51  ;;  %v4901_v52 = vld [vmem:[#allocation15_spill] sm:$0xff]  ;;  %v4914_v57 = vld [vmem:[#allocation36_spill] sm:$0xff] }
 0x166   :  { %4890 = vst [vmem:[#allocation71_spill] sm:$0xff] %v4064_v30  ;;  %4891 = vst [vmem:[#allocation72_spill] sm:$0xff] %v4067_v7  ;;  %v1817_v26 = vmul.f32 %v4894_v13, %v84_v44  ;;  %v4077_v11 = vmul.f32 %v3767_v60, %v1782_v23  ;;  %v1818_v16 = vmul.f32 %v4896_v21, %v85_v6  ;;  %v4907_v51 = vld [vmem:[#allocation31_spill] sm:$0xff]  ;;  %v4909_v23 = vld [vmem:[#allocation33_spill] sm:$0xff] }
 0x167   :  { %4892 = vst [vmem:[#allocation73_spill] sm:$0xff] %v4070_v15  ;;  %4893 = vst [vmem:[#allocation74_spill] sm:$0xff] %v4073_v9  ;;  %v1819_v50 = vmul.f32 %v4848_v2, %v84_v44  ;;  %v1820_v37 = vmul.f32 %v4897_v32, %v85_v6  ;;  %v1791_v45 = vadd.f32 %v1790_v63, %v1789_v39  ;;  %v1799_v28 = vrot.slane %v1798_v31, 1  ;;  %v4908_v39 = vld [vmem:[#allocation32_spill] sm:$0xff]  ;;  %v4911_v9 = vld [vmem:[#allocation35_spill] sm:$0xff] }
 0x168   :  { %4895 = vst [vmem:[#allocation28_spill] sm:$0xff] %v4077_v11  ;;  %v1821_v5 = vmul.f32 %v4898_v55, %v84_v44  ;;  %v1822_v3 = vmul.f32 %v4899_v38, %v85_v6  ;;  %v1823_v0 = vmul.f32 %v4900_v27, %v84_v44  ;;  %v1824_v43 = vmul.f32 %v4901_v52, %v85_v6  ;;  %v4910_v11 = vld [vmem:[#allocation34_spill] sm:$0xff]  ;;  %v4918_v22 = vld [vmem:[#allocation40_spill] sm:$0xff] }
 0x169   :  { %v1825_v35 = vmul.f32 %v4902_v10, %v84_v44  ;;  %v1826_v36 = vmul.f32 %v4903_v4, %v85_v6  ;;  %v1800_v48 = vadd.f32 %v1799_v28, %v1798_v31  ;;  %v4089_v8 = vmul.f32 %v4904_v53, %v1791_v45  ;;  %v4912_v7 = vld [vmem:[#allocation14_spill] sm:$0xff]  ;;  %v4915_v45 = vld [vmem:[#allocation37_spill] sm:$0xff] }
 0x16a   :  { %v1827_v18 = vmul.f32 %v4906_v24, %v84_v44  ;;  %v1828_v20 = vmul.f32 %v4907_v51, %v85_v6  ;;  %v1829_v41 = vmul.f32 %v4908_v39, %v84_v44  ;;  %v1830_v63 = vmul.f32 %v4909_v23, %v85_v6 }
 0x16b   :  { %4905 = vst [vmem:[#allocation75_spill] sm:$0xff] %v4089_v8  ;;  %v1831_v17 = vmul.f32 %v4910_v11, %v84_v44  ;;  %v1832_v15 = vmul.f32 %v4911_v9, %v85_v6  ;;  %v4098_v30 = vmul.f32 %v4912_v7, %v1800_v48  ;;  %v4101_v31 = vmul.f32 %v4914_v57, %v84_v44  ;;  %v4916_v8 = vld [vmem:[#allocation38_spill] sm:$0xff]  ;;  %v4921_v57 = vld [vmem:[#allocation43_spill] sm:$0xff] }
 0x16c   :  { %v4104_v28 = vmul.f32 %v4915_v45, %v85_v6  ;;  %v4107_v46 = vmul.f32 %v4916_v8, %v84_v44  ;;  %v4110_v29 = vmul.f32 %v4917_v34, %v85_v6  ;;  %v4113_v42 = vmul.f32 %v4918_v22, %v84_v44  ;;  %v4920_v48 = vld [vmem:[#allocation42_spill] sm:$0xff]  ;;  %v4922_v45 = vld [vmem:[#allocation44_spill] sm:$0xff]  ;;  %v4923_v8 = vld [vmem:[#allocation45_spill] sm:$0xff] }
 0x16d   :  { %4913 = vst [vmem:[#allocation76_spill] sm:$0xff] %v4098_v30  ;;  %v4116_v58 = vmul.f32 %v4919_v54, %v85_v6  ;;  %v4119_v30 = vmul.f32 %v4920_v48, %v84_v44  ;;  %v4122_v7 = vmul.f32 %v4921_v57, %v85_v6  ;;  %v4125_v9 = vmul.f32 %v4922_v45, %v84_v44  ;;  %v4924_v34 = vld [vmem:[#allocation46_spill] sm:$0xff]  ;;  %v4925_v22 = vld [vmem:[#allocation47_spill] sm:$0xff]  ;;  %v4926_v54 = vld [vmem:[#allocation48_spill] sm:$0xff] }
 0x16e   :  { %v4128_v11 = vmul.f32 %v4923_v8, %v85_v6  ;;  %v4131_v23 = vmul.f32 %v4924_v34, %v84_v44  ;;  %v4134_v39 = vmul.f32 %v4925_v22, %v85_v6  ;;  %v4137_v51 = vmul.f32 %v4926_v54, %v84_v44  ;;  %v4927_v48 = vld [vmem:[#allocation49_spill] sm:$0xff]  ;;  %v4928_v57 = vld [vmem:[#allocation50_spill] sm:$0xff]  ;;  %v4929_v45 = vld [vmem:[#allocation51_spill] sm:$0xff] }
 0x16f   :  { %v4140_v24 = vmul.f32 %v4927_v48, %v85_v6  ;;  %v4143_v53 = vmul.f32 %v4928_v57, %v84_v44  ;;  %v4146_v4 = vmul.f32 %v4929_v45, %v85_v6  ;;  %v1849_v8 = vsel %vm1032_vm0, %v1817_v26, 0.0 }
 0x170   :  { %v1850_v34 = vsel %vm1032_vm0, %v1818_v16, 0.0  ;;  %v1858_v10 = vsel %vm1032_vm0, %v1819_v50, 0.0  ;;  %v1859_v52 = vsel %vm1032_vm0, %v1820_v37, 0.0  ;;  %v1867_v54 = vsel %vm1032_vm0, %v1821_v5, 0.0 }
 0x171   :  { %v1851_v22 = vadd.f32 %v1850_v34, %v1849_v8  ;;  %v1868_v48 = vsel %vm1032_vm0, %v1822_v3, 0.0  ;;  %v1860_v27 = vadd.f32 %v1859_v52, %v1858_v10  ;;  %v1876_v44 = vsel %vm1032_vm0, %v1823_v0, 0.0 }
 0x172   :  { %v1869_v38 = vadd.f32 %v1868_v48, %v1867_v54  ;;  %v1877_v6 = vsel %vm1032_vm0, %v1824_v43, 0.0  ;;  %v1885_v26 = vsel %vm1032_vm0, %v1825_v35, 0.0  ;;  %v1886_v16 = vsel %vm1032_vm0, %v1826_v36, 0.0 }
 0x173   :  { %v1852_v45 = vrot.slane %v1851_v22, 4  ;;  %v1878_v57 = vadd.f32 %v1877_v6, %v1876_v44  ;;  %v1861_v50 = vrot.slane %v1860_v27, 4  ;;  %v1887_v8 = vadd.f32 %v1886_v16, %v1885_v26 }
 0x174   :  { %v1870_v34 = vrot.slane %v1869_v38, 4  ;;  %v1894_v37 = vsel %vm1032_vm0, %v1827_v18, 0.0  ;;  %v1895_v3 = vsel %vm1032_vm0, %v1828_v20, 0.0  ;;  %v1903_v54 = vsel %vm1032_vm0, %v1829_v41, 0.0 }
 0x175   :  { %v1853_v5 = vadd.f32 %v1852_v45, %v1851_v22  ;;  %v1879_v55 = vrot.slane %v1878_v57, 4  ;;  %v1862_v0 = vadd.f32 %v1861_v50, %v1860_v27  ;;  %v1888_v43 = vrot.slane %v1887_v8, 4 }
 0x176   :  { %v1871_v52 = vadd.f32 %v1870_v34, %v1869_v38  ;;  %v1896_v10 = vadd.f32 %v1895_v3, %v1894_v37  ;;  %v1904_v35 = vsel %vm1032_vm0, %v1830_v63, 0.0  ;;  %v1912_v36 = vsel %vm1032_vm0, %v1831_v17, 0.0 }
 0x177   :  { %v1854_v48 = vrot.slane %v1853_v5, 2  ;;  %v1880_v44 = vadd.f32 %v1879_v55, %v1878_v57  ;;  %v1863_v6 = vrot.slane %v1862_v0, 2  ;;  %v1889_v16 = vadd.f32 %v1888_v43, %v1887_v8 }
 0x178   :  { %v1872_v26 = vrot.slane %v1871_v52, 2  ;;  %v1897_v18 = vrot.slane %v1896_v10, 4  ;;  %v1905_v32 = vadd.f32 %v1904_v35, %v1903_v54  ;;  %v1913_v20 = vsel %vm1032_vm0, %v1832_v15, 0.0 }
 0x179   :  { %v1855_v22 = vadd.f32 %v1854_v48, %v1853_v5  ;;  %v1881_v45 = vrot.slane %v1880_v44, 2  ;;  %v1864_v41 = vadd.f32 %v1863_v6, %v1862_v0  ;;  %v1890_v38 = vrot.slane %v1889_v16, 2 }
 0x17a   :  { %v1873_v27 = vadd.f32 %v1872_v26, %v1871_v52  ;;  %v1898_v50 = vadd.f32 %v1897_v18, %v1896_v10  ;;  %v1906_v57 = vrot.slane %v1905_v32, 4  ;;  %v1914_v55 = vadd.f32 %v1913_v20, %v1912_v36 }
 0x17b   :  { %v1856_v34 = vrot.slane %v1855_v22, 1  ;;  %v1882_v37 = vadd.f32 %v1881_v45, %v1880_v44  ;;  %v1865_v63 = vrot.slane %v1864_v41, 1  ;;  %v1891_v17 = vadd.f32 %v1890_v38, %v1889_v16 }
 0x17c   :  { %v1874_v3 = vrot.slane %v1873_v27, 1  ;;  %v1899_v2 = vrot.slane %v1898_v50, 2  ;;  %v1907_v5 = vadd.f32 %v1906_v57, %v1905_v32  ;;  %v1915_v43 = vrot.slane %v1914_v55, 4 }
 0x17d   :  { %v4164_v21 = vadd.f32 %v1856_v34, %v1855_v22  ;;  %v1883_v8 = vrot.slane %v1882_v37, 1  ;;  %v4166_v54 = vadd.f32 %v1865_v63, %v1864_v41  ;;  %v1892_v0 = vrot.slane %v1891_v17, 1 }
 0x17e   :  { %v4168_v15 = vadd.f32 %v1874_v3, %v1873_v27  ;;  %v1900_v52 = vadd.f32 %v1899_v2, %v1898_v50  ;;  %v1908_v48 = vrot.slane %v1907_v5, 2  ;;  %v1916_v44 = vadd.f32 %v1915_v43, %v1914_v55 }
 0x17f   :  { %v4170_v10 = vadd.f32 %v1883_v8, %v1882_v37  ;;  %v1921_v35 = vsel %vm1032_vm0, %v4101_v31, 0.0  ;;  %v4174_v36 = vadd.f32 %v1892_v0, %v1891_v17  ;;  %v1922_v32 = vsel %vm1032_vm0, %v4104_v28, 0.0 }
 0x180   :  { %v1901_v6 = vrot.slane %v1900_v52, 1  ;;  %v1930_v26 = vsel %vm1032_vm0, %v4107_v46, 0.0  ;;  %v1909_v16 = vadd.f32 %v1908_v48, %v1907_v5  ;;  %v1917_v18 = vrot.slane %v1916_v44, 2 }
 0x181   :  { %v1923_v22 = vadd.f32 %v1922_v32, %v1921_v35  ;;  %v1931_v2 = vsel %vm1032_vm0, %v4110_v29, 0.0  ;;  %v1939_v31 = vsel %vm1032_vm0, %v4113_v42, 0.0  ;;  %v1940_v41 = vsel %vm1032_vm0, %v4116_v58, 0.0 }
 0x182   :  { %v4182_v45 = vadd.f32 %v1901_v6, %v1900_v52  ;;  %v1932_v20 = vadd.f32 %v1931_v2, %v1930_v26  ;;  %v1910_v27 = vrot.slane %v1909_v16, 1  ;;  %v1918_v28 = vadd.f32 %v1917_v18, %v1916_v44 }
 0x183   :  { %v1924_v38 = vrot.slane %v1923_v22, 4  ;;  %v1941_v50 = vadd.f32 %v1940_v41, %v1939_v31  ;;  %v1948_v34 = vsel %vm1032_vm0, %v4119_v30, 0.0  ;;  %v1949_v29 = vsel %vm1032_vm0, %v4122_v7, 0.0 }
 0x184   :  { %v1933_v46 = vrot.slane %v1932_v20, 4  ;;  %v1957_v37 = vsel %vm1032_vm0, %v4125_v9, 0.0  ;;  %v1911_v57 = vadd.f32 %v1910_v27, %v1909_v16  ;;  %v1919_v55 = vrot.slane %v1918_v28, 1 }
 0x185   :  { %v1925_v42 = vadd.f32 %v1924_v38, %v1923_v22  ;;  %v1942_v63 = vrot.slane %v1941_v50, 4  ;;  %v1950_v58 = vadd.f32 %v1949_v29, %v1948_v34  ;;  %v1958_v17 = vsel %vm1032_vm0, %v4128_v11, 0.0 }
 0x186   :  { %v1934_v3 = vadd.f32 %v1933_v46, %v1932_v20  ;;  %v1966_v8 = vsel %vm1032_vm0, %v4131_v23, 0.0  ;;  %v1920_v5 = vadd.f32 %v1919_v55, %v1918_v28  ;;  %v1959_v0 = vadd.f32 %v1958_v17, %v1957_v37 }
 0x187   :  { %v1926_v30 = vrot.slane %v1925_v42, 2  ;;  %v1943_v43 = vadd.f32 %v1942_v63, %v1941_v50  ;;  %v1951_v52 = vrot.slane %v1950_v58, 4  ;;  %v1967_v9 = vsel %vm1032_vm0, %v4134_v39, 0.0 }
 0x188   :  { %v1935_v7 = vrot.slane %v1934_v3, 2  ;;  %v1975_v48 = vsel %vm1032_vm0, %v4137_v51, 0.0  ;;  %v1960_v6 = vrot.slane %v1959_v0, 4  ;;  %v1968_v32 = vadd.f32 %v1967_v9, %v1966_v8 }
 0x189   :  { %v1927_v44 = vadd.f32 %v1926_v30, %v1925_v42  ;;  %v1944_v35 = vrot.slane %v1943_v43, 2  ;;  %v1952_v26 = vadd.f32 %v1951_v52, %v1950_v58  ;;  %v1976_v23 = vsel %vm1032_vm0, %v4140_v24, 0.0 }
 0x18a   :  { %v1936_v11 = vadd.f32 %v1935_v7, %v1934_v3  ;;  %v1984_v16 = vsel %vm1032_vm0, %v4143_v53, 0.0  ;;  %v1961_v2 = vadd.f32 %v1960_v6, %v1959_v0  ;;  %v1969_v20 = vrot.slane %v1968_v32, 4 }
 0x18b   :  { %v1928_v18 = vrot.slane %v1927_v44, 1  ;;  %v1945_v22 = vadd.f32 %v1944_v35, %v1943_v43  ;;  %v1953_v31 = vrot.slane %v1952_v26, 2  ;;  %v1977_v41 = vadd.f32 %v1976_v23, %v1975_v48  ;;  %v87_v35 = vld [vmem:[#allocation7 + $0x38] sm:$0xff] }
 0x18c   :  { %v1937_v39 = vrot.slane %v1936_v11, 1  ;;  %v1985_v51 = vsel %vm1032_vm0, %v4146_v4, 0.0  ;;  %v1962_v38 = vrot.slane %v1961_v2, 2  ;;  %v1970_v50 = vadd.f32 %v1969_v20, %v1968_v32 }
 0x18d   :  { %v1929_v27 = vadd.f32 %v1928_v18, %v1927_v44  ;;  %v1946_v28 = vrot.slane %v1945_v22, 1  ;;  %v1954_v34 = vadd.f32 %v1953_v31, %v1952_v26  ;;  %v1978_v24 = vrot.slane %v1977_v41, 4  ;;  %v86_v44 = vld [vmem:[#allocation7 + $0x30] sm:$0xff] }
 0x18e   :  { %v1938_v46 = vadd.f32 %v1937_v39, %v1936_v11  ;;  %v1986_v29 = vadd.f32 %v1985_v51, %v1984_v16  ;;  %v1963_v53 = vadd.f32 %v1962_v38, %v1961_v2  ;;  %v1971_v55 = vrot.slane %v1970_v50, 2  ;;  %v4944_v2 = vld [vmem:[#allocation29_spill] sm:$0xff]  ;;  %v4945_v39 = vld [vmem:[#allocation20_spill] sm:$0xff] }
 0x18f   :  { %v1947_v37 = vadd.f32 %v1946_v28, %v1945_v22  ;;  %v4210_v42 = vmul.f32 %v3668_v1, %v4164_v21  ;;  %v1955_v63 = vrot.slane %v1954_v34, 1  ;;  %v1979_v3 = vadd.f32 %v1978_v24, %v1977_v41  ;;  %v4946_v41 = vld [vmem:[#allocation22_spill] sm:$0xff]  ;;  %v4947_v38 = vld [vmem:[#allocation12_spill] sm:$0xff]  ;;  %v4949_v24 = vld [vmem:[#allocation17_spill] sm:$0xff] }
 0x190   :  { %v1987_v58 = vrot.slane %v1986_v29, 4  ;;  %v4214_v4 = vmul.f32 %v3686_v12, %v4166_v54  ;;  %v1964_v17 = vrot.slane %v1963_v53, 1  ;;  %v1972_v8 = vadd.f32 %v1971_v55, %v1970_v50 }
 0x191   :  { %4930 = vst [vmem:[#allocation77_spill] sm:$0xff] %v4210_v42  ;;  %v4218_v30 = vmul.f32 %v3700_v56, %v4168_v15  ;;  %v4222_v43 = vmul.f32 %v3714_v49, %v4170_v10  ;;  %v1956_v0 = vadd.f32 %v1955_v63, %v1954_v34  ;;  %v1980_v21 = vrot.slane %v1979_v3, 2  ;;  %v4952_v63 = vld [vmem:[#allocation25_spill] sm:$0xff] }
 0x192   :  { %4931 = vst [vmem:[#allocation78_spill] sm:$0xff] %v4214_v4  ;;  %v1988_v7 = vadd.f32 %v1987_v58, %v1986_v29  ;;  %v4226_v52 = vmul.f32 %v3724_v62, %v4174_v36  ;;  %v1965_v9 = vadd.f32 %v1964_v17, %v1963_v53  ;;  %v1973_v54 = vrot.slane %v1972_v8, 1  ;;  %v4953_v17 = vld [vmem:[#allocation16_spill] sm:$0xff] }
 0x193   :  { %4932 = vst [vmem:[#allocation79_spill] sm:$0xff] %v4218_v30  ;;  %4933 = vst [vmem:[#allocation80_spill] sm:$0xff] %v4222_v43  ;;  %v4230_v48 = vmul.f32 %v3731_v47, %v4182_v45  ;;  %v4233_v15 = vmul.f32 %v3737_v14, %v1911_v57  ;;  %v1981_v10 = vadd.f32 %v1980_v21, %v1979_v3 }
 0x194   :  { %4934 = vst [vmem:[#allocation81_spill] sm:$0xff] %v4226_v52  ;;  %v1989_v6 = vrot.slane %v1988_v7, 2  ;;  %v4236_v32 = vmul.f32 %v3743_v25, %v1920_v5  ;;  %v4239_v11 = vmul.f32 %v3749_v61, %v1929_v27  ;;  %v1974_v36 = vadd.f32 %v1973_v54, %v1972_v8  ;;  %v4957_v54 = vld [vmem:[#allocation32_spill] sm:$0xff] }
 0x195   :  { %4935 = vst [vmem:[#allocation82_spill] sm:$0xff] %v4230_v48  ;;  %4936 = vst [vmem:[#allocation83_spill] sm:$0xff] %v4233_v15  ;;  %v4242_v26 = vmul.f32 %v3753_v19, %v1938_v46  ;;  %v4245_v45 = vmul.f32 %v3757_v33, %v1947_v37  ;;  %v4248_v57 = vmul.f32 %v3761_v59, %v1956_v0  ;;  %v1982_v23 = vrot.slane %v1981_v10, 1  ;;  %v4948_v46 = vld [vmem:[#allocation27_spill] sm:$0xff]  ;;  %v4955_v0 = vld [vmem:[#allocation26_spill] sm:$0xff] }
 0x196   :  { %4937 = vst [vmem:[#allocation84_spill] sm:$0xff] %v4236_v32  ;;  %4938 = vst [vmem:[#allocation85_spill] sm:$0xff] %v4239_v11  ;;  %v1990_v16 = vadd.f32 %v1989_v6, %v1988_v7  ;;  %v4251_v18 = vmul.f32 %v3763_v40, %v1965_v9  ;;  %v2009_v5 = vmul.f32 %v4894_v13, %v86_v44  ;;  %v4950_v37 = vld [vmem:[#allocation15_spill] sm:$0xff]  ;;  %v4958_v6 = vld [vmem:[#allocation33_spill] sm:$0xff] }
 0x197   :  { %4939 = vst [vmem:[#allocation86_spill] sm:$0xff] %v4242_v26  ;;  %4940 = vst [vmem:[#allocation87_spill] sm:$0xff] %v4245_v45  ;;  %v4255_v22 = vmul.f32 %v3767_v60, %v1974_v36  ;;  %v2010_v20 = vmul.f32 %v4944_v2, %v87_v35  ;;  %v2011_v31 = vmul.f32 %v4945_v39, %v86_v44  ;;  %v4951_v13 = vld [vmem:[#allocation23_spill] sm:$0xff] }
 0x198   :  { %4941 = vst [vmem:[#allocation88_spill] sm:$0xff] %v4248_v57  ;;  %4942 = vst [vmem:[#allocation89_spill] sm:$0xff] %v4251_v18  ;;  %v2012_v51 = vmul.f32 %v4946_v41, %v87_v35  ;;  %v1983_v27 = vadd.f32 %v1982_v23, %v1981_v10  ;;  %v1991_v28 = vrot.slane %v1990_v16, 1  ;;  %v2013_v50 = vmul.f32 %v4947_v38, %v86_v44  ;;  %v4956_v7 = vld [vmem:[#allocation31_spill] sm:$0xff]  ;;  %v4959_v23 = vld [vmem:[#allocation34_spill] sm:$0xff] }
 0x199   :  { %4943 = vst [vmem:[#allocation90_spill] sm:$0xff] %v4255_v22  ;;  %v2014_v34 = vmul.f32 %v4948_v46, %v87_v35  ;;  %v2015_v29 = vmul.f32 %v4949_v24, %v86_v44  ;;  %v2016_v53 = vmul.f32 %v4950_v37, %v87_v35  ;;  %v2017_v55 = vmul.f32 %v4951_v13, %v86_v44  ;;  %v4960_v39 = vld [vmem:[#allocation35_spill] sm:$0xff]  ;;  %v4961_v38 = vld [vmem:[#allocation14_spill] sm:$0xff]  ;;  %v4963_v24 = vld [vmem:[#allocation36_spill] sm:$0xff] }
 0x19a   :  { %v2018_v3 = vmul.f32 %v4952_v63, %v87_v35  ;;  %v1992_v58 = vadd.f32 %v1991_v28, %v1990_v16  ;;  %v4267_v8 = vmul.f32 %v4953_v17, %v1983_v27  ;;  %v2019_v21 = vmul.f32 %v4955_v0, %v86_v44  ;;  %v4964_v27 = vld [vmem:[#allocation37_spill] sm:$0xff]  ;;  %v4965_v37 = vld [vmem:[#allocation38_spill] sm:$0xff]  ;;  %v4966_v63 = vld [vmem:[#allocation39_spill] sm:$0xff] }
 0x19b   :  { %v2020_v9 = vmul.f32 %v4956_v7, %v87_v35  ;;  %v2021_v10 = vmul.f32 %v4957_v54, %v86_v44  ;;  %v2022_v36 = vmul.f32 %v4958_v6, %v87_v35  ;;  %v2023_v2 = vmul.f32 %v4959_v23, %v86_v44  ;;  %v4967_v7 = vld [vmem:[#allocation40_spill] sm:$0xff]  ;;  %v4968_v6 = vld [vmem:[#allocation41_spill] sm:$0xff] }
 0x19c   :  { %4954 = vst [vmem:[#allocation29_spill] sm:$0xff] %v4267_v8  ;;  %v2024_v41 = vmul.f32 %v4960_v39, %v87_v35  ;;  %v4276_v46 = vmul.f32 %v4961_v38, %v1992_v58  ;;  %v4279_v16 = vmul.f32 %v4963_v24, %v86_v44  ;;  %v4282_v28 = vmul.f32 %v4964_v27, %v87_v35  ;;  %v4969_v58 = vld [vmem:[#allocation42_spill] sm:$0xff]  ;;  %v4970_v24 = vld [vmem:[#allocation43_spill] sm:$0xff]  ;;  %v4971_v27 = vld [vmem:[#allocation44_spill] sm:$0xff] }
 0x19d   :  { %v4285_v13 = vmul.f32 %v4965_v37, %v86_v44  ;;  %v4288_v0 = vmul.f32 %v4966_v63, %v87_v35  ;;  %v4291_v54 = vmul.f32 %v4967_v7, %v86_v44  ;;  %v4294_v23 = vmul.f32 %v4968_v6, %v87_v35  ;;  %v4972_v37 = vld [vmem:[#allocation45_spill] sm:$0xff]  ;;  %v4973_v63 = vld [vmem:[#allocation46_spill] sm:$0xff]  ;;  %v4974_v7 = vld [vmem:[#allocation47_spill] sm:$0xff] }
 0x19e   :  { %4962 = vst [vmem:[#allocation20_spill] sm:$0xff] %v4276_v46  ;;  %v4297_v39 = vmul.f32 %v4969_v58, %v86_v44  ;;  %v4300_v46 = vmul.f32 %v4970_v24, %v87_v35  ;;  %v4303_v8 = vmul.f32 %v4971_v27, %v86_v44  ;;  %v4306_v11 = vmul.f32 %v4972_v37, %v87_v35  ;;  %v4975_v6 = vld [vmem:[#allocation48_spill] sm:$0xff]  ;;  %v4976_v58 = vld [vmem:[#allocation49_spill] sm:$0xff]  ;;  %v4977_v24 = vld [vmem:[#allocation50_spill] sm:$0xff] }
 0x19f   :  { %v4309_v22 = vmul.f32 %v4973_v63, %v86_v44  ;;  %v4312_v18 = vmul.f32 %v4974_v7, %v87_v35  ;;  %v4315_v57 = vmul.f32 %v4975_v6, %v86_v44  ;;  %v4318_v45 = vmul.f32 %v4976_v58, %v87_v35  ;;  %v4978_v27 = vld [vmem:[#allocation51_spill] sm:$0xff] }
 0x1a0   :  { %v4321_v26 = vmul.f32 %v4977_v24, %v86_v44  ;;  %v4324_v32 = vmul.f32 %v4978_v27, %v87_v35  ;;  %v2041_v37 = vsel %vm1032_vm0, %v2009_v5, 0.0  ;;  %v2042_v63 = vsel %vm1032_vm0, %v2010_v20, 0.0 }
 0x1a1   :  { %v2050_v15 = vsel %vm1032_vm0, %v2011_v31, 0.0  ;;  %v2043_v7 = vadd.f32 %v2042_v63, %v2041_v37  ;;  %v2051_v48 = vsel %vm1032_vm0, %v2012_v51, 0.0  ;;  %v2059_v6 = vsel %vm1032_vm0, %v2013_v50, 0.0 }
 0x1a2   :  { %v2060_v58 = vsel %vm1032_vm0, %v2014_v34, 0.0  ;;  %v2052_v52 = vadd.f32 %v2051_v48, %v2050_v15  ;;  %v2068_v44 = vsel %vm1032_vm0, %v2015_v29, 0.0  ;;  %v2069_v35 = vsel %vm1032_vm0, %v2016_v53, 0.0 }
 0x1a3   :  { %v2061_v42 = vadd.f32 %v2060_v58, %v2059_v6  ;;  %v2044_v24 = vrot.slane %v2043_v7, 4  ;;  %v2070_v27 = vadd.f32 %v2069_v35, %v2068_v44  ;;  %v2077_v5 = vsel %vm1032_vm0, %v2017_v55, 0.0 }
 0x1a4   :  { %v2078_v20 = vsel %vm1032_vm0, %v2018_v3, 0.0  ;;  %v2053_v31 = vrot.slane %v2052_v52, 4  ;;  %v2086_v51 = vsel %vm1032_vm0, %v2019_v21, 0.0  ;;  %v2087_v48 = vsel %vm1032_vm0, %v2020_v9, 0.0 }
 0x1a5   :  { %v2062_v37 = vrot.slane %v2061_v42, 4  ;;  %v2079_v63 = vadd.f32 %v2078_v20, %v2077_v5  ;;  %v2045_v50 = vadd.f32 %v2044_v24, %v2043_v7  ;;  %v2071_v43 = vrot.slane %v2070_v27, 4 }
 0x1a6   :  { %v2095_v15 = vsel %vm1032_vm0, %v2021_v10, 0.0  ;;  %v2054_v34 = vadd.f32 %v2053_v31, %v2052_v52  ;;  %v2088_v6 = vadd.f32 %v2087_v48, %v2086_v51  ;;  %v2096_v55 = vsel %vm1032_vm0, %v2022_v36, 0.0 }
 0x1a7   :  { %v2063_v29 = vadd.f32 %v2062_v37, %v2061_v42  ;;  %v2080_v53 = vrot.slane %v2079_v63, 4  ;;  %v2046_v58 = vrot.slane %v2045_v50, 2  ;;  %v2072_v44 = vadd.f32 %v2071_v43, %v2070_v27 }
 0x1a8   :  { %v2104_v3 = vsel %vm1032_vm0, %v2023_v2, 0.0  ;;  %v2055_v35 = vrot.slane %v2054_v34, 2  ;;  %v2089_v21 = vrot.slane %v2088_v6, 4  ;;  %v2097_v30 = vadd.f32 %v2096_v55, %v2095_v15 }
 0x1a9   :  { %v2064_v5 = vrot.slane %v2063_v29, 2  ;;  %v2081_v20 = vadd.f32 %v2080_v53, %v2079_v63  ;;  %v2047_v7 = vadd.f32 %v2046_v58, %v2045_v50  ;;  %v2073_v24 = vrot.slane %v2072_v44, 2 }
 0x1aa   :  { %v2105_v9 = vsel %vm1032_vm0, %v2024_v41, 0.0  ;;  %v2056_v10 = vadd.f32 %v2055_v35, %v2054_v34  ;;  %v2090_v31 = vadd.f32 %v2089_v21, %v2088_v6  ;;  %v2098_v43 = vrot.slane %v2097_v30, 4 }
 0x1ab   :  { %v2065_v52 = vadd.f32 %v2064_v5, %v2063_v29  ;;  %v2082_v42 = vrot.slane %v2081_v20, 2  ;;  %v2048_v37 = vrot.slane %v2047_v7, 1  ;;  %v2074_v51 = vadd.f32 %v2073_v24, %v2072_v44 }
 0x1ac   :  { %v2106_v27 = vadd.f32 %v2105_v9, %v2104_v3  ;;  %v2057_v36 = vrot.slane %v2056_v10, 1  ;;  %v2091_v4 = vrot.slane %v2090_v31, 2  ;;  %v2099_v50 = vadd.f32 %v2098_v43, %v2097_v30 }
 0x1ad   :  { %v2066_v48 = vrot.slane %v2065_v52, 1  ;;  %v2083_v2 = vadd.f32 %v2082_v42, %v2081_v20  ;;  %v4342_v38 = vadd.f32 %v2048_v37, %v2047_v7  ;;  %v2075_v63 = vrot.slane %v2074_v51, 1 }
 0x1ae   :  { %v2107_v53 = vrot.slane %v2106_v27, 4  ;;  %v4344_v15 = vadd.f32 %v2057_v36, %v2056_v10  ;;  %v2092_v29 = vadd.f32 %v2091_v4, %v2090_v31  ;;  %v2100_v58 = vrot.slane %v2099_v50, 2 }
 0x1af   :  { %v4346_v41 = vadd.f32 %v2066_v48, %v2065_v52  ;;  %v2084_v34 = vrot.slane %v2083_v2, 1  ;;  %v4348_v6 = vadd.f32 %v2075_v63, %v2074_v51  ;;  %v2113_v55 = vsel %vm1032_vm0, %v4279_v16, 0.0 }
 0x1b0   :  { %v2108_v44 = vadd.f32 %v2107_v53, %v2106_v27  ;;  %v2093_v35 = vrot.slane %v2092_v29, 1  ;;  %v2114_v30 = vsel %vm1032_vm0, %v4282_v28, 0.0  ;;  %v2122_v5 = vsel %vm1032_vm0, %v4285_v13, 0.0 }
 0x1b1   :  { %v4352_v3 = vadd.f32 %v2084_v34, %v2083_v2  ;;  %v2101_v20 = vadd.f32 %v2100_v58, %v2099_v50  ;;  %v2115_v7 = vadd.f32 %v2114_v30, %v2113_v55  ;;  %v2123_v4 = vsel %vm1032_vm0, %v4288_v0, 0.0 }
 0x1b2   :  { %v2109_v21 = vrot.slane %v2108_v44, 2  ;;  %v4360_v24 = vadd.f32 %v2093_v35, %v2092_v29  ;;  %v2124_v9 = vadd.f32 %v2123_v4, %v2122_v5  ;;  %v2131_v16 = vsel %vm1032_vm0, %v4291_v54, 0.0 }
 0x1b3   :  { %v2132_v10 = vsel %vm1032_vm0, %v4294_v23, 0.0  ;;  %v2102_v52 = vrot.slane %v2101_v20, 1  ;;  %v2116_v42 = vrot.slane %v2115_v7, 4  ;;  %v2140_v37 = vsel %vm1032_vm0, %v4297_v39, 0.0 }
 0x1b4   :  { %v2110_v28 = vadd.f32 %v2109_v21, %v2108_v44  ;;  %v2133_v31 = vadd.f32 %v2132_v10, %v2131_v16  ;;  %v2125_v13 = vrot.slane %v2124_v9, 4  ;;  %v2141_v0 = vsel %vm1032_vm0, %v4300_v46, 0.0 }
 0x1b5   :  { %v2149_v51 = vsel %vm1032_vm0, %v4303_v8, 0.0  ;;  %v2103_v43 = vadd.f32 %v2102_v52, %v2101_v20  ;;  %v2117_v54 = vadd.f32 %v2116_v42, %v2115_v7  ;;  %v2142_v23 = vadd.f32 %v2141_v0, %v2140_v37 }
 0x1b6   :  { %v2111_v27 = vrot.slane %v2110_v28, 1  ;;  %v2134_v36 = vrot.slane %v2133_v31, 4  ;;  %v2126_v48 = vadd.f32 %v2125_v13, %v2124_v9  ;;  %v2150_v2 = vsel %vm1032_vm0, %v4306_v11, 0.0 }
 0x1b7   :  { %v2158_v63 = vsel %vm1032_vm0, %v4309_v22, 0.0  ;;  %v2118_v39 = vrot.slane %v2117_v54, 2  ;;  %v2151_v34 = vadd.f32 %v2150_v2, %v2149_v51  ;;  %v2143_v29 = vrot.slane %v2142_v23, 4 }
 0x1b8   :  { %v2112_v50 = vadd.f32 %v2111_v27, %v2110_v28  ;;  %v2135_v53 = vadd.f32 %v2134_v36, %v2133_v31  ;;  %v2127_v46 = vrot.slane %v2126_v48, 2  ;;  %v2159_v8 = vsel %vm1032_vm0, %v4312_v18, 0.0 }
 0x1b9   :  { %v2167_v58 = vsel %vm1032_vm0, %v4315_v57, 0.0  ;;  %v2119_v44 = vadd.f32 %v2118_v39, %v2117_v54  ;;  %v2152_v35 = vrot.slane %v2151_v34, 4  ;;  %v2160_v30 = vadd.f32 %v2159_v8, %v2158_v63 }
 0x1ba   :  { %v2136_v55 = vrot.slane %v2135_v53, 2  ;;  %v2128_v11 = vadd.f32 %v2127_v46, %v2126_v48  ;;  %v2144_v5 = vadd.f32 %v2143_v29, %v2142_v23  ;;  %v2168_v22 = vsel %vm1032_vm0, %v4318_v45, 0.0 }
 0x1bb   :  { %v2176_v20 = vsel %vm1032_vm0, %v4321_v26, 0.0  ;;  %v2120_v21 = vrot.slane %v2119_v44, 1  ;;  %v2153_v4 = vadd.f32 %v2152_v35, %v2151_v34  ;;  %v2161_v9 = vrot.slane %v2160_v30, 4  ;;  %v4981_v35 = vld [vmem:[#allocation30_spill] sm:$0xff] }
 0x1bc   :  { %v2137_v7 = vadd.f32 %v2136_v55, %v2135_v53  ;;  %v2129_v18 = vrot.slane %v2128_v11, 1  ;;  %v2145_v16 = vrot.slane %v2144_v5, 2  ;;  %v2169_v10 = vadd.f32 %v2168_v22, %v2167_v58 }
 0x1bd   :  { %v2177_v57 = vsel %vm1032_vm0, %v4324_v32, 0.0  ;;  %v2121_v52 = vadd.f32 %v2120_v21, %v2119_v44  ;;  %v2154_v42 = vrot.slane %v2153_v4, 2  ;;  %v2162_v31 = vadd.f32 %v2161_v9, %v2160_v30  ;;  %v4980_v44 = vld [vmem:[#allocation52_spill] sm:$0xff]  ;;  %v4982_v30 = vld [vmem:[#allocation53_spill] sm:$0xff] }
 0x1be   :  { %v2138_v28 = vrot.slane %v2137_v7, 1  ;;  %v2130_v13 = vadd.f32 %v2129_v18, %v2128_v11  ;;  %v2146_v37 = vadd.f32 %v2145_v16, %v2144_v5  ;;  %v2170_v45 = vrot.slane %v2169_v10, 4  ;;  %v4985_v18 = vld [vmem:[#allocation56_spill] sm:$0xff] }
 0x1bf   :  { %v2178_v0 = vadd.f32 %v2177_v57, %v2176_v20  ;;  %v2155_v26 = vadd.f32 %v2154_v42, %v2153_v4  ;;  %v2163_v27 = vrot.slane %v2162_v31, 2  ;;  %v4388_v54 = vmul.f32 %v3668_v1, %v4342_v38 }
 0x1c0   :  { %v2139_v51 = vadd.f32 %v2138_v28, %v2137_v7  ;;  %v2147_v36 = vrot.slane %v2146_v37, 1  ;;  %v2171_v48 = vadd.f32 %v2170_v45, %v2169_v10  ;;  %v4392_v32 = vmul.f32 %v3686_v12, %v4344_v15  ;;  %v4984_v7 = vld [vmem:[#allocation55_spill] sm:$0xff]  ;;  %v4986_v10 = vld [vmem:[#allocation14_spill] sm:$0xff]  ;;  %v4987_v28 = vld [vmem:[#allocation57_spill] sm:$0xff] }
 0x1c1   :  { %v2179_v23 = vrot.slane %v2178_v0, 4  ;;  %v2156_v2 = vrot.slane %v2155_v26, 1  ;;  %v2164_v63 = vadd.f32 %v2163_v27, %v2162_v31  ;;  %v4396_v39 = vmul.f32 %v3700_v56, %v4346_v41  ;;  %v4988_v31 = vld [vmem:[#allocation59_spill] sm:$0xff]  ;;  %v4991_v27 = vld [vmem:[#allocation62_spill] sm:$0xff] }
 0x1c2   :  { %v4400_v53 = vmul.f32 %v3714_v49, %v4348_v6  ;;  %v2148_v34 = vadd.f32 %v2147_v36, %v2146_v37  ;;  %v2172_v1 = vrot.slane %v2171_v48, 2  ;;  %v4404_v46 = vmul.f32 %v3724_v62, %v4352_v3  ;;  %v4989_v37 = vld [vmem:[#allocation60_spill] sm:$0xff] }
 0x1c3   :  { %v2180_v38 = vadd.f32 %v2179_v23, %v2178_v0  ;;  %v2157_v29 = vadd.f32 %v2156_v2, %v2155_v26  ;;  %v2165_v12 = vrot.slane %v2164_v63, 1  ;;  %v4408_v15 = vmul.f32 %v3731_v47, %v4360_v24  ;;  %v4990_v0 = vld [vmem:[#allocation61_spill] sm:$0xff]  ;;  %v4993_v2 = vld [vmem:[#allocation18_spill] sm:$0xff] }
 0x1c4   :  { %v4411_v56 = vmul.f32 %v3737_v14, %v2103_v43  ;;  %v2173_v41 = vadd.f32 %v2172_v1, %v2171_v48  ;;  %v4414_v49 = vmul.f32 %v3743_v25, %v2112_v50  ;;  %v4417_v6 = vmul.f32 %v3749_v61, %v2121_v52  ;;  %v4979_v25 = vld [vmem:[#allocation24_spill] sm:$0xff]  ;;  %v4992_v48 = vld [vmem:[#allocation13_spill] sm:$0xff] }
 0x1c5   :  { %v2181_v8 = vrot.slane %v2180_v38, 2  ;;  %v2166_v58 = vadd.f32 %v2165_v12, %v2164_v63  ;;  %v4420_v62 = vmul.f32 %v3753_v19, %v2130_v13  ;;  %v4423_v3 = vmul.f32 %v3757_v33, %v2139_v51  ;;  %v4996_v12 = vld [vmem:[#allocation21_spill] sm:$0xff] }
 0x1c6   :  { %v4426_v47 = vmul.f32 %v3761_v59, %v2148_v34  ;;  %v2174_v14 = vrot.slane %v2173_v41, 1  ;;  %v4429_v43 = vmul.f32 %v3763_v40, %v2157_v29  ;;  %v2265_v50 = vrot.slane %v4979_v25, 7  ;;  %v4983_v40 = vld [vmem:[#allocation54_spill] sm:$0xff] }
 0x1c7   :  { %v2182_v24 = vadd.f32 %v2181_v8, %v2180_v38  ;;  %v4433_v61 = vmul.f32 %v3767_v60, %v2166_v58  ;;  %v2268_v19 = vrot.slane %v4980_v44, 6  ;;  %v2271_v11 = vrot.slane %v4982_v30, 5  ;;  %v4994_v34 = vld [vmem:[#allocation58_spill] sm:$0xff]  ;;  %v4995_v38 = vld [vmem:[#allocation63_spill] sm:$0xff]  ;;  %v4997_v8 = vld [vmem:[#allocation64_spill] sm:$0xff] }
 0x1c8   :  { %v2175_v55 = vadd.f32 %v2174_v14, %v2173_v41  ;;  %v2267_v59 = vsel %vm2266_vm1, %v2265_v50, %v4981_v35  ;;  %v2274_v22 = vrot.slane %v4983_v40, 4  ;;  %v2277_v4 = vrot.slane %v4984_v7, 3  ;;  %v4999_v50 = vld [vmem:[#allocation66_spill] sm:$0xff]  ;;  %v5001_v35 = vld [vmem:[#allocation19_spill] sm:$0xff]  ;;  %v5002_v30 = vld [vmem:[#allocation68_spill] sm:$0xff] }
 0x1c9   :  { %v2183_v33 = vrot.slane %v2182_v24, 1  ;;  %v2270_v5 = vsel %vm2269_vm2, %v2268_v19, %v2267_v59  ;;  %v2280_v16 = vrot.slane %v4985_v18, 2  ;;  %v2283_v42 = vrot.slane %v4987_v28, 1  ;;  %v5000_v19 = vld [vmem:[#allocation67_spill] sm:$0xff]  ;;  %v5007_v28 = vld [vmem:[#allocation74_spill] sm:$0xff] }
 0x1ca   :  { %v4442_v60 = vmul.f32 %v4953_v17, %v2175_v55  ;;  %v2273_v21 = vsel %vm2272_vm3, %v2271_v11, %v2270_v5  ;;  %v2286_v13 = vrot.slane %v4988_v31, 7  ;;  %v2288_v45 = vrot.slane %v4989_v37, 6  ;;  %v5003_v5 = vld [vmem:[#allocation69_spill] sm:$0xff] }
 0x1cb   :  { %v2184_v20 = vadd.f32 %v2183_v33, %v2182_v24  ;;  %v2276_v9 = vsel %vm2275_vm4, %v2274_v22, %v2273_v21  ;;  %v2290_v51 = vrot.slane %v4990_v0, 5  ;;  %v2292_v36 = vrot.slane %v4991_v27, 4  ;;  %v4998_v24 = vld [vmem:[#allocation65_spill] sm:$0xff]  ;;  %v5004_v21 = vld [vmem:[#allocation71_spill] sm:$0xff] }
 0x1cc   :  { %v2279_v52 = vsel %vm2278_vm5, %v2277_v4, %v2276_v9  ;;  %v2294_v23 = vrot.slane %v4992_v48, 3  ;;  %v2296_v63 = vrot.slane %v4993_v2, 2  ;;  %v2287_v1 = vsel %vm2266_vm1, %v2286_v13, %v4994_v34  ;;  %v5005_v4 = vld [vmem:[#allocation72_spill] sm:$0xff]  ;;  %v5008_v13 = vld [vmem:[#allocation70_spill] sm:$0xff] }
 0x1cd   :  { %v4449_v57 = vmul.f32 %v4986_v10, %v2184_v20  ;;  %v2282_v17 = vsel %vm2281_vm6, %v2280_v16, %v2279_v52  ;;  %v2298_v29 = vrot.slane %v4995_v38, 1  ;;  %v2300_v41 = vrot.slane %v4996_v12, 7  ;;  %v5006_v10 = vld [vmem:[#allocation73_spill] sm:$0xff] }
 0x1ce   :  { %v2285_v26 = vsel %vm2284_vm7, %v2283_v42, %v2282_v17  ;;  %v2302_v58 = vrot.slane %v4997_v8, 6  ;;  %v2289_v14 = vsel %vm2269_vm2, %v2288_v45, %v2287_v1  ;;  %v2304_v25 = vrot.slane %v4998_v24, 5  ;;  %v5009_v45 = vld [vmem:[#allocation28_spill] sm:$0xff]  ;;  %v5012_v1 = vld [vmem:[#allocation78_spill] sm:$0xff] }
 0x1cf   :  { %2392 = vst.msk [vmem:[#allocation8] sm:$0xff] %vm1032_vm0, %v2285_v26  ;;  %v2306_v44 = vrot.slane %v4999_v50, 4  ;;  %v2308_v55 = vrot.slane %v5000_v19, 3  ;;  %v2291_v33 = vsel %vm2272_vm3, %v2290_v51, %v2289_v14  ;;  %v2301_v59 = vsel %vm2266_vm1, %v2300_v41, %v5001_v35  ;;  %v5013_v41 = vld [vmem:[#allocation79_spill] sm:$0xff] }
 0x1d0   :  { %v2310_v11 = vrot.slane %v5002_v30, 2  ;;  %v2312_v40 = vrot.slane %v5003_v5, 1  ;;  %v2293_v22 = vsel %vm2275_vm4, %v2292_v36, %v2291_v33  ;;  %v2303_v20 = vsel %vm2269_vm2, %v2302_v58, %v2301_v59  ;;  %v5010_v36 = vld [vmem:[#allocation75_spill] sm:$0xff]  ;;  %v5014_v58 = vld [vmem:[#allocation80_spill] sm:$0xff] }
 0x1d1   :  { %v2314_v7 = vrot.slane %v5004_v21, 7  ;;  %v2316_v9 = vrot.slane %v5005_v4, 6  ;;  %v2295_v18 = vsel %vm2278_vm5, %v2294_v23, %v2293_v22  ;;  %v2305_v16 = vsel %vm2272_vm3, %v2304_v25, %v2303_v20  ;;  %v5015_v25 = vld [vmem:[#allocation77_spill] sm:$0xff]  ;;  %v5018_v30 = vld [vmem:[#allocation83_spill] sm:$0xff]  ;;  %v5019_v5 = vld [vmem:[#allocation84_spill] sm:$0xff] }
 0x1d2   :  { %v2318_v52 = vrot.slane %v5006_v10, 5  ;;  %v2320_v42 = vrot.slane %v5007_v28, 4  ;;  %v2297_v17 = vsel %vm2281_vm6, %v2296_v63, %v2295_v18  ;;  %v2307_v31 = vsel %vm2275_vm4, %v2306_v44, %v2305_v16  ;;  %v5011_v63 = vld [vmem:[#allocation76_spill] sm:$0xff]  ;;  %v5016_v44 = vld [vmem:[#allocation81_spill] sm:$0xff]  ;;  %v5020_v21 = vld [vmem:[#allocation86_spill] sm:$0xff] }
 0x1d3   :  { %v2315_v37 = vsel %vm2266_vm1, %v2314_v7, %v5008_v13  ;;  %v2322_v0 = vrot.slane %v5009_v45, 3  ;;  %v2299_v51 = vsel %vm2284_vm7, %v2298_v29, %v2297_v17  ;;  %v2309_v26 = vsel %vm2278_vm5, %v2308_v55, %v2307_v31  ;;  %v5017_v55 = vld [vmem:[#allocation82_spill] sm:$0xff]  ;;  %v5021_v4 = vld [vmem:[#allocation87_spill] sm:$0xff]  ;;  %v5022_v16 = vld [vmem:[#allocation88_spill] sm:$0xff] }
 0x1d4   :  { %v2317_v27 = vsel %vm2269_vm2, %v2316_v9, %v2315_v37  ;;  %v2324_v48 = vrot.slane %v5010_v36, 2  ;;  %v2311_v23 = vsel %vm2281_vm6, %v2310_v11, %v2309_v26  ;;  %v2326_v34 = vrot.slane %v5011_v63, 1  ;;  %2393 = vst.msk [vmem:[#allocation8 + $0x8] sm:$0xff] %vm1032_vm0, %v2299_v51  ;;  %v5025_v13 = vld [vmem:[#allocation85_spill] sm:$0xff]  ;;  %v5027_v51 = vld [vmem:[#allocation20_spill] sm:$0xff] }
 0x1d5   :  { %v2319_v2 = vsel %vm2272_vm3, %v2318_v52, %v2317_v27  ;;  %v2328_v38 = vrot.slane %v5012_v1, 7  ;;  %v2313_v12 = vsel %vm2284_vm7, %v2312_v40, %v2311_v23  ;;  %v2330_v8 = vrot.slane %v5013_v41, 6  ;;  %v5023_v52 = vld [vmem:[#allocation89_spill] sm:$0xff] }
 0x1d6   :  { %v2321_v29 = vsel %vm2275_vm4, %v2320_v42, %v2319_v2  ;;  %v2332_v14 = vrot.slane %v5014_v58, 5  ;;  %v2334_v19 = vrot.slane %v5016_v44, 4  ;;  %v2336_v33 = vrot.slane %v5017_v55, 3  ;;  %2394 = vst.msk [vmem:[#allocation8 + $0x10] sm:$0xff] %vm1032_vm0, %v2313_v12  ;;  %v5024_v42 = vld [vmem:[#allocation90_spill] sm:$0xff]  ;;  %v5026_v45 = vld [vmem:[#allocation29_spill] sm:$0xff] }
 0x1d7   :  { %v2323_v24 = vsel %vm2278_vm5, %v2322_v0, %v2321_v29  ;;  %v2329_v50 = vsel %vm2266_vm1, %v2328_v38, %v5015_v25  ;;  %v2338_v11 = vrot.slane %v5018_v30, 2  ;;  %v2340_v40 = vrot.slane %v5019_v5, 1 }
 0x1d8   :  { %v2325_v35 = vsel %vm2281_vm6, %v2324_v48, %v2323_v24  ;;  %v2331_v59 = vsel %vm2269_vm2, %v2330_v8, %v2329_v50  ;;  %v2342_v7 = vrot.slane %v5020_v21, 7  ;;  %v2344_v9 = vrot.slane %v5021_v4, 6 }
 0x1d9   :  { %v2327_v22 = vsel %vm2284_vm7, %v2326_v34, %v2325_v35  ;;  %v2333_v20 = vsel %vm2272_vm3, %v2332_v14, %v2331_v59  ;;  %v2346_v10 = vrot.slane %v5022_v16, 5  ;;  %v2348_v28 = vrot.slane %v5023_v52, 4 }
 0x1da   :  { %v2335_v18 = vsel %vm2275_vm4, %v2334_v19, %v2333_v20  ;;  %v2350_v17 = vrot.slane %v5024_v42, 3  ;;  %2395 = vst.msk [vmem:[#allocation8 + $0x18] sm:$0xff] %vm1032_vm0, %v2327_v22  ;;  %v2343_v37 = vsel %vm2266_vm1, %v2342_v7, %v5025_v13  ;;  %v2352_v0 = vrot.slane %v5026_v45, 2 }
 0x1db   :  { %v2337_v31 = vsel %vm2278_vm5, %v2336_v33, %v2335_v18  ;;  %v2354_v26 = vrot.slane %v5027_v51, 1  ;;  %v2345_v36 = vsel %vm2269_vm2, %v2344_v9, %v2343_v37  ;;  %v2356_v48 = vrot.slane %v4392_v32, 7 }
 0x1dc   :  { %v2339_v27 = vsel %vm2281_vm6, %v2338_v11, %v2337_v31  ;;  %v2358_v23 = vrot.slane %v4396_v39, 6  ;;  %v2347_v63 = vsel %vm2272_vm3, %v2346_v10, %v2345_v36  ;;  %v2360_v34 = vrot.slane %v4400_v53, 5 }
 0x1dd   :  { %v2341_v2 = vsel %vm2284_vm7, %v2340_v40, %v2339_v27  ;;  %v2362_v1 = vrot.slane %v4404_v46, 4  ;;  %v2349_v38 = vsel %vm2275_vm4, %v2348_v28, %v2347_v63  ;;  %v2357_v12 = vsel %vm2266_vm1, %v2356_v48, %v4388_v54 }
 0x1de   :  { %v2364_v29 = vrot.slane %v4408_v15, 3  ;;  %v2366_v41 = vrot.slane %v4411_v56, 2  ;;  %2396 = vst.msk [vmem:[#allocation8 + $0x20] sm:$0xff] %vm1032_vm0, %v2341_v2  ;;  %v2351_v32 = vsel %vm2278_vm5, %v2350_v17, %v2349_v38  ;;  %v2359_v39 = vsel %vm2269_vm2, %v2358_v23, %v2357_v12 }
 0x1df   :  { %v2368_v8 = vrot.slane %v4414_v49, 1  ;;  %v2370_v53 = vrot.slane %v4420_v62, 7  ;;  %v2353_v46 = vsel %vm2281_vm6, %v2352_v0, %v2351_v32  ;;  %v2361_v58 = vsel %vm2272_vm3, %v2360_v34, %v2359_v39 }
 0x1e0   :  { %v2372_v54 = vrot.slane %v4423_v3, 6  ;;  %v2374_v15 = vrot.slane %v4426_v47, 5  ;;  %v2355_v56 = vsel %vm2284_vm7, %v2354_v26, %v2353_v46  ;;  %v2363_v14 = vsel %vm2275_vm4, %v2362_v1, %v2361_v58 }
 0x1e1   :  { %v2371_v24 = vsel %vm2266_vm1, %v2370_v53, %v4417_v6  ;;  %v2376_v25 = vrot.slane %v4429_v43, 4  ;;  %v2365_v49 = vsel %vm2278_vm5, %v2364_v29, %v2363_v14  ;;  %v2378_v50 = vrot.slane %v4433_v61, 3  ;;  %2397 = vst.msk [vmem:[#allocation8 + $0x28] sm:$0xff] %vm1032_vm0, %v2355_v56 }
 0x1e2   :  { %v2373_v62 = vsel %vm2269_vm2, %v2372_v54, %v2371_v24  ;;  %v2380_v44 = vrot.slane %v4442_v60, 2  ;;  %v2367_v3 = vsel %vm2281_vm6, %v2366_v41, %v2365_v49  ;;  %v2382_v19 = vrot.slane %v4449_v57, 1 }
 0x1e3   :  { %v2375_v47 = vsel %vm2272_vm3, %v2374_v15, %v2373_v62  ;;  %v2369_v6 = vsel %vm2284_vm7, %v2368_v8, %v2367_v3 }
 0x1e4   :  { %v2377_v43 = vsel %vm2275_vm4, %v2376_v25, %v2375_v47  ;;  %2398 = vst.msk [vmem:[#allocation8 + $0x30] sm:$0xff] %vm1032_vm0, %v2369_v6 }
 0x1e5   :  { %v2379_v55 = vsel %vm2278_vm5, %v2378_v50, %v2377_v43 }
 0x1e6   :  { %v2381_v61 = vsel %vm2281_vm6, %v2380_v44, %v2379_v55 }
 0x1e7   :  { %v2383_v60 = vsel %vm2284_vm7, %v2382_v19, %v2381_v61 }
 0x1e8   :  { %2399 = vst.msk [vmem:[#allocation8 + $0x38] sm:$0xff] %vm1032_vm0, %v2383_v60 }
 0x1e9   :  { %2598 = shalt.err (!%p2595_p0)
}
 0x1ea   :  { %s2599_s27 = scalar_lea.hbm %s4586_s3, 1024 }
 0x1eb   :  { %p2600_p1 = scmp.ne.s32.totalorder %s4586_s3, %s2599_s27  ;;  %p2603_p2 = scmp.lt.u32.totalorder %s2599_s27, %s4586_s3 }
 0x1ed   :  { %p2605_p3 = pnand %p2603_p2, %p2600_p1 }
 0x1ef   :  { %2608 = shalt.err (!%p2605_p3)
}
 0x1f0   :  { %2411 = dma.vmem_to_hbm [thread:$0]  %s2406_s21, 1024, %s4586_s3, [#allocation4], %s2617_s24, %s2617_s24, %s2618_s25  }
 0x1f1   :  { %2613 = dma.done.wait [#allocation4], 1024  }
 0x1f2   :  { %2614 = vsyncadd [#allocation4], 4294966272 }
 0x1f3   :  { %2415 = vsyncpa [#allocation3], 1 }
 0x1f4   :  { %2416 = vsyncpa [#allocation6], 1 }
 0x1f5   :  { %2417 = vsyncpa [#allocation4], 1 }

</bundles_post_ra>
